<compile_context>
chip_gen: v7x
topology: tpu7x:2x2x1
jax: 0.10.0
libtpu: 0.0.40
codegen_flags: <defaults>
</compile_context>

<pallas_src>
import jax
import jax.numpy as jnp
from jax.experimental import pallas as pl
from jax.experimental.pallas import tpu as pltpu


def _silu(x):
    # SiLU = x * sigmoid(x).  exp and the approximate reciprocal both issue on the EUP
    # slot, keeping VALU slots free for the surrounding adds/muls.
    return x * pl.reciprocal(1.0 + jnp.exp(-x), approx=True)


# ---------------------------------------------------------------------------
# Fused kernel: message MLP (per edge tile) + scatter-mean accumulation +
# res Linear + residual + update MLP (finalized on last edge tile).
# ---------------------------------------------------------------------------
def gnn_fused_kernel(ep_ref, ea_ref, sc_ref, x_ref,
                     w1e_ref, b1_ref, w2_ref, b2_ref,
                     wr_ref, br_ref, wu1_ref, bu1_ref, wu2_ref, bu2_ref,
                     msg_ref, xout_ref, acc_ref):
    t = pl.program_id(0)

    @pl.when(t == 0)
    def _init():
        acc_ref[...] = jnp.zeros_like(acc_ref)

    # ---- message_fn on this edge tile -------------------------------------
    # Linear(3H->H): the node-side part (x[send]@w1_s + x[recv]@w1_r) arrives
    # precomputed in ep_ref; only edge_attr@w1_edge hits the MXU here (bf16 in, f32 acc).
    h = jnp.dot(ea_ref[...], w1e_ref[...], preferred_element_type=jnp.float32)
    h = _silu(h + ep_ref[...] + b1_ref[...])
    h = jnp.dot(h.astype(jnp.bfloat16), w2_ref[...],
                preferred_element_type=jnp.float32) + b2_ref[...]
    msg = _silu(h)
    msg_ref[...] = msg.astype(msg_ref.dtype)

    # ---- scatter-mean partial sum: pre-normalized one-hot @ msg ------------
    acc_ref[...] += jnp.dot(sc_ref[...], msg.astype(jnp.bfloat16),
                            preferred_element_type=jnp.float32)

    # ---- node path, finalized once all edge tiles are accumulated ----------
    @pl.when(t == pl.num_programs(0) - 1)
    def _finalize():
        res = jnp.dot(x_ref[...], wr_ref[...],
                      preferred_element_type=jnp.float32) + br_ref[...]
        hx = res + acc_ref[...]
        u = _silu(jnp.dot(hx, wu1_ref[...],
                          preferred_element_type=jnp.float32) + bu1_ref[...])
        u = jnp.dot(u, wu2_ref[...], preferred_element_type=jnp.float32) + bu2_ref[...]
        xout_ref[...] = (hx + u).astype(xout_ref.dtype)


# ---------------------------------------------------------------------------
# Wrapper
# ---------------------------------------------------------------------------
def _round_up(a, m):
    return ((a + m - 1) // m) * m


_EDGE_TILE = 512  # edge rows per block (multiple of 8/128; bounds VMEM independent of E)


@jax.jit
def gnn_layer_forward(x, edge_attr, send, recv, params):
    """Pallas implementation of GNNLayer.forward (only_edge_attr=False)."""
    N, F_in = x.shape
    E, F_e = edge_attr.shape
    H = params["w2"].shape[1]

    # Hoist node-side projections of message_fn L1 out of the edge loop.
    w1 = params["w1"]                                  # [2*F_in + F_e, H]
    w1_s, w1_r, w1_e = w1[:F_in], w1[F_in:2 * F_in], w1[2 * F_in:]
    proj_s = x @ w1_s                                  # [N, H] f32 (once per node)
    proj_r = x @ w1_r                                  # [N, H] f32
    ep = proj_s[send] + proj_r[recv]                   # [E, H] glue gather + add

    # Graph-static scatter-mean operator: scatter[n, e] = (recv[e] == n) / count(n).
    onehot = (recv[None, :] == jnp.arange(N, dtype=recv.dtype)[:, None]).astype(jnp.float32)
    counts = jnp.sum(onehot, axis=1, keepdims=True)
    scatter_op = onehot / jnp.maximum(counts, 1.0)     # [N, E]

    # Tile + zero-pad the edge axis (zero scatter columns => padded edges contribute 0).
    if E <= _EDGE_TILE:
        te = _round_up(E, 8)
        e_pad = te
    else:
        te = _EDGE_TILE
        e_pad = _round_up(E, te)
    pad = e_pad - E
    if pad:
        ep = jnp.pad(ep, ((0, pad), (0, 0)))
        edge_attr = jnp.pad(edge_attr, ((0, pad), (0, 0)))
        scatter_op = jnp.pad(scatter_op, ((0, 0), (0, pad)))

    # bf16 operands for the (dominant) edge-loop MXU matmuls; f32 accumulation in-kernel.
    ea_bf = edge_attr.astype(jnp.bfloat16)
    sc_bf = scatter_op.astype(jnp.bfloat16)
    w1e_bf = w1_e.astype(jnp.bfloat16)
    w2_bf = params["w2"].astype(jnp.bfloat16)

    n_tiles = e_pad // te

    def resident(shp):
        return pl.BlockSpec(shp, lambda t: tuple(0 for _ in shp))

    msg_pad, x_out = pl.pallas_call(
        gnn_fused_kernel,
        out_shape=(jax.ShapeDtypeStruct((e_pad, H), jnp.float32),
                   jax.ShapeDtypeStruct((N, H), jnp.float32)),
        grid=(n_tiles,),
        in_specs=[
            pl.BlockSpec((te, H), lambda t: (t, 0)),     # ep (node projections, per edge)
            pl.BlockSpec((te, F_e), lambda t: (t, 0)),   # edge_attr (bf16)
            pl.BlockSpec((N, te), lambda t: (0, t)),     # scatter-mean operator (bf16)
            resident((N, F_in)),                         # x
            resident(w1e_bf.shape), resident(params["b1"].shape),
            resident(w2_bf.shape), resident(params["b2"].shape),
            resident(params["wr"].shape), resident(params["br"].shape),
            resident(params["wu1"].shape), resident(params["bu1"].shape),
            resident(params["wu2"].shape), resident(params["bu2"].shape),
        ],
        out_specs=(
            pl.BlockSpec((te, H), lambda t: (t, 0)),     # msg, tiled over E
            pl.BlockSpec((N, H), lambda t: (0, 0)),      # x_out, resident across E tiles
        ),
        scratch_shapes=[pltpu.VMEM((N, H), jnp.float32)],
        compiler_params=pltpu.CompilerParams(
            dimension_semantics=("arbitrary",),          # E axis is a reduction for x_out
            vmem_limit_bytes=32 * 1024 * 1024),
    )(ep, ea_bf, sc_bf, x,
      w1e_bf, params["b1"], w2_bf, params["b2"],
      params["wr"], params["br"],
      params["wu1"], params["bu1"], params["wu2"], params["bu2"])

    return x_out, msg_pad[:E]


# ---------------------------------------------------------------------------
# Pure-JAX reference for verification (f32 throughout).
# ---------------------------------------------------------------------------
def gnn_layer_ref(x, edge_attr, send, recv, params):
    N = x.shape[0]
    ef = jnp.concatenate([x[send], x[recv], edge_attr], axis=-1)
    h = jax.nn.silu(ef @ params["w1"] + params["b1"])
    msg = jax.nn.silu(h @ params["w2"] + params["b2"])
    agg_sum = jnp.zeros((N, msg.shape[-1]), jnp.float32).at[recv].add(msg)
    cnt = jnp.zeros((N, 1), jnp.float32).at[recv].add(1.0)
    agg = agg_sum / jnp.maximum(cnt, 1.0)
    hx = (x @ params["wr"] + params["br"]) + agg
    u = jax.nn.silu(hx @ params["wu1"] + params["bu1"]) @ params["wu2"] + params["bu2"]
    return hx + u, msg


# ---------------------------------------------------------------------------
# Main
# ---------------------------------------------------------------------------
if __name__ == "__main__":
    key = jax.random.PRNGKey(0)

    batch = 4
    num_objects = 12
    input_size = 16
    hidden_size = 32
    # only_edge_attr=False => message_fn input = 3*hidden_size = 2*input_size + edge_feat_dim
    edge_feat_dim = 3 * hidden_size - 2 * input_size  # 64

    N = batch * num_objects
    # Fully-connected directed edges (no self loops) per batch, with batch offsets.
    send_list, recv_list = [], []
    for b in range(batch):
        for i in range(num_objects):
            for j in range(num_objects):
                if i != j:
                    send_list.append(b * num_objects + i)
                    recv_list.append(b * num_objects + j)
    send = jnp.asarray(send_list, dtype=jnp.int32)
    recv = jnp.asarray(recv_list, dtype=jnp.int32)
    E = send.shape[0]  # 4 * 132 = 528 -> exercises the multi-tile accumulation path

    keys = jax.random.split(key, 12)

    def lin_init(kw, kb, fan_in, fan_out):
        bound = 1.0 / jnp.sqrt(fan_in)
        w = jax.random.uniform(kw, (fan_in, fan_out), jnp.float32, -bound, bound)
        b = jax.random.uniform(kb, (1, fan_out), jnp.float32, -bound, bound)
        return w, b

    w1, b1 = lin_init(keys[0], keys[1], 3 * hidden_size, hidden_size)     # message_fn L1
    w2, b2 = lin_init(keys[2], keys[3], hidden_size, hidden_size)         # message_fn L2
    wr, br = lin_init(keys[4], keys[5], input_size, hidden_size)          # res Linear
    wu1, bu1 = lin_init(keys[6], keys[7], hidden_size, 2 * hidden_size)   # update_fn L1
    wu2, bu2 = lin_init(keys[8], keys[9], 2 * hidden_size, hidden_size)   # update_fn L2
    params = dict(w1=w1, b1=b1, w2=w2, b2=b2, wr=wr, br=br,
                  wu1=wu1, bu1=bu1, wu2=wu2, bu2=bu2)

    x = jax.random.normal(keys[10], (N, input_size), jnp.float32)
    edge_attr = jax.random.normal(keys[11], (E, edge_feat_dim), jnp.float32)

    x_out, msg_out = gnn_layer_forward(x, edge_attr, send, recv, params)
    x_out = jax.block_until_ready(x_out)
    msg_out = jax.block_until_ready(msg_out)

    x_ref, msg_ref = gnn_layer_ref(x, edge_attr, send, recv, params)
    # bf16 MXU inputs (f32 accumulation) + approx reciprocal in SiLU => loosened tolerance.
    assert jnp.allclose(msg_out, msg_ref, atol=3e-2, rtol=3e-2), "message mismatch"
    assert jnp.allclose(x_out, x_ref, atol=5e-2, rtol=5e-2), "node output mismatch"

    print("KERNEL_OK")
</pallas_src>

<mosaic_0001>
module attributes {stable_mosaic.version = 11 : i64} {
  func.func @gnn_fused_kernel(%arg0: i32, %arg1: memref<512x32xf32, #tpu.memory_space<vmem>>, %arg2: memref<512x64xbf16, #tpu.memory_space<vmem>>, %arg3: memref<48x512xbf16, #tpu.memory_space<vmem>>, %arg4: memref<48x16xf32, #tpu.memory_space<vmem>>, %arg5: memref<64x32xbf16, #tpu.memory_space<vmem>>, %arg6: memref<1x32xf32, #tpu.memory_space<vmem>>, %arg7: memref<32x32xbf16, #tpu.memory_space<vmem>>, %arg8: memref<1x32xf32, #tpu.memory_space<vmem>>, %arg9: memref<16x32xf32, #tpu.memory_space<vmem>>, %arg10: memref<1x32xf32, #tpu.memory_space<vmem>>, %arg11: memref<32x64xf32, #tpu.memory_space<vmem>>, %arg12: memref<1x64xf32, #tpu.memory_space<vmem>>, %arg13: memref<64x32xf32, #tpu.memory_space<vmem>>, %arg14: memref<1x32xf32, #tpu.memory_space<vmem>>, %arg15: memref<512x32xf32, #tpu.memory_space<vmem>>, %arg16: memref<48x32xf32, #tpu.memory_space<vmem>>, %arg17: memref<48x32xf32, #tpu.memory_space<vmem>>) attributes {dimension_semantics = [#tpu.dimension_semantics<arbitrary>], iteration_bounds = array<i64: 2>, scalar_prefetch = 0 : i64, scratch_operands = 1 : i64, tpu.core_type = #tpu.core_type<tc>, window_params = [{transform_indices = @transform_0, window_bounds = array<i64: 512, 32>}, {transform_indices = @transform_1, window_bounds = array<i64: 512, 64>}, {transform_indices = @transform_2, window_bounds = array<i64: 48, 512>}, {pipeline_mode = #tpu.pipeline_mode<synchronous>, transform_indices = @transform_3, window_bounds = array<i64: 48, 16>}, {pipeline_mode = #tpu.pipeline_mode<synchronous>, transform_indices = @transform_4, window_bounds = array<i64: 64, 32>}, {pipeline_mode = #tpu.pipeline_mode<synchronous>, transform_indices = @transform_5, window_bounds = array<i64: 1, 32>}, {pipeline_mode = #tpu.pipeline_mode<synchronous>, transform_indices = @transform_6, window_bounds = array<i64: 32, 32>}, {pipeline_mode = #tpu.pipeline_mode<synchronous>, transform_indices = @transform_7, window_bounds = array<i64: 1, 32>}, {pipeline_mode = #tpu.pipeline_mode<synchronous>, transform_indices = @transform_8, window_bounds = array<i64: 16, 32>}, {pipeline_mode = #tpu.pipeline_mode<synchronous>, transform_indices = @transform_9, window_bounds = array<i64: 1, 32>}, {pipeline_mode = #tpu.pipeline_mode<synchronous>, transform_indices = @transform_10, window_bounds = array<i64: 32, 64>}, {pipeline_mode = #tpu.pipeline_mode<synchronous>, transform_indices = @transform_11, window_bounds = array<i64: 1, 64>}, {pipeline_mode = #tpu.pipeline_mode<synchronous>, transform_indices = @transform_12, window_bounds = array<i64: 64, 32>}, {pipeline_mode = #tpu.pipeline_mode<synchronous>, transform_indices = @transform_13, window_bounds = array<i64: 1, 32>}, {transform_indices = @transform_14, window_bounds = array<i64: 512, 32>}, {pipeline_mode = #tpu.pipeline_mode<synchronous>, transform_indices = @transform_15, window_bounds = array<i64: 48, 32>}]} {
    %c0_i32 = arith.constant 0 : i32
    %0 = arith.cmpi eq, %arg0, %c0_i32 : i32
    %1 = arith.extui %0 : i1 to i32
    %c0_i32_0 = arith.constant 0 : i32
    %2 = arith.cmpi ne, %1, %c0_i32_0 : i32
    scf.if %2 {
      %cst_27 = arith.constant 0.000000e+00 : f32
      %41 = vector.broadcast %cst_27 : f32 to vector<48x32xf32>
      %c0_28 = arith.constant 0 : index
      %c0_29 = arith.constant 0 : index
      %42 = vector.load %arg17[%c0_28, %c0_29] : memref<48x32xf32, #tpu.memory_space<vmem>>, vector<48x32xf32>
      tpu.vector_store %arg17[%c0_28, %c0_29], %41 {strides = array<i32>} : memref<48x32xf32, #tpu.memory_space<vmem>>, vector<48x32xf32>,
    } else {
    }
    %c0 = arith.constant 0 : index
    %c0_1 = arith.constant 0 : index
    %3 = vector.load %arg2[%c0, %c0_1] : memref<512x64xbf16, #tpu.memory_space<vmem>>, vector<512x64xbf16>
    %c0_2 = arith.constant 0 : index
    %c0_3 = arith.constant 0 : index
    %4 = vector.load %arg5[%c0_2, %c0_3] : memref<64x32xbf16, #tpu.memory_space<vmem>>, vector<64x32xbf16>
    %cst = arith.constant dense<0.000000e+00> : vector<512x32xf32>
    %5 = tpu.matmul %3, %4, %cst {dimension_numbers = #tpu.dot_dimension_numbers<[1], [0], [0], [1], [0, 0, 1, 1], [], []>} : vector<512x64xbf16>, vector<64x32xbf16>, vector<512x32xf32> -> vector<512x32xf32>
    %c0_4 = arith.constant 0 : index
    %c0_5 = arith.constant 0 : index
    %6 = vector.load %arg1[%c0_4, %c0_5] : memref<512x32xf32, #tpu.memory_space<vmem>>, vector<512x32xf32>
    %7 = arith.addf %5, %6 : vector<512x32xf32>
    %c0_6 = arith.constant 0 : index
    %c0_7 = arith.constant 0 : index
    %8 = vector.load %arg6[%c0_6, %c0_7] : memref<1x32xf32, #tpu.memory_space<vmem>>, vector<1x32xf32>
    %9 = vector.broadcast %8 : vector<1x32xf32> to vector<512x32xf32>
    %10 = arith.addf %7, %9 : vector<512x32xf32>
    %cst_8 = arith.constant 0.000000e+00 : f32
    %11 = vector.broadcast %cst_8 : f32 to vector<512x32xf32>
    %12 = arith.subf %11, %10 : vector<512x32xf32>
    %13 = math.exp %12 : vector<512x32xf32>
    %cst_9 = arith.constant 1.000000e+00 : f32
    %14 = vector.broadcast %cst_9 : f32 to vector<512x32xf32>
    %15 = arith.addf %14, %13 : vector<512x32xf32>
    %16 = tpu.reciprocal %15 {approx = true} : vector<512x32xf32> -> vector<512x32xf32>
    %17 = arith.mulf %10, %16 : vector<512x32xf32>
    %18 = arith.truncf %17 : vector<512x32xf32> to vector<512x32xbf16>
    %c0_10 = arith.constant 0 : index
    %c0_11 = arith.constant 0 : index
    %19 = vector.load %arg7[%c0_10, %c0_11] : memref<32x32xbf16, #tpu.memory_space<vmem>>, vector<32x32xbf16>
    %cst_12 = arith.constant dense<0.000000e+00> : vector<512x32xf32>
    %20 = tpu.matmul %18, %19, %cst_12 {dimension_numbers = #tpu.dot_dimension_numbers<[1], [0], [0], [1], [0, 0, 1, 1], [], []>} : vector<512x32xbf16>, vector<32x32xbf16>, vector<512x32xf32> -> vector<512x32xf32>
    %c0_13 = arith.constant 0 : index
    %c0_14 = arith.constant 0 : index
    %21 = vector.load %arg8[%c0_13, %c0_14] : memref<1x32xf32, #tpu.memory_space<vmem>>, vector<1x32xf32>
    %22 = vector.broadcast %21 : vector<1x32xf32> to vector<512x32xf32>
    %23 = arith.addf %20, %22 : vector<512x32xf32>
    %cst_15 = arith.constant 0.000000e+00 : f32
    %24 = vector.broadcast %cst_15 : f32 to vector<512x32xf32>
    %25 = arith.subf %24, %23 : vector<512x32xf32>
    %26 = math.exp %25 : vector<512x32xf32>
    %cst_16 = arith.constant 1.000000e+00 : f32
    %27 = vector.broadcast %cst_16 : f32 to vector<512x32xf32>
    %28 = arith.addf %27, %26 : vector<512x32xf32>
    %29 = tpu.reciprocal %28 {approx = true} : vector<512x32xf32> -> vector<512x32xf32>
    %30 = arith.mulf %23, %29 : vector<512x32xf32>
    %c0_17 = arith.constant 0 : index
    %c0_18 = arith.constant 0 : index
    %31 = vector.load %arg15[%c0_17, %c0_18] : memref<512x32xf32, #tpu.memory_space<vmem>>, vector<512x32xf32>
    tpu.vector_store %arg15[%c0_17, %c0_18], %30 {strides = array<i32>} : memref<512x32xf32, #tpu.memory_space<vmem>>, vector<512x32xf32>,
    %c0_19 = arith.constant 0 : index
    %c0_20 = arith.constant 0 : index
    %32 = vector.load %arg17[%c0_19, %c0_20] : memref<48x32xf32, #tpu.memory_space<vmem>>, vector<48x32xf32>
    %c0_21 = arith.constant 0 : index
    %c0_22 = arith.constant 0 : index
    %33 = vector.load %arg3[%c0_21, %c0_22] : memref<48x512xbf16, #tpu.memory_space<vmem>>, vector<48x512xbf16>
    %34 = arith.truncf %30 : vector<512x32xf32> to vector<512x32xbf16>
    %cst_23 = arith.constant dense<0.000000e+00> : vector<48x32xf32>
    %35 = tpu.matmul %33, %34, %cst_23 {dimension_numbers = #tpu.dot_dimension_numbers<[1], [0], [0], [1], [0, 0, 1, 1], [], []>} : vector<48x512xbf16>, vector<512x32xbf16>, vector<48x32xf32> -> vector<48x32xf32>
    %36 = arith.addf %32, %35 : vector<48x32xf32>
    %c0_24 = arith.constant 0 : index
    %c0_25 = arith.constant 0 : index
    %37 = vector.load %arg17[%c0_24, %c0_25] : memref<48x32xf32, #tpu.memory_space<vmem>>, vector<48x32xf32>
    tpu.vector_store %arg17[%c0_24, %c0_25], %36 {strides = array<i32>} : memref<48x32xf32, #tpu.memory_space<vmem>>, vector<48x32xf32>,
    %c1_i32 = arith.constant 1 : i32
    %38 = arith.cmpi eq, %arg0, %c1_i32 : i32
    %39 = arith.extui %38 : i1 to i32
    %c0_i32_26 = arith.constant 0 : i32
    %40 = arith.cmpi ne, %39, %c0_i32_26 : i32
    scf.if %40 {
      %c0_27 = arith.constant 0 : index
      %c0_28 = arith.constant 0 : index
      %41 = vector.load %arg4[%c0_27, %c0_28] : memref<48x16xf32, #tpu.memory_space<vmem>>, vector<48x16xf32>
      %c0_29 = arith.constant 0 : index
      %c0_30 = arith.constant 0 : index
      %42 = vector.load %arg9[%c0_29, %c0_30] : memref<16x32xf32, #tpu.memory_space<vmem>>, vector<16x32xf32>
      %cst_31 = arith.constant dense<0.000000e+00> : vector<48x32xf32>
      %43 = tpu.matmul %41, %42, %cst_31 {dimension_numbers = #tpu.dot_dimension_numbers<[1], [0], [0], [1], [0, 0, 1, 1], [], []>} : vector<48x16xf32>, vector<16x32xf32>, vector<48x32xf32> -> vector<48x32xf32>
      %c0_32 = arith.constant 0 : index
      %c0_33 = arith.constant 0 : index
      %44 = vector.load %arg10[%c0_32, %c0_33] : memref<1x32xf32, #tpu.memory_space<vmem>>, vector<1x32xf32>
      %45 = vector.broadcast %44 : vector<1x32xf32> to vector<48x32xf32>
      %46 = arith.addf %43, %45 : vector<48x32xf32>
      %c0_34 = arith.constant 0 : index
      %c0_35 = arith.constant 0 : index
      %47 = vector.load %arg17[%c0_34, %c0_35] : memref<48x32xf32, #tpu.memory_space<vmem>>, vector<48x32xf32>
      %48 = arith.addf %46, %47 : vector<48x32xf32>
      %c0_36 = arith.constant 0 : index
      %c0_37 = arith.constant 0 : index
      %49 = vector.load %arg11[%c0_36, %c0_37] : memref<32x64xf32, #tpu.memory_space<vmem>>, vector<32x64xf32>
      %cst_38 = arith.constant dense<0.000000e+00> : vector<48x64xf32>
      %50 = tpu.matmul %48, %49, %cst_38 {dimension_numbers = #tpu.dot_dimension_numbers<[1], [0], [0], [1], [0, 0, 1, 1], [], []>} : vector<48x32xf32>, vector<32x64xf32>, vector<48x64xf32> -> vector<48x64xf32>
      %c0_39 = arith.constant 0 : index
      %c0_40 = arith.constant 0 : index
      %51 = vector.load %arg12[%c0_39, %c0_40] : memref<1x64xf32, #tpu.memory_space<vmem>>, vector<1x64xf32>
      %52 = vector.broadcast %51 : vector<1x64xf32> to vector<48x64xf32>
      %53 = arith.addf %50, %52 : vector<48x64xf32>
      %cst_41 = arith.constant 0.000000e+00 : f32
      %54 = vector.broadcast %cst_41 : f32 to vector<48x64xf32>
      %55 = arith.subf %54, %53 : vector<48x64xf32>
      %56 = math.exp %55 : vector<48x64xf32>
      %cst_42 = arith.constant 1.000000e+00 : f32
      %57 = vector.broadcast %cst_42 : f32 to vector<48x64xf32>
      %58 = arith.addf %57, %56 : vector<48x64xf32>
      %59 = tpu.reciprocal %58 {approx = true} : vector<48x64xf32> -> vector<48x64xf32>
      %60 = arith.mulf %53, %59 : vector<48x64xf32>
      %c0_43 = arith.constant 0 : index
      %c0_44 = arith.constant 0 : index
      %61 = vector.load %arg13[%c0_43, %c0_44] : memref<64x32xf32, #tpu.memory_space<vmem>>, vector<64x32xf32>
      %cst_45 = arith.constant dense<0.000000e+00> : vector<48x32xf32>
      %62 = tpu.matmul %60, %61, %cst_45 {dimension_numbers = #tpu.dot_dimension_numbers<[1], [0], [0], [1], [0, 0, 1, 1], [], []>} : vector<48x64xf32>, vector<64x32xf32>, vector<48x32xf32> -> vector<48x32xf32>
      %c0_46 = arith.constant 0 : index
      %c0_47 = arith.constant 0 : index
      %63 = vector.load %arg14[%c0_46, %c0_47] : memref<1x32xf32, #tpu.memory_space<vmem>>, vector<1x32xf32>
      %64 = vector.broadcast %63 : vector<1x32xf32> to vector<48x32xf32>
      %65 = arith.addf %62, %64 : vector<48x32xf32>
      %66 = arith.addf %48, %65 : vector<48x32xf32>
      %c0_48 = arith.constant 0 : index
      %c0_49 = arith.constant 0 : index
      %67 = vector.load %arg16[%c0_48, %c0_49] : memref<48x32xf32, #tpu.memory_space<vmem>>, vector<48x32xf32>
      tpu.vector_store %arg16[%c0_48, %c0_49], %66 {strides = array<i32>} : memref<48x32xf32, #tpu.memory_space<vmem>>, vector<48x32xf32>,
    } else {
    }
    return
  }
  func.func @transform_0(%arg0: i32) -> (i32, i32) {
    %c0_i32 = arith.constant 0 : i32
    %c0_i32_0 = arith.constant 0 : i32
    return %arg0, %c0_i32 : i32, i32
  }
  func.func @transform_1(%arg0: i32) -> (i32, i32) {
    %c0_i32 = arith.constant 0 : i32
    %c0_i32_0 = arith.constant 0 : i32
    return %arg0, %c0_i32 : i32, i32
  }
  func.func @transform_2(%arg0: i32) -> (i32, i32) {
    %c0_i32 = arith.constant 0 : i32
    %c0_i32_0 = arith.constant 0 : i32
    return %c0_i32, %arg0 : i32, i32
  }
  func.func @transform_3(%arg0: i32) -> (i32, i32) {
    %c0_i32 = arith.constant 0 : i32
    %c0_i32_0 = arith.constant 0 : i32
    %c0_i32_1 = arith.constant 0 : i32
    return %c0_i32, %c0_i32_0 : i32, i32
  }
  func.func @transform_4(%arg0: i32) -> (i32, i32) {
    %c0_i32 = arith.constant 0 : i32
    %c0_i32_0 = arith.constant 0 : i32
    %c0_i32_1 = arith.constant 0 : i32
    return %c0_i32, %c0_i32_0 : i32, i32
  }
  func.func @transform_5(%arg0: i32) -> (i32, i32) {
    %c0_i32 = arith.constant 0 : i32
    %c0_i32_0 = arith.constant 0 : i32
    %c0_i32_1 = arith.constant 0 : i32
    return %c0_i32, %c0_i32_0 : i32, i32
  }
  func.func @transform_6(%arg0: i32) -> (i32, i32) {
    %c0_i32 = arith.constant 0 : i32
    %c0_i32_0 = arith.constant 0 : i32
    %c0_i32_1 = arith.constant 0 : i32
    return %c0_i32, %c0_i32_0 : i32, i32
  }
  func.func @transform_7(%arg0: i32) -> (i32, i32) {
    %c0_i32 = arith.constant 0 : i32
    %c0_i32_0 = arith.constant 0 : i32
    %c0_i32_1 = arith.constant 0 : i32
    return %c0_i32, %c0_i32_0 : i32, i32
  }
  func.func @transform_8(%arg0: i32) -> (i32, i32) {
    %c0_i32 = arith.constant 0 : i32
    %c0_i32_0 = arith.constant 0 : i32
    %c0_i32_1 = arith.constant 0 : i32
    return %c0_i32, %c0_i32_0 : i32, i32
  }
  func.func @transform_9(%arg0: i32) -> (i32, i32) {
    %c0_i32 = arith.constant 0 : i32
    %c0_i32_0 = arith.constant 0 : i32
    %c0_i32_1 = arith.constant 0 : i32
    return %c0_i32, %c0_i32_0 : i32, i32
  }
  func.func @transform_10(%arg0: i32) -> (i32, i32) {
    %c0_i32 = arith.constant 0 : i32
    %c0_i32_0 = arith.constant 0 : i32
    %c0_i32_1 = arith.constant 0 : i32
    return %c0_i32, %c0_i32_0 : i32, i32
  }
  func.func @transform_11(%arg0: i32) -> (i32, i32) {
    %c0_i32 = arith.constant 0 : i32
    %c0_i32_0 = arith.constant 0 : i32
    %c0_i32_1 = arith.constant 0 : i32
    return %c0_i32, %c0_i32_0 : i32, i32
  }
  func.func @transform_12(%arg0: i32) -> (i32, i32) {
    %c0_i32 = arith.constant 0 : i32
    %c0_i32_0 = arith.constant 0 : i32
    %c0_i32_1 = arith.constant 0 : i32
    return %c0_i32, %c0_i32_0 : i32, i32
  }
  func.func @transform_13(%arg0: i32) -> (i32, i32) {
    %c0_i32 = arith.constant 0 : i32
    %c0_i32_0 = arith.constant 0 : i32
    %c0_i32_1 = arith.constant 0 : i32
    return %c0_i32, %c0_i32_0 : i32, i32
  }
  func.func @transform_14(%arg0: i32) -> (i32, i32) {
    %c0_i32 = arith.constant 0 : i32
    %c0_i32_0 = arith.constant 0 : i32
    return %arg0, %c0_i32 : i32, i32
  }
  func.func @transform_15(%arg0: i32) -> (i32, i32) {
    %c0_i32 = arith.constant 0 : i32
    %c0_i32_0 = arith.constant 0 : i32
    %c0_i32_1 = arith.constant 0 : i32
    return %c0_i32, %c0_i32_0 : i32, i32
  }
}

</mosaic_0001>

<bundles_post_ra>
// kernel: gnn_layer_forward.1
= control target key start
LH: loop header
LB: loop body
LE: loop exit
PB: predicated region body
PF: predicated region fallthrough
CT: control target
= control target key end

     0   :  { %s6113_s0 = inlined_call_operand.vmem [shape: f32[1024,32], index: 0, kind: input, shape index: {}]   ;;  %s6114_s1 = inlined_call_operand.vmem [shape: bf16[1024,64], index: 1, kind: input, shape index: {}]   ;;  %s6115_s2 = inlined_call_operand.vmem [shape: bf16[48,1024], index: 2, kind: input, shape index: {}]   ;;  %s6116_s3 = inlined_call_operand.vmem [shape: f32[48,16], index: 3, kind: input, shape index: {}]   ;;  %s6117_s4 = inlined_call_operand.vmem [shape: bf16[64,32], index: 4, kind: input, shape index: {}]   ;;  %s6118_s5 = inlined_call_operand.vmem [shape: f32[1,32], index: 5, kind: input, shape index: {}]   ;;  %s6119_s6 = inlined_call_operand.vmem [shape: bf16[32,32], index: 6, kind: input, shape index: {}]   ;;  %s6120_s7 = inlined_call_operand.vmem [shape: f32[1,32], index: 7, kind: input, shape index: {}]   ;;  %s6121_s8 = inlined_call_operand.vmem [shape: f32[16,32], index: 8, kind: input, shape index: {}]   ;;  %s6122_s9 = inlined_call_operand.vmem [shape: f32[1,32], index: 9, kind: input, shape index: {}]   ;;  %s6123_s10 = inlined_call_operand.vmem [shape: f32[32,64], index: 10, kind: input, shape index: {}]   ;;  %s6124_s11 = inlined_call_operand.vmem [shape: f32[1,64], index: 11, kind: input, shape index: {}]   ;;  %s6125_s12 = inlined_call_operand.vmem [shape: f32[64,32], index: 12, kind: input, shape index: {}]   ;;  %s6126_s13 = inlined_call_operand.vmem [shape: f32[1,32], index: 13, kind: input, shape index: {}]   ;;  %s6127_s14 = inlined_call_operand.vmem [shape: f32[1024,32], index: 14, kind: output, shape index: {0}]   ;;  %s6128_s15 = inlined_call_operand.vmem [shape: f32[48,32], index: 15, kind: output, shape index: {1}]  }
   0x1   :  { %6130 = sst [smem:[#allocation6_spill]] %s6115_s2 }
   0x2   :  { %s4690_s18 = smov 0   ;;  %s4692_s19 = smov 0  }
   0x3   :  { %s4694_s20 = smov 0  }
   0x4 LB: > { %6131 = sst [smem:[#allocation4_spill]] %s4603_s19  ;;  %s4706_s21 = sadd.s32 4294967295, %s4607_s20   ;;  %s4607_s20 = sphi %s4694_s20, %s6136_s20   ;;  %s4603_s19 = sphi %s4692_s19, %s6135_s19   ;;  %s4599_s18 = sphi %s4690_s18, %s6134_s18  }
   0x5   : > { %s4709_s22 = sadd.s32 1, %s4607_s20   ;;  %s85_s24 = sadd.s32 1, %s4603_s19 }
   0x6   : > { %s82_s23 = ssub.s32 %s4607_s20, %s4709_s22  ;;  %p92_p1 = scmp.ne.s32.totalorder %s4603_s19, %s4599_s18 }
   0x7   : > { %p83_p0 = scmp.eq.s32.totalorder %s82_s23, 0  ;;  %p93_p2 = scmp.eq.s32.totalorder %s4607_s20, 0 }
   0x8   : > { %p3419_p4 = scmp.ge.s32.totalorder %s4607_s20, 2 }
   0x9   : > { %s4718_s25 = scalar_select %p83_p0, %s4603_s19, %s85_s24  }
   0xa   : > { %p94_p3 = por %p93_p2, %p92_p1  ;;  %429 = sbr.rel (%p3419_p4) target bundleno = 33 (0x21), region = 60 }
   0xb   : > { %6132 = sst [smem:[#allocation5_spill]] %s4718_s25 }
  0x11   : > { %450 = sbr.rel (!%p94_p3) target bundleno = 33 (0x21), region = 72  ;;  %s452_s26 = sand.u32 (%p94_p3), 1, %s4603_s19  }
  0x12   : > { %s3570_s27 = sshll.u32 (%p94_p3), %s4607_s20, 4  ;;  %s3964_s28 = smul.u32 (%p94_p3), 96, %s452_s26 }
  0x13   : > { %s6133_s2 = sld [smem:[#allocation6_spill]] (%p94_p3) }
  0x14   : > { %s454_s17 = scalar_lea.vmem (%p94_p3), [#allocation3], %s3964_s28 }
  0x19   : > { %s457_s16 = scalar_lea.vmem %s6133_s2, %s3570_s27 }
  0x1a   : > { %v470_v0 = vld [vmem:[%s457_s16] sm:$0xff]  ;;  %v472_v1 = vld [vmem:[%s457_s16 + $0x8] sm:$0xff] }
  0x1b   : > { %v474_v2 = vld [vmem:[%s457_s16 + $0x20] sm:$0xff]  ;;  %v476_v3 = vld [vmem:[%s457_s16 + $0x28] sm:$0xff]  ;;  %471 = vst [vmem:[%s454_s17] sm:$0xff] %v470_v0  ;;  %473 = vst [vmem:[%s454_s17 + $0x8] sm:$0xff] %v472_v1 }
  0x1c   : > { %v478_v4 = vld [vmem:[%s457_s16 + $0x40] sm:$0xff]  ;;  %v480_v5 = vld [vmem:[%s457_s16 + $0x48] sm:$0xff]  ;;  %475 = vst [vmem:[%s454_s17 + $0x10] sm:$0xff] %v474_v2  ;;  %477 = vst [vmem:[%s454_s17 + $0x18] sm:$0xff] %v476_v3 }
  0x1d   : > { %479 = vst [vmem:[%s454_s17 + $0x20] sm:$0xff] %v478_v4  ;;  %481 = vst [vmem:[%s454_s17 + $0x28] sm:$0xff] %v480_v5  ;;  %v482_v6 = vld [vmem:[%s457_s16 + $0x60] sm:$0xff]  ;;  %v484_v7 = vld [vmem:[%s457_s16 + $0x68] sm:$0xff] }
  0x1e   : > { %v486_v8 = vld [vmem:[%s457_s16 + $0x80] sm:$0xff]  ;;  %483 = vst [vmem:[%s454_s17 + $0x30] sm:$0xff] %v482_v6  ;;  %485 = vst [vmem:[%s454_s17 + $0x38] sm:$0xff] %v484_v7  ;;  %v488_v9 = vld [vmem:[%s457_s16 + $0x88] sm:$0xff] }
  0x1f   : > { %487 = vst [vmem:[%s454_s17 + $0x40] sm:$0xff] %v486_v8  ;;  %v490_v10 = vld [vmem:[%s457_s16 + $0xa0] sm:$0xff]  ;;  %v492_v11 = vld [vmem:[%s457_s16 + $0xa8] sm:$0xff]  ;;  %489 = vst [vmem:[%s454_s17 + $0x48] sm:$0xff] %v488_v9 }
  0x20   : > { %491 = vst [vmem:[%s454_s17 + $0x50] sm:$0xff] %v490_v10  ;;  %493 = vst [vmem:[%s454_s17 + $0x58] sm:$0xff] %v492_v11 }
  0x21 PF: > { %p3422_p5 = scmp.ge.s32.totalorder %s4607_s20, 1  ;;  %p498_p6 = scmp.lt.s32.totalorder %s4607_s20, 3 }
  0x23   : > { %p499_p7 = pnand %p3422_p5, %p498_p6 }
  0x24   : > { %s505_s23 = sand.u32 (!%p499_p7), 1, %s4599_s18   ;;  %s3423_s24 = sshll.u32 (!%p499_p7), %s4706_s21, 6 }
  0x25   : > { %502 = sbr.rel (%p499_p7) target bundleno = 1547 (0x60b), region = 95  ;;  %p563_p8 = scmp.lt.s32.totalorder (!%p499_p7), %s3423_s24, 127 }
  0x26   : > { %s3965_s26 = smul.u32 (!%p499_p7), 96, %s505_s23  ;;  %p3429_p9 = scmp.ne.s32.totalorder (!%p499_p7), %s4706_s21, 0 }
  0x28   : > { %s4745_s23 = scalar_lea.vmem (!%p499_p7), [#allocation3], %s3965_s26 }
  0x2c   : > { %s6138_s24 = smov (!%p563_p8, %s3423_s24), 127  ;;  %585 = sbr.rel (%p3429_p9) target bundleno = 51 (0x33), region = 103 }
  0x2d   : > { %s3424_s27 = sshll.u32 %s6138_s24, 3  ;;  %s3426_s28 = sshll.u32 %s6138_s24, 2  ;;  %vm586_vm0 = vcmask (!%p3429_p9), 261120   ;;  %v4609_v12 = vmov (!%p3429_p9), 0.0  }
  0x2e   : > { %s4733_s16 = scalar_lea.vmem %s6113_s0, %s3424_s27  ;;  %s4738_s20 = scalar_lea.vmem %s6114_s1, %s3426_s28  ;;  %587 = vst.msk [vmem:[#allocation2] sm:$0xff] (!%p3429_p9), %vm586_vm0, %v4609_v12  ;;  %588 = vst.msk [vmem:[#allocation2 + $0x8] sm:$0xff] (!%p3429_p9), %vm586_vm0, %v4609_v12 }
  0x2f   : > { %s4743_s18 = scalar_lea.vmem %s6127_s14, %s3424_s27  ;;  %589 = vst.msk [vmem:[#allocation2 + $0x10] sm:$0xff] (!%p3429_p9), %vm586_vm0, %v4609_v12  ;;  %590 = vst.msk [vmem:[#allocation2 + $0x18] sm:$0xff] (!%p3429_p9), %vm586_vm0, %v4609_v12 }
  0x30   : > { %591 = vst.msk [vmem:[#allocation2 + $0x20] sm:$0xff] (!%p3429_p9), %vm586_vm0, %v4609_v12  ;;  %592 = vst.msk [vmem:[#allocation2 + $0x28] sm:$0xff] (!%p3429_p9), %vm586_vm0, %v4609_v12 }
  0x33 PF: > { %v3991_v13 = vld [vmem:[%s6117_s4] sm:$0xff]   ;;  %v3992_v14 = vld [vmem:[%s6117_s4 + $0x8] sm:$0xff]   ;;  %v3993_v15 = vld [vmem:[%s6117_s4 + $0x10] sm:$0xff]   ;;  %vm913_vm1 = vcmask 523264   ;;  %vm1809_vm2 = vcmask 261120   ;;  %p3546_p10 = scmp.ne.s32.totalorder %s4706_s21, 1 }
  0x34   : > { %3741 = vmatprep.subr.bf16.mxu0 %v3991_v13  ;;  %v3995_v16 = vld [vmem:[%s4738_s20] sm:$0xff]   ;;  %v3994_v17 = vld [vmem:[%s6117_s4 + $0x18] sm:$0xff]   ;;  %v3996_v18 = vld [vmem:[%s4738_s20 + $0x8] sm:$0xff]   ;;  %vm2898_vm3 = vcmask (!%p3546_p10), 130048  }
  0x35   : > { %3742 = vmatpush3.bf16.msra.mxu0 %v3991_v13  ;;  %3749 = vmatprep.mubr.msk.bf16.mxu0 %vm913_vm1, %v3995_v16  ;;  %v3997_v19 = vld [vmem:[%s4738_s20 + $0x10] sm:$0xff]   ;;  %v3998_v20 = vld [vmem:[%s4738_s20 + $0x18] sm:$0xff]   ;;  %v3999_v21 = vld [vmem:[%s4738_s20 + $0x20] sm:$0xff]  }
  0x36   : > { %3743 = vmatprep.subr.bf16.mxu0 %v3992_v14  ;;  %v4000_v22 = vld [vmem:[%s4738_s20 + $0x28] sm:$0xff]   ;;  %v4001_v23 = vld [vmem:[%s4738_s20 + $0x30] sm:$0xff]   ;;  %v4002_v24 = vld [vmem:[%s4738_s20 + $0x38] sm:$0xff]  }
  0x37   : > { %v4003_v25 = vld [vmem:[%s4738_s20 + $0x40] sm:$0xff]   ;;  %v4004_v26 = vld [vmem:[%s4738_s20 + $0x48] sm:$0xff]   ;;  %v4005_v27 = vld [vmem:[%s4738_s20 + $0x50] sm:$0xff]  }
  0x38   : > { %v4006_v28 = vld [vmem:[%s4738_s20 + $0x58] sm:$0xff]   ;;  %v4007_v29 = vld [vmem:[%s4738_s20 + $0x60] sm:$0xff]   ;;  %v4008_v30 = vld [vmem:[%s4738_s20 + $0x68] sm:$0xff]  }
  0x39   : > { %3744 = vmatpush3.bf16.msra.mxu0 %v3992_v14  ;;  %v4009_v31 = vld [vmem:[%s4738_s20 + $0x70] sm:$0xff]   ;;  %v4010_v32 = vld [vmem:[%s4738_s20 + $0x78] sm:$0xff]   ;;  %v4011_v33 = vld [vmem:[%s4738_s20 + $0x80] sm:$0xff]  }
  0x3a   : > { %3745 = vmatprep.subr.bf16.mxu0 %v3993_v15  ;;  %v4012_v34 = vld [vmem:[%s4738_s20 + $0x88] sm:$0xff]   ;;  %v4013_v35 = vld [vmem:[%s4738_s20 + $0x90] sm:$0xff]   ;;  %v4014_v36 = vld [vmem:[%s4738_s20 + $0x98] sm:$0xff]  }
  0x3b   : > { %v4015_v37 = vld [vmem:[%s4738_s20 + $0xa0] sm:$0xff]   ;;  %v4016_v38 = vld [vmem:[%s4738_s20 + $0xa8] sm:$0xff]   ;;  %v4017_v39 = vld [vmem:[%s4738_s20 + $0xb0] sm:$0xff]  }
  0x3c   : > { %v4018_v40 = vld [vmem:[%s4738_s20 + $0xb8] sm:$0xff]   ;;  %v4019_v41 = vld [vmem:[%s4738_s20 + $0xc0] sm:$0xff]   ;;  %v4020_v42 = vld [vmem:[%s4738_s20 + $0xc8] sm:$0xff]  }
  0x3d   : > { %3746 = vmatpush3.bf16.msra.mxu0 %v3993_v15  ;;  %v4021_v43 = vld [vmem:[%s4738_s20 + $0xd0] sm:$0xff]   ;;  %v4022_v44 = vld [vmem:[%s4738_s20 + $0xd8] sm:$0xff]   ;;  %v4023_v45 = vld [vmem:[%s4738_s20 + $0xe0] sm:$0xff]  }
  0x3e   : > { %3747 = vmatprep.subr.bf16.mxu0 %v3994_v17  ;;  %v4024_v46 = vld [vmem:[%s4738_s20 + $0xe8] sm:$0xff]   ;;  %v4025_v47 = vld [vmem:[%s4738_s20 + $0xf0] sm:$0xff]   ;;  %v4026_v48 = vld [vmem:[%s4738_s20 + $0xf8] sm:$0xff]  }
  0x3f   : > { %v4027_v49 = vld [vmem:[%s6119_s6] sm:$0xff]   ;;  %v4028_v50 = vld [vmem:[%s6119_s6 + $0x8] sm:$0xff]   ;;  %v667_v51 = vld [vmem:[%s4733_s16 + $0x10] sm:$0xff] }
  0x40   : > { %3813 = vmatprep.subr.bf16.mxu1 %v4027_v49  ;;  %v665_v52 = vld [vmem:[%s4733_s16] sm:$0xff]  ;;  %v668_v55 = vld [vmem:[%s4733_s16 + $0x18] sm:$0xff]  ;;  %v666_v58 = vld [vmem:[%s4733_s16 + $0x8] sm:$0xff] }
  0x41   : > { %3748 = vmatpush3.bf16.msra.mxu0 %v3994_v17  ;;  %3814 = vmatpush3.bf16.msra.mxu1 %v4027_v49  ;;  %v4835_v54 = vld [vmem:[%s6118_s5] ss:$0 sm:$0xff]  ;;  %v671_v6 = vld [vmem:[%s4733_s16 + $0x30] sm:$0xff]  ;;  %v672_v13 = vld [vmem:[%s4733_s16 + $0x38] sm:$0xff] }
  0x42   : > { %3815 = vmatprep.subr.bf16.mxu1 %v4028_v50  ;;  %v669_v9 = vld [vmem:[%s4733_s16 + $0x20] sm:$0xff]  ;;  %v670_v17 = vld [vmem:[%s4733_s16 + $0x28] sm:$0xff] }
  0x44   : > { %3750 = vmatmul.mubr.msk.bf16.vlgmr.msra.gmra.mrb[0].mxu0 %vm913_vm1, %v3996_v18 }
  0x45   : > { %3753 = vmatprep.mubr.msk.bf16.mxu0 %vm913_vm1, %v3997_v19  ;;  %3816 = vmatpush3.bf16.msra.mxu1 %v4028_v50 }
  0x4c   : > { %3754 = vmatmul.mubr.msk.bf16.gmra.mrb[4].mxu0 %vm913_vm1, %v3998_v20 }
  0x4d   : > { %3757 = vmatprep.mubr.msk.bf16.mxu0 %vm913_vm1, %v3999_v21 }
  0x54   : > { %3758 = vmatmul.mubr.msk.bf16.gmra.mrb[8].mxu0 %vm913_vm1, %v4000_v22 }
  0x55   : > { %3761 = vmatprep.mubr.msk.bf16.mxu0 %vm913_vm1, %v4001_v23 }
  0x5c   : > { %3762 = vmatmul.mubr.msk.bf16.gmra.mrb[12].mxu0 %vm913_vm1, %v4002_v24 }
  0x5d   : > { %3765 = vmatprep.mubr.msk.bf16.mxu0 %vm913_vm1, %v4003_v25 }
  0x64   : > { %3766 = vmatmul.mubr.msk.bf16.gmra.mrb[16].mxu0 %vm913_vm1, %v4004_v26 }
  0x65   : > { %3769 = vmatprep.mubr.msk.bf16.mxu0 %vm913_vm1, %v4005_v27 }
  0x6c   : > { %3770 = vmatmul.mubr.msk.bf16.gmra.mrb[20].mxu0 %vm913_vm1, %v4006_v28 }
  0x6d   : > { %3773 = vmatprep.mubr.msk.bf16.mxu0 %vm913_vm1, %v4007_v29 }
  0x74   : > { %3774 = vmatmul.mubr.msk.bf16.gmra.mrb[24].mxu0 %vm913_vm1, %v4008_v30  ;;  %v675_v30 = vld [vmem:[%s4733_s16 + $0x50] sm:$0xff] }
  0x75   : > { %3777 = vmatprep.mubr.msk.bf16.mxu0 %vm913_vm1, %v4009_v31 }
  0x7c   : > { %3778 = vmatmul.mubr.msk.bf16.gmra.mrb[28].mxu0 %vm913_vm1, %v4010_v32 }
  0x7d   : > { %3781 = vmatprep.mubr.msk.bf16.mxu0 %vm913_vm1, %v4011_v33  ;;  %v673_v33 = vld [vmem:[%s4733_s16 + $0x40] sm:$0xff] }
  0x84   : > { %3782 = vmatmul.mubr.msk.bf16.gmra.mrb[32].mxu0 %vm913_vm1, %v4012_v34 }
  0x85   : > { %3785 = vmatprep.mubr.msk.bf16.mxu0 %vm913_vm1, %v4013_v35 }
  0x8c   : > { %3786 = vmatmul.mubr.msk.bf16.gmra.mrb[36].mxu0 %vm913_vm1, %v4014_v36 }
  0x8d   : > { %3789 = vmatprep.mubr.msk.bf16.mxu0 %vm913_vm1, %v4015_v37  ;;  %v676_v37 = vld [vmem:[%s4733_s16 + $0x58] sm:$0xff] }
  0x94   : > { %3790 = vmatmul.mubr.msk.bf16.gmra.mrb[40].mxu0 %vm913_vm1, %v4016_v38 }
  0x95   : > { %3793 = vmatprep.mubr.msk.bf16.mxu0 %vm913_vm1, %v4017_v39 }
  0x9c   : > { %3794 = vmatmul.mubr.msk.bf16.gmra.mrb[44].mxu0 %vm913_vm1, %v4018_v40 }
  0x9d   : > { %3797 = vmatprep.mubr.msk.bf16.mxu0 %vm913_vm1, %v4019_v41  ;;  %v674_v41 = vld [vmem:[%s4733_s16 + $0x48] sm:$0xff] }
  0xa4   : > { %3798 = vmatmul.mubr.msk.bf16.gmra.mrb[48].mxu0 %vm913_vm1, %v4020_v42 }
  0xa5   : > { %3801 = vmatprep.mubr.msk.bf16.mxu0 %vm913_vm1, %v4021_v43 }
  0xac   : > { %3802 = vmatmul.mubr.msk.bf16.gmra.mrb[52].mxu0 %vm913_vm1, %v4022_v44 }
  0xad   : > { %3805 = vmatprep.mubr.msk.bf16.mxu0 %vm913_vm1, %v4023_v45 }
  0xb4   : > { %3806 = vmatmul.mubr.msk.bf16.gmra.mrb[56].mxu0 %vm913_vm1, %v4024_v46 }
  0xb5   : > { %3809 = vmatprep.mubr.msk.bf16.mxu0 %vm913_vm1, %v4025_v47 }
  0xbc   : > { %3810 = vmatmul.mubr.msk.bf16.gmra.mrb[60].mxu0 %vm913_vm1, %v4026_v48 }
 0x117   : > { %v3751_v53 = vpop.f32.mrb[0].mxu0 }
 0x118   : > { %v1053_v56 = vadd.f32 %v3751_v53, %v667_v51  ;;  %v1044_v57 = vpop.f32.mrb[1].mxu0 }
 0x119   : > { %v1045_v59 = vadd.f32 %v1044_v57, %v665_v52  ;;  %v3752_v60 = vpop.f32.mrb[2].mxu0 }
 0x11a   : > { %v4840_v61 = vadd.f32 %v4835_v54, %v1053_v56  ;;  %v1056_v62 = vadd.f32 %v3752_v60, %v668_v55  ;;  %v1047_v63 = vpop.f32.mrb[3].mxu0 }
 0x11b   : > { %v4843_v0 = vadd.f32 %v4835_v54, %v1045_v59  ;;  %v1048_v1 = vadd.f32 %v1047_v63, %v666_v58  ;;  %v679_v63 = vld [vmem:[%s4733_s16 + $0x70] sm:$0xff] }
 0x11c   : > { %v1372_v2 = vsub.f32 0.0, %v4840_v61  ;;  %v4847_v3 = vadd.f32 %v4835_v54, %v1056_v62 }
 0x11d   : > { %v1370_v4 = vsub.f32 0.0, %v4843_v0  ;;  %v4851_v5 = vadd.f32 %v4835_v54, %v1048_v1 }
 0x11e   : > { %v1438_v7 = vmul.f32 1.442695, %v1372_v2  ;;  %v1373_v8 = vsub.f32 0.0, %v4847_v3 }
 0x11f   : > { %v1434_v10 = vmul.f32 1.442695, %v1370_v4  ;;  %v1371_v11 = vsub.f32 0.0, %v4851_v5  ;;  %v3755_v12 = vpop.f32.mrb[4].mxu0 }
 0x120   : > { %4047 = vpow2.f32 %v1438_v7  ;;  %v1440_v14 = vmul.f32 1.442695, %v1373_v8  ;;  %v1069_v15 = vadd.f32 %v3755_v12, %v671_v6  ;;  %v1060_v16 = vpop.f32.mrb[5].mxu0  ;;  %v677_v6 = vld [vmem:[%s4733_s16 + $0x60] sm:$0xff] }
 0x121   : > { %4049 = vpow2.f32 %v1434_v10  ;;  %v1436_v18 = vmul.f32 1.442695, %v1371_v11  ;;  %v1061_v19 = vadd.f32 %v1060_v16, %v669_v9  ;;  %v3756_v20 = vpop.f32.mrb[6].mxu0  ;;  %v680_v10 = vld [vmem:[%s4733_s16 + $0x78] sm:$0xff] }
 0x122   : > { %4051 = vpow2.f32 %v1440_v14  ;;  %v4860_v21 = vadd.f32 %v4835_v54, %v1069_v15  ;;  %v1072_v22 = vadd.f32 %v3756_v20, %v672_v13  ;;  %v1063_v23 = vpop.f32.mrb[7].mxu0  ;;  %v678_v14 = vld [vmem:[%s4733_s16 + $0x68] sm:$0xff] }
 0x123   : > { %4053 = vpow2.f32 %v1436_v18  ;;  %v4863_v24 = vadd.f32 %v4835_v54, %v1061_v19  ;;  %v1064_v25 = vadd.f32 %v1063_v23, %v670_v17 }
 0x124   : > { %v1376_v26 = vsub.f32 0.0, %v4860_v21  ;;  %v4867_v27 = vadd.f32 %v4835_v54, %v1072_v22 }
 0x125   : > { %v1374_v28 = vsub.f32 0.0, %v4863_v24  ;;  %v4871_v29 = vadd.f32 %v4835_v54, %v1064_v25 }
 0x126   : > { %v1446_v31 = vmul.f32 1.442695, %v1376_v26  ;;  %v1377_v32 = vsub.f32 0.0, %v4867_v27 }
 0x127   : > { %v1442_v34 = vmul.f32 1.442695, %v1374_v28  ;;  %v1375_v35 = vsub.f32 0.0, %v4871_v29  ;;  %v3759_v36 = vpop.f32.mrb[8].mxu0 }
 0x128   : > { %4055 = vpow2.f32 %v1446_v31  ;;  %v1448_v38 = vmul.f32 1.442695, %v1377_v32  ;;  %v1085_v39 = vadd.f32 %v3759_v36, %v675_v30  ;;  %v1076_v40 = vpop.f32.mrb[9].mxu0 }
 0x129   : > { %4057 = vpow2.f32 %v1442_v34  ;;  %v1444_v42 = vmul.f32 1.442695, %v1375_v35  ;;  %v1077_v43 = vadd.f32 %v1076_v40, %v673_v33  ;;  %v3760_v44 = vpop.f32.mrb[10].mxu0 }
 0x12a   : > { %v4048_v45 = vpop.eup %4047  ;;  %4059 = vpow2.f32 %v1448_v38  ;;  %v4880_v46 = vadd.f32 %v4835_v54, %v1085_v39  ;;  %v1088_v47 = vadd.f32 %v3760_v44, %v676_v37  ;;  %v1079_v48 = vpop.f32.mrb[11].mxu0  ;;  %v683_v38 = vld [vmem:[%s4733_s16 + $0x90] sm:$0xff] }
 0x12b   : > { %v4050_v49 = vpop.eup %4049  ;;  %v1564_v50 = vadd.f32 1.0, %v4048_v45  ;;  %4061 = vpow2.f32 %v1444_v42  ;;  %v4883_v51 = vadd.f32 %v4835_v54, %v1077_v43  ;;  %v1080_v52 = vadd.f32 %v1079_v48, %v674_v41  ;;  %v681_v42 = vld [vmem:[%s4733_s16 + $0x80] sm:$0xff]  ;;  %v684_v48 = vld [vmem:[%s4733_s16 + $0x98] sm:$0xff] }
 0x12c   : > { %v4052_v53 = vpop.eup %4051  ;;  %v1562_v55 = vadd.f32 1.0, %v4050_v49  ;;  %v1380_v56 = vsub.f32 0.0, %v4880_v46  ;;  %v4887_v57 = vadd.f32 %v4835_v54, %v1088_v47 }
 0x12d   : > { %v4054_v58 = vpop.eup %4053  ;;  %4063 = vrcp.f32 %v1564_v50  ;;  %v1565_v59 = vadd.f32 1.0, %v4052_v53  ;;  %v1378_v60 = vsub.f32 0.0, %v4883_v51  ;;  %v4891_v62 = vadd.f32 %v4835_v54, %v1080_v52 }
 0x12e   : > { %4065 = vrcp.f32 %v1562_v55  ;;  %v1563_v1 = vadd.f32 1.0, %v4054_v58  ;;  %v1454_v2 = vmul.f32 1.442695, %v1380_v56  ;;  %v1381_v4 = vsub.f32 0.0, %v4887_v57  ;;  %v682_v56 = vld [vmem:[%s4733_s16 + $0x88] sm:$0xff] }
 0x12f   : > { %4067 = vrcp.f32 %v1565_v59  ;;  %v1450_v7 = vmul.f32 1.442695, %v1378_v60  ;;  %v1379_v8 = vsub.f32 0.0, %v4891_v62  ;;  %v3763_v9 = vpop.f32.mrb[12].mxu0 }
 0x130   : > { %4069 = vrcp.f32 %v1563_v1  ;;  %v1456_v11 = vmul.f32 1.442695, %v1381_v4  ;;  %v1101_v12 = vadd.f32 %v3763_v9, %v679_v63  ;;  %v1092_v13 = vpop.f32.mrb[13].mxu0 }
 0x131   : > { %4071 = vpow2.f32 %v1454_v2  ;;  %v1452_v15 = vmul.f32 1.442695, %v1379_v8  ;;  %v1093_v16 = vadd.f32 %v1092_v13, %v677_v6  ;;  %v3764_v17 = vpop.f32.mrb[14].mxu0 }
 0x132   : > { %v4056_v18 = vpop.eup %4055  ;;  %4073 = vpow2.f32 %v1450_v7  ;;  %v4900_v19 = vadd.f32 %v4835_v54, %v1101_v12  ;;  %v1104_v20 = vadd.f32 %v3764_v17, %v680_v10  ;;  %v1095_v22 = vpop.f32.mrb[15].mxu0 }
 0x133   : > { %v4058_v23 = vpop.eup %4057  ;;  %v1568_v25 = vadd.f32 1.0, %v4056_v18  ;;  %4075 = vpow2.f32 %v1456_v11  ;;  %v4903_v26 = vadd.f32 %v4835_v54, %v1093_v16  ;;  %v1096_v28 = vadd.f32 %v1095_v22, %v678_v14 }
 0x134   : > { %v4060_v30 = vpop.eup %4059  ;;  %v1566_v31 = vadd.f32 1.0, %v4058_v23  ;;  %4077 = vpow2.f32 %v1452_v15  ;;  %v1384_v32 = vsub.f32 0.0, %v4900_v19  ;;  %v4907_v33 = vadd.f32 %v4835_v54, %v1104_v20  ;;  %v687_v20 = vld [vmem:[%s4733_s16 + $0xb0] sm:$0xff] }
 0x135   : > { %v4062_v34 = vpop.eup %4061  ;;  %4079 = vrcp.f32 %v1568_v25  ;;  %v1569_v35 = vadd.f32 1.0, %v4060_v30  ;;  %v1382_v36 = vsub.f32 0.0, %v4903_v26  ;;  %v4911_v37 = vadd.f32 %v4835_v54, %v1096_v28  ;;  %v685_v28 = vld [vmem:[%s4733_s16 + $0xa0] sm:$0xff] }
 0x136   : > { %4081 = vrcp.f32 %v1566_v31  ;;  %v1567_v39 = vadd.f32 1.0, %v4062_v34  ;;  %v1462_v40 = vmul.f32 1.442695, %v1384_v32  ;;  %v1385_v41 = vsub.f32 0.0, %v4907_v33 }
 0x137   : > { %v4064_v43 = vpop.eup %4063  ;;  %4083 = vrcp.f32 %v1569_v35  ;;  %v1458_v44 = vmul.f32 1.442695, %v1382_v36  ;;  %v1383_v45 = vsub.f32 0.0, %v4911_v37  ;;  %v3767_v47 = vpop.f32.mrb[16].mxu0 }
 0x138   : > { %v4066_v49 = vpop.eup %4065  ;;  %v1692_v50 = vmul.f32 %v4064_v43, %v4840_v61  ;;  %4085 = vrcp.f32 %v1567_v39  ;;  %v1464_v52 = vmul.f32 1.442695, %v1385_v41  ;;  %v1117_v53 = vadd.f32 %v3767_v47, %v683_v38  ;;  %v1108_v55 = vpop.f32.mrb[17].mxu0 }
 0x139   : > { %v4068_v58 = vpop.eup %4067  ;;  %4087 = vpow2.f32 %v1462_v40  ;;  %v1460_v59 = vmul.f32 1.442695, %v1383_v45  ;;  %v1109_v60 = vadd.f32 %v1108_v55, %v681_v42  ;;  %v3768_v63 = vpop.f32.mrb[18].mxu0  ;;  %v1690_v1 = vmul.f32 %v4066_v49, %v4843_v0  ;;  %v688_v42 = vld [vmem:[%s4733_s16 + $0xb8] sm:$0xff] }
 0x13a   : > { %v4070_v2 = vpop.eup %4069  ;;  %v1693_v4 = vmul.f32 %v4068_v58, %v4847_v3  ;;  %4089 = vpow2.f32 %v1458_v44  ;;  %v4923_v6 = vadd.f32 %v4835_v54, %v1117_v53  ;;  %v1120_v61 = vadd.f32 %v3768_v63, %v684_v48  ;;  %v1111_v7 = vpop.f32.mrb[19].mxu0 }
 0x13b   : > { %v4072_v8 = vpop.eup %4071  ;;  %4091 = vpow2.f32 %v1464_v52  ;;  %v4926_v9 = vadd.f32 %v4835_v54, %v1109_v60  ;;  %v1112_v10 = vadd.f32 %v1111_v7, %v682_v56  ;;  %v1691_v11 = vmul.f32 %v4070_v2, %v4851_v5 }
 0x13c   : > { %v4074_v12 = vpop.eup %4073  ;;  %v1755_v0 = vpack.c.bf16 %v1693_v4, %v1692_v50  ;;  %v1572_v13 = vadd.f32 1.0, %v4072_v8  ;;  %4093 = vpow2.f32 %v1460_v59  ;;  %v1388_v3 = vsub.f32 0.0, %v4923_v6 }
 0x13d   : > { %v4076_v14 = vpop.eup %4075  ;;  %v1570_v15 = vadd.f32 1.0, %v4074_v12  ;;  %v1386_v16 = vsub.f32 0.0, %v4926_v9  ;;  %v4932_v17 = vadd.f32 %v4835_v54, %v1120_v61  ;;  %v4935_v18 = vadd.f32 %v4835_v54, %v1112_v10 }
 0x13e   : > { %v4078_v22 = vpop.eup %4077  ;;  %4095 = vrcp.f32 %v1572_v13  ;;  %v1573_v5 = vadd.f32 1.0, %v4076_v14  ;;  %v1470_v23 = vmul.f32 1.442695, %v1388_v3  ;;  %v1754_v25 = vpack.c.bf16 %v1691_v11, %v1690_v1  ;;  %v686_v1 = vld [vmem:[%s4733_s16 + $0xa8] sm:$0xff] }
 0x13f   : > { %v4080_v30 = vpop.eup %4079  ;;  %4097 = vrcp.f32 %v1570_v15  ;;  %v1571_v31 = vadd.f32 1.0, %v4078_v22  ;;  %v1466_v32 = vmul.f32 1.442695, %v1386_v16  ;;  %v1389_v34 = vsub.f32 0.0, %v4932_v17  ;;  %v3771_v35 = vpop.f32.mrb[20].mxu0 }
 0x140   : > { %v4082_v36 = vpop.eup %4081  ;;  %v1696_v38 = vmul.f32 %v4080_v30, %v4860_v21  ;;  %4099 = vrcp.f32 %v1573_v5  ;;  %v1387_v39 = vsub.f32 0.0, %v4935_v18  ;;  %v1133_v40 = vadd.f32 %v3771_v35, %v687_v20  ;;  %3817 = vmatprep.mubr.msk.bf16.mxu1 %vm1809_vm2, %v1754_v25  ;;  %v1124_v41 = vpop.f32.mrb[21].mxu0 }
 0x141   : > { %v4084_v43 = vpop.eup %4083  ;;  %v1694_v44 = vmul.f32 %v4082_v36, %v4863_v24  ;;  %4101 = vrcp.f32 %v1571_v31  ;;  %v1472_v45 = vmul.f32 1.442695, %v1389_v34  ;;  %v1125_v47 = vadd.f32 %v1124_v41, %v685_v28  ;;  %3818 = vmatmul.mubr.msk.bf16.vlgmr.msra.gmra.mrb[0].mxu1 %vm1809_vm2, %v1755_v0  ;;  %v3772_v48 = vpop.f32.mrb[22].mxu0  ;;  %v689_v0 = vld [vmem:[%s4733_s16 + $0xc0] sm:$0xff]  ;;  %v692_v31 = vld [vmem:[%s4733_s16 + $0xd8] sm:$0xff] }
 0x142   : > { %v4086_v49 = vpop.eup %4085  ;;  %v1697_v21 = vmul.f32 %v4084_v43, %v4867_v27  ;;  %4103 = vpow2.f32 %v1470_v23  ;;  %v1468_v50 = vmul.f32 1.442695, %v1387_v39  ;;  %v4948_v52 = vadd.f32 %v4835_v54, %v1133_v40  ;;  %v1127_v53 = vpop.f32.mrb[23].mxu0 }
 0x143   : > { %v4088_v55 = vpop.eup %4087  ;;  %v1695_v24 = vmul.f32 %v4086_v49, %v4871_v29  ;;  %4105 = vpow2.f32 %v1466_v32  ;;  %v4952_v56 = vadd.f32 %v4835_v54, %v1125_v47  ;;  %v1136_v58 = vadd.f32 %v3772_v48, %v688_v42  ;;  %v691_v29 = vld [vmem:[%s4733_s16 + $0xd0] sm:$0xff]  ;;  %v690_v47 = vld [vmem:[%s4733_s16 + $0xc8] sm:$0xff] }
 0x144   : > { %v4090_v59 = vpop.eup %4089  ;;  %v1757_v60 = vpack.c.bf16 %v1697_v21, %v1696_v38  ;;  %v1576_v63 = vadd.f32 1.0, %v4088_v55  ;;  %4107 = vpow2.f32 %v1472_v45  ;;  %v1392_v27 = vsub.f32 0.0, %v4948_v52 }
 0x145   : > { %v4092_v2 = vpop.eup %4091  ;;  %v1756_v4 = vpack.c.bf16 %v1695_v24, %v1694_v44  ;;  %v1574_v61 = vadd.f32 1.0, %v4090_v59  ;;  %4109 = vpow2.f32 %v1468_v50  ;;  %v1390_v7 = vsub.f32 0.0, %v4952_v56 }
 0x146   : > { %v4094_v8 = vpop.eup %4093  ;;  %4111 = vrcp.f32 %v1576_v63  ;;  %v1577_v10 = vadd.f32 1.0, %v4092_v2  ;;  %v1478_v11 = vmul.f32 1.442695, %v1392_v27  ;;  %v4959_v12 = vadd.f32 %v4835_v54, %v1136_v58 }
 0x147   : > { %4113 = vrcp.f32 %v1574_v61  ;;  %v1575_v13 = vadd.f32 1.0, %v4094_v8  ;;  %v1474_v3 = vmul.f32 1.442695, %v1390_v7  ;;  %v1128_v14 = vadd.f32 %v1127_v53, %v686_v1  ;;  %v3775_v15 = vpop.f32.mrb[24].mxu0  ;;  %3821 = vmatprep.mubr.msk.bf16.mxu1 %vm1809_vm2, %v1756_v4  ;;  %v695_v53 = vld [vmem:[%s4733_s16 + $0xf0] sm:$0xff] }
 0x148   : > { %v4096_v16 = vpop.eup %4095  ;;  %4115 = vrcp.f32 %v1577_v10  ;;  %v1393_v20 = vsub.f32 0.0, %v4959_v12  ;;  %v1149_v22 = vadd.f32 %v3775_v15, %v691_v29  ;;  %v1140_v5 = vpop.f32.mrb[25].mxu0 }
 0x149   : > { %v4098_v23 = vpop.eup %4097  ;;  %v1700_v25 = vmul.f32 %v4096_v16, %v4880_v46  ;;  %4117 = vrcp.f32 %v1575_v13  ;;  %v4966_v28 = vadd.f32 %v4835_v54, %v1128_v14  ;;  %v1141_v30 = vadd.f32 %v1140_v5, %v689_v0  ;;  %3822 = vmatmul.mubr.msk.bf16.gmra.mrb[4].mxu1 %vm1809_vm2, %v1757_v60  ;;  %v3776_v32 = vpop.f32.mrb[26].mxu0  ;;  %v696_v14 = vld [vmem:[%s4733_s16 + $0xf8] sm:$0xff] }
 0x14a   : > { %v4100_v34 = vpop.eup %4099  ;;  %v1698_v35 = vmul.f32 %v4098_v23, %v4883_v51  ;;  %4119 = vpow2.f32 %v1478_v11  ;;  %v1480_v36 = vmul.f32 1.442695, %v1393_v20  ;;  %v4972_v38 = vadd.f32 %v4835_v54, %v1149_v22  ;;  %v1143_v39 = vpop.f32.mrb[27].mxu0 }
 0x14b   : > { %v4102_v46 = vpop.eup %4101  ;;  %v1701_v40 = vmul.f32 %v4100_v34, %v4887_v57  ;;  %4121 = vpow2.f32 %v1474_v3  ;;  %v1391_v41 = vsub.f32 0.0, %v4966_v28  ;;  %v4977_v42 = vadd.f32 %v4835_v54, %v1141_v30 }
 0x14c   : > { %v4104_v43 = vpop.eup %4103  ;;  %v1699_v44 = vmul.f32 %v4102_v46, %v4891_v62  ;;  %4123 = vpow2.f32 %v1480_v36  ;;  %v1396_v51 = vsub.f32 0.0, %v4972_v38  ;;  %v1152_v45 = vadd.f32 %v3776_v32, %v692_v31  ;;  %v693_v62 = vld [vmem:[%s4733_s16 + $0xe0] sm:$0xff] }
 0x14d   : > { %v4106_v48 = vpop.eup %4105  ;;  %v1759_v49 = vpack.c.bf16 %v1701_v40, %v1700_v25  ;;  %v1580_v21 = vadd.f32 1.0, %v4104_v43  ;;  %v1476_v50 = vmul.f32 1.442695, %v1391_v41  ;;  %v1394_v57 = vsub.f32 0.0, %v4977_v42  ;;  %v699_v41 = vld [vmem:[%s4733_s16 + $0x110] sm:$0xff] }
 0x14e   : > { %v4108_v55 = vpop.eup %4107  ;;  %v1758_v24 = vpack.c.bf16 %v1699_v44, %v1698_v35  ;;  %v1578_v58 = vadd.f32 1.0, %v4106_v48  ;;  %v1486_v59 = vmul.f32 1.442695, %v1396_v51  ;;  %v4985_v60 = vadd.f32 %v4835_v54, %v1152_v45 }
 0x14f   : > { %v4110_v63 = vpop.eup %4109  ;;  %4125 = vrcp.f32 %v1580_v21  ;;  %v1581_v27 = vadd.f32 1.0, %v4108_v55  ;;  %v1482_v1 = vmul.f32 1.442695, %v1394_v57  ;;  %v1144_v2 = vadd.f32 %v1143_v39, %v690_v47  ;;  %v3779_v4 = vpop.f32.mrb[28].mxu0  ;;  %v697_v47 = vld [vmem:[%s4733_s16 + $0x100] sm:$0xff] }
 0x150   : > { %v4112_v61 = vpop.eup %4111  ;;  %4127 = vrcp.f32 %v1578_v58  ;;  %v1579_v7 = vadd.f32 1.0, %v4110_v63  ;;  %v1397_v29 = vsub.f32 0.0, %v4985_v60  ;;  %v1165_v8 = vadd.f32 %v3779_v4, %v695_v53  ;;  %3825 = vmatprep.mubr.msk.bf16.mxu1 %vm1809_vm2, %v1758_v24  ;;  %v1156_v10 = vpop.f32.mrb[29].mxu0  ;;  %v700_v4 = vld [vmem:[%s4733_s16 + $0x118] sm:$0xff] }
 0x151   : > { %v4114_v11 = vpop.eup %4113  ;;  %v1704_v0 = vmul.f32 %v4112_v61, %v4900_v19  ;;  %4129 = vrcp.f32 %v1581_v27  ;;  %v4992_v13 = vadd.f32 %v4835_v54, %v1144_v2  ;;  %v1157_v3 = vadd.f32 %v1156_v10, %v693_v62  ;;  %3826 = vmatmul.mubr.msk.bf16.gmra.mrb[8].mxu1 %vm1809_vm2, %v1759_v49  ;;  %v3780_v15 = vpop.f32.mrb[30].mxu0 }
 0x152   : > { %v4116_v16 = vpop.eup %4115  ;;  %v1702_v20 = vmul.f32 %v4114_v11, %v4903_v26  ;;  %4131 = vrcp.f32 %v1579_v7  ;;  %v1488_v22 = vmul.f32 1.442695, %v1397_v29  ;;  %v4998_v5 = vadd.f32 %v4835_v54, %v1165_v8  ;;  %v1159_v23 = vpop.f32.mrb[31].mxu0 }
 0x153   : > { %v4118_v19 = vpop.eup %4117  ;;  %v1705_v25 = vmul.f32 %v4116_v16, %v4907_v33  ;;  %4133 = vpow2.f32 %v1476_v50  ;;  %v1395_v30 = vsub.f32 0.0, %v4992_v13  ;;  %v5003_v31 = vadd.f32 %v4835_v54, %v1157_v3  ;;  %v694_v33 = vld [vmem:[%s4733_s16 + $0xe8] sm:$0xff] }
 0x154   : > { %v4120_v32 = vpop.eup %4119  ;;  %v1703_v26 = vmul.f32 %v4118_v19, %v4911_v37  ;;  %4135 = vpow2.f32 %v1486_v59  ;;  %v1400_v34 = vsub.f32 0.0, %v4998_v5  ;;  %v1168_v35 = vadd.f32 %v3780_v15, %v696_v14 }
 0x155   : > { %v4122_v36 = vpop.eup %4121  ;;  %v1761_v39 = vpack.c.bf16 %v1705_v25, %v1704_v0  ;;  %v1584_v46 = vadd.f32 1.0, %v4120_v32  ;;  %4137 = vpow2.f32 %v1482_v1  ;;  %v1484_v40 = vmul.f32 1.442695, %v1395_v30  ;;  %v701_v32 = vld [vmem:[%s4733_s16 + $0x120] sm:$0xff] }
 0x156   : > { %v4124_v43 = vpop.eup %4123  ;;  %v1760_v44 = vpack.c.bf16 %v1703_v26, %v1702_v20  ;;  %v1582_v51 = vadd.f32 1.0, %v4122_v36  ;;  %4139 = vpow2.f32 %v1488_v22  ;;  %v1494_v45 = vmul.f32 1.442695, %v1400_v34  ;;  %v698_v20 = vld [vmem:[%s4733_s16 + $0x108] sm:$0xff]  ;;  %v703_v22 = vld [vmem:[%s4733_s16 + $0x130] sm:$0xff] }
 0x157   : > { %4141 = vrcp.f32 %v1584_v46  ;;  %v1585_v37 = vadd.f32 1.0, %v4124_v43  ;;  %v1398_v48 = vsub.f32 0.0, %v5003_v31  ;;  %v5012_v49 = vadd.f32 %v4835_v54, %v1168_v35  ;;  %v3783_v21 = vpop.f32.mrb[32].mxu0 }
 0x158   : > { %4143 = vrcp.f32 %v1582_v51  ;;  %v1160_v50 = vadd.f32 %v1159_v23, %v694_v33  ;;  %v1181_v57 = vadd.f32 %v3783_v21, %v699_v41  ;;  %3829 = vmatprep.mubr.msk.bf16.mxu1 %vm1809_vm2, %v1760_v44  ;;  %v1172_v53 = vpop.f32.mrb[33].mxu0 }
 0x159   : > { %v4126_v55 = vpop.eup %4125  ;;  %4145 = vrcp.f32 %v1585_v37  ;;  %v1490_v24 = vmul.f32 1.442695, %v1398_v48  ;;  %v1401_v58 = vsub.f32 0.0, %v5012_v49  ;;  %v1173_v59 = vadd.f32 %v1172_v53, %v697_v47  ;;  %3830 = vmatmul.mubr.msk.bf16.gmra.mrb[12].mxu1 %vm1809_vm2, %v1761_v39  ;;  %v3784_v62 = vpop.f32.mrb[34].mxu0 }
 0x15a   : > { %v4128_v63 = vpop.eup %4127  ;;  %v1708_v27 = vmul.f32 %v4126_v55, %v4923_v6  ;;  %4147 = vpow2.f32 %v1484_v40  ;;  %v5019_v1 = vadd.f32 %v4835_v54, %v1160_v50  ;;  %v5022_v2 = vadd.f32 %v4835_v54, %v1181_v57  ;;  %v1175_v61 = vpop.f32.mrb[35].mxu0  ;;  %v704_v57 = vld [vmem:[%s4733_s16 + $0x138] sm:$0xff] }
 0x15b   : > { %v4130_v7 = vpop.eup %4129  ;;  %v1706_v29 = vmul.f32 %v4128_v63, %v4926_v9  ;;  %4149 = vpow2.f32 %v1494_v45  ;;  %v1496_v8 = vmul.f32 1.442695, %v1401_v58  ;;  %v5027_v10 = vadd.f32 %v4835_v54, %v1173_v59 }
 0x15c   : > { %v4132_v6 = vpop.eup %4131  ;;  %v1709_v11 = vmul.f32 %v4130_v7, %v4932_v17  ;;  %4151 = vpow2.f32 %v1490_v24  ;;  %v1399_v0 = vsub.f32 0.0, %v5019_v1  ;;  %v1404_v3 = vsub.f32 0.0, %v5022_v2 }
 0x15d   : > { %v4134_v14 = vpop.eup %4133  ;;  %v1707_v15 = vmul.f32 %v4132_v6, %v4935_v18  ;;  %4153 = vpow2.f32 %v1496_v8  ;;  %v1402_v9 = vsub.f32 0.0, %v5027_v10  ;;  %v1184_v16 = vadd.f32 %v3784_v62, %v700_v4 }
 0x15e   : > { %v4136_v23 = vpop.eup %4135  ;;  %v1763_v19 = vpack.c.bf16 %v1709_v11, %v1708_v27  ;;  %v1583_v25 = vadd.f32 1.0, %v4134_v14  ;;  %v1492_v30 = vmul.f32 1.442695, %v1399_v0  ;;  %v1502_v35 = vmul.f32 1.442695, %v1404_v3  ;;  %v707_v0 = vld [vmem:[%s4733_s16 + $0x150] sm:$0xff] }
 0x15f   : > { %v4138_v17 = vpop.eup %4137  ;;  %v1762_v26 = vpack.c.bf16 %v1707_v15, %v1706_v29  ;;  %v1588_v34 = vadd.f32 1.0, %v4136_v23  ;;  %v5038_v36 = vadd.f32 %v4835_v54, %v1184_v16  ;;  %v3787_v39 = vpop.f32.mrb[36].mxu0  ;;  %v1176_v40 = vadd.f32 %v1175_v61, %v698_v20  ;;  %v702_v29 = vld [vmem:[%s4733_s16 + $0x128] sm:$0xff]  ;;  %v705_v3 = vld [vmem:[%s4733_s16 + $0x140] sm:$0xff]  ;;  %v708_v14 = vld [vmem:[%s4733_s16 + $0x158] sm:$0xff] }
 0x160   : > { %v4140_v18 = vpop.eup %4139  ;;  %4155 = vrcp.f32 %v1583_v25  ;;  %v1586_v46 = vadd.f32 1.0, %v4138_v17  ;;  %v1197_v33 = vadd.f32 %v3787_v39, %v703_v22  ;;  %v1188_v41 = vpop.f32.mrb[37].mxu0  ;;  %v1498_v51 = vmul.f32 1.442695, %v1402_v9 }
 0x161   : > { %v4142_v43 = vpop.eup %4141  ;;  %4157 = vrcp.f32 %v1588_v34  ;;  %v1589_v44 = vadd.f32 1.0, %v4140_v18  ;;  %3833 = vmatprep.mubr.msk.bf16.mxu1 %vm1809_vm2, %v1762_v26  ;;  %v1189_v45 = vadd.f32 %v1188_v41, %v701_v32  ;;  %v3788_v47 = vpop.f32.mrb[38].mxu0  ;;  %v1405_v48 = vsub.f32 0.0, %v5038_v36 }
 0x162   : > { %v4144_v37 = vpop.eup %4143  ;;  %4159 = vrcp.f32 %v1586_v46  ;;  %v5043_v21 = vadd.f32 %v4835_v54, %v1176_v40  ;;  %v5046_v50 = vadd.f32 %v4835_v54, %v1197_v33  ;;  %3834 = vmatmul.mubr.msk.bf16.gmra.mrb[16].mxu1 %vm1809_vm2, %v1763_v19  ;;  %v1191_v53 = vpop.f32.mrb[39].mxu0  ;;  %v5051_v24 = vmul.f32 %v4142_v43, %v4948_v52 }
 0x163   : > { %v4146_v55 = vpop.eup %4145  ;;  %v5054_v58 = vmul.f32 %v4144_v37, %v4952_v56  ;;  %4161 = vrcp.f32 %v1589_v44  ;;  %v5057_v59 = vadd.f32 %v4835_v54, %v1189_v45  ;;  %v1200_v7 = vadd.f32 %v3788_v47, %v704_v57 }
 0x164   : > { %v4148_v62 = vpop.eup %4147  ;;  %v5060_v63 = vmul.f32 %v4146_v55, %v4959_v12  ;;  %4163 = vpow2.f32 %v1492_v30  ;;  %v1403_v27 = vsub.f32 0.0, %v5043_v21  ;;  %v1408_v52 = vsub.f32 0.0, %v5046_v50 }
 0x165   : > { %v4150_v4 = vpop.eup %4149  ;;  %v1587_v61 = vadd.f32 1.0, %v4148_v62  ;;  %4165 = vpow2.f32 %v1502_v35  ;;  %v1406_v56 = vsub.f32 0.0, %v5057_v59  ;;  %v1504_v11 = vmul.f32 1.442695, %v1405_v48 }
 0x166   : > { %v4152_v8 = vpop.eup %4151  ;;  %v1765_v6 = vpack.c.bf16 %v5060_v63, %v5051_v24  ;;  %v1592_v12 = vadd.f32 1.0, %v4150_v4  ;;  %4167 = vpow2.f32 %v1498_v51  ;;  %v1500_v16 = vmul.f32 1.442695, %v1403_v27 }
 0x167   : > { %v4154_v15 = vpop.eup %4153  ;;  %4169 = vrcp.f32 %v1587_v61  ;;  %v1590_v9 = vadd.f32 1.0, %v4152_v8  ;;  %v1510_v20 = vmul.f32 1.442695, %v1408_v52  ;;  %v3791_v22 = vpop.f32.mrb[40].mxu0  ;;  %v5072_v19 = vadd.f32 %v4835_v54, %v1200_v7  ;;  %v706_v52 = vld [vmem:[%s4733_s16 + $0x148] sm:$0xff] }
 0x168   : > { %4171 = vrcp.f32 %v1592_v12  ;;  %v1593_v23 = vadd.f32 1.0, %v4154_v15  ;;  %v1192_v25 = vadd.f32 %v1191_v53, %v702_v29  ;;  %v1204_v30 = vpop.f32.mrb[41].mxu0  ;;  %v1506_v32 = vmul.f32 1.442695, %v1406_v56  ;;  %v711_v56 = vld [vmem:[%s4733_s16 + $0x170] sm:$0xff]  ;;  %v709_v29 = vld [vmem:[%s4733_s16 + $0x160] sm:$0xff] }
 0x169   : > { %4173 = vrcp.f32 %v1590_v9  ;;  %v1213_v17 = vadd.f32 %v3791_v22, %v707_v0  ;;  %v1205_v26 = vadd.f32 %v1204_v30, %v705_v3  ;;  %v3792_v34 = vpop.f32.mrb[42].mxu0  ;;  %v1409_v39 = vsub.f32 0.0, %v5072_v19 }
 0x16a   : > { %v4156_v35 = vpop.eup %4155  ;;  %4175 = vrcp.f32 %v1593_v23  ;;  %v5076_v18 = vadd.f32 %v4835_v54, %v1192_v25  ;;  %v1216_v46 = vadd.f32 %v3792_v34, %v708_v14  ;;  %v1207_v40 = vpop.f32.mrb[43].mxu0 }
 0x16b   : > { %v4158_v33 = vpop.eup %4157  ;;  %v1711_v41 = vmul.f32 %v4156_v35, %v4966_v28  ;;  %4177 = vpow2.f32 %v1504_v11  ;;  %v5080_v43 = vadd.f32 %v4835_v54, %v1213_v17  ;;  %v5083_v44 = vadd.f32 %v4835_v54, %v1205_v26  ;;  %v712_v17 = vld [vmem:[%s4733_s16 + $0x178] sm:$0xff] }
 0x16c   : > { %v4160_v51 = vpop.eup %4159  ;;  %v5086_v45 = vmul.f32 %v4158_v33, %v4972_v38  ;;  %4179 = vpow2.f32 %v1500_v16  ;;  %v1512_v47 = vmul.f32 1.442695, %v1409_v39  ;;  %v1407_v37 = vsub.f32 0.0, %v5076_v18 }
 0x16d   : > { %v4162_v48 = vpop.eup %4161  ;;  %v1764_v57 = vpack.c.bf16 %v1711_v41, %v5054_v58  ;;  %v1714_v28 = vmul.f32 %v4160_v51, %v4977_v42  ;;  %4181 = vpow2.f32 %v1510_v20  ;;  %v1412_v53 = vsub.f32 0.0, %v5080_v43 }
 0x16e   : > { %v4164_v55 = vpop.eup %4163  ;;  %v5093_v62 = vmul.f32 %v4162_v48, %v4985_v60  ;;  %4183 = vpow2.f32 %v1506_v32  ;;  %v1508_v38 = vmul.f32 1.442695, %v1407_v37  ;;  %v1410_v27 = vsub.f32 0.0, %v5083_v44 }
 0x16f   : > { %v4166_v4 = vpop.eup %4165  ;;  %v1591_v61 = vadd.f32 1.0, %v4164_v55  ;;  %4185 = vpow2.f32 %v1512_v47  ;;  %v1518_v58 = vmul.f32 1.442695, %v1412_v53  ;;  %3837 = vmatprep.mubr.msk.bf16.mxu1 %vm1809_vm2, %v1764_v57  ;;  %v5099_v42 = vadd.f32 %v4835_v54, %v1216_v46  ;;  %v3795_v7 = vpop.f32.mrb[44].mxu0 }
 0x170   : > { %v4168_v8 = vpop.eup %4167  ;;  %v1767_v60 = vpack.c.bf16 %v5093_v62, %v5086_v45  ;;  %v1596_v12 = vadd.f32 1.0, %v4166_v4  ;;  %4187 = vpow2.f32 %v1508_v38  ;;  %v1514_v11 = vmul.f32 1.442695, %v1410_v27  ;;  %3838 = vmatmul.mubr.msk.bf16.gmra.mrb[20].mxu1 %vm1809_vm2, %v1765_v6  ;;  %v1220_v0 = vpop.f32.mrb[45].mxu0  ;;  %v710_v45 = vld [vmem:[%s4733_s16 + $0x168] sm:$0xff]  ;;  %v713_v4 = vld [vmem:[%s4733_s16 + $0x180] sm:$0xff] }
 0x171   : > { %v4170_v3 = vpop.eup %4169  ;;  %4189 = vrcp.f32 %v1591_v61  ;;  %v1594_v14 = vadd.f32 1.0, %v4168_v8  ;;  %v1413_v15 = vsub.f32 0.0, %v5099_v42  ;;  %v1208_v9 = vadd.f32 %v1207_v40, %v706_v52  ;;  %v3796_v16 = vpop.f32.mrb[46].mxu0  ;;  %v5142_v38 = vld [vmem:[%s6118_s5] ss:$0 sm:$0xff] }
 0x172   : > { %v4172_v20 = vpop.eup %4171  ;;  %v1715_v22 = vmul.f32 %v4170_v3, %v4992_v13  ;;  %4191 = vrcp.f32 %v1596_v12  ;;  %v1229_v23 = vadd.f32 %v3795_v7, %v711_v56  ;;  %v1221_v25 = vadd.f32 %v1220_v0, %v709_v29  ;;  %v1223_v30 = vpop.f32.mrb[47].mxu0 }
 0x173   : > { %v4174_v32 = vpop.eup %4173  ;;  %v5112_v24 = vmul.f32 %v4172_v20, %v4998_v5  ;;  %4193 = vrcp.f32 %v1594_v14  ;;  %v1520_v63 = vmul.f32 1.442695, %v1413_v15  ;;  %v5115_v6 = vadd.f32 %v4835_v54, %v1208_v9 }
 0x174   : > { %v4176_v26 = vpop.eup %4175  ;;  %v1766_v34 = vpack.c.bf16 %v1715_v22, %v1714_v28  ;;  %v5119_v35 = vmul.f32 %v4174_v32, %v5003_v31  ;;  %4195 = vpow2.f32 %v1518_v58  ;;  %v5122_v13 = vadd.f32 %v4835_v54, %v1229_v23 }
 0x175   : > { %v4178_v39 = vpop.eup %4177  ;;  %v5125_v5 = vmul.f32 %v4176_v26, %v5012_v49  ;;  %4197 = vpow2.f32 %v1514_v11  ;;  %v1411_v46 = vsub.f32 0.0, %v5115_v6  ;;  %v5129_v40 = vadd.f32 %v4835_v54, %v1221_v25  ;;  %v715_v54 = vld [vmem:[%s4733_s16 + $0x190] sm:$0xff] }
 0x176   : > { %v4180_v33 = vpop.eup %4179  ;;  %v1597_v41 = vadd.f32 1.0, %v4178_v39  ;;  %4199 = vpow2.f32 %v1520_v63  ;;  %v1416_v31 = vsub.f32 0.0, %v5122_v13  ;;  %3841 = vmatprep.mubr.msk.bf16.mxu1 %vm1809_vm2, %v1766_v34  ;;  %v1232_v51 = vadd.f32 %v3796_v16, %v712_v17  ;;  %v716_v17 = vld [vmem:[%s4733_s16 + $0x198] sm:$0xff] }
 0x177   : > { %v4182_v47 = vpop.eup %4181  ;;  %v1769_v49 = vpack.c.bf16 %v5125_v5, %v5112_v24  ;;  %v1595_v37 = vadd.f32 1.0, %v4180_v33  ;;  %v1516_v48 = vmul.f32 1.442695, %v1411_v46  ;;  %v1414_v57 = vsub.f32 0.0, %v5129_v40  ;;  %v3799_v28 = vpop.f32.mrb[48].mxu0  ;;  %v714_v46 = vld [vmem:[%s4733_s16 + $0x188] sm:$0xff] }
 0x178   : > { %v4184_v53 = vpop.eup %4183  ;;  %4201 = vrcp.f32 %v1597_v41  ;;  %v1600_v55 = vadd.f32 1.0, %v4182_v47  ;;  %v1526_v62 = vmul.f32 1.442695, %v1416_v31  ;;  %3842 = vmatmul.mubr.msk.bf16.gmra.mrb[24].mxu1 %vm1809_vm2, %v1767_v60  ;;  %v5145_v27 = vadd.f32 %v5142_v38, %v1232_v51  ;;  %v1236_v52 = vpop.f32.mrb[49].mxu0  ;;  %v717_v47 = vld [vmem:[%s4733_s16 + $0x1a0] sm:$0xff] }
 0x179   : > { %v4186_v61 = vpop.eup %4185  ;;  %4203 = vrcp.f32 %v1595_v37  ;;  %v1598_v58 = vadd.f32 1.0, %v4184_v53  ;;  %v1522_v56 = vmul.f32 1.442695, %v1414_v57  ;;  %v1224_v7 = vadd.f32 %v1223_v30, %v710_v45  ;;  %v3800_v29 = vpop.f32.mrb[50].mxu0 }
 0x17a   : > { %v4188_v8 = vpop.eup %4187  ;;  %4205 = vrcp.f32 %v1600_v55  ;;  %v1601_v12 = vadd.f32 1.0, %v4186_v61  ;;  %v1417_v60 = vsub.f32 0.0, %v5145_v27  ;;  %v1245_v11 = vadd.f32 %v3799_v28, %v715_v54  ;;  %v1239_v0 = vpop.f32.mrb[51].mxu0  ;;  %v720_v54 = vld [vmem:[%s4733_s16 + $0x1b8] sm:$0xff] }
 0x17b   : > { %v4190_v3 = vpop.eup %4189  ;;  %4207 = vrcp.f32 %v1598_v58  ;;  %v1599_v14 = vadd.f32 1.0, %v4188_v8  ;;  %v5150_v15 = vadd.f32 %v5142_v38, %v1224_v7  ;;  %v1237_v9 = vadd.f32 %v1236_v52, %v713_v4 }
 0x17c   : > { %v4192_v16 = vpop.eup %4191  ;;  %v1719_v20 = vmul.f32 %v4190_v3, %v5019_v1  ;;  %4209 = vrcp.f32 %v1601_v12  ;;  %v1528_v22 = vmul.f32 1.442695, %v1417_v60  ;;  %v5154_v23 = vadd.f32 %v5142_v38, %v1245_v11 }
 0x17d   : > { %v4194_v25 = vpop.eup %4193  ;;  %v5157_v30 = vmul.f32 %v4192_v16, %v5022_v2  ;;  %4211 = vrcp.f32 %v1599_v14  ;;  %v1415_v32 = vsub.f32 0.0, %v5150_v15  ;;  %v5161_v63 = vadd.f32 %v5142_v38, %v1237_v9  ;;  %v719_v2 = vld [vmem:[%s4733_s16 + $0x1b0] sm:$0xff] }
 0x17e   : > { %v4196_v26 = vpop.eup %4195  ;;  %v1768_v1 = vpack.c.bf16 %v1719_v20, %v5119_v35  ;;  %v1722_v34 = vmul.f32 %v4194_v25, %v5027_v10  ;;  %4213 = vpow2.f32 %v1516_v48  ;;  %v1420_v39 = vsub.f32 0.0, %v5154_v23 }
 0x17f   : > { %v4198_v33 = vpop.eup %4197  ;;  %v1604_v41 = vadd.f32 1.0, %v4196_v26  ;;  %4215 = vpow2.f32 %v1526_v62  ;;  %v1524_v31 = vmul.f32 1.442695, %v1415_v32  ;;  %v1418_v51 = vsub.f32 0.0, %v5161_v63  ;;  %v3803_v45 = vpop.f32.mrb[52].mxu0 }
 0x180   : > { %v4200_v37 = vpop.eup %4199  ;;  %v1602_v57 = vadd.f32 1.0, %v4198_v33  ;;  %4217 = vpow2.f32 %v1522_v56  ;;  %v1534_v35 = vmul.f32 1.442695, %v1420_v39  ;;  %3845 = vmatprep.mubr.msk.bf16.mxu1 %vm1809_vm2, %v1768_v1  ;;  %v1248_v10 = vadd.f32 %v3800_v29, %v716_v17  ;;  %v1252_v48 = vpop.f32.mrb[53].mxu0  ;;  %v718_v1 = vld [vmem:[%s4733_s16 + $0x1a8] sm:$0xff] }
 0x181   : > { %4219 = vrcp.f32 %v1604_v41  ;;  %v1605_v28 = vadd.f32 1.0, %v4200_v37  ;;  %v1530_v53 = vmul.f32 1.442695, %v1418_v51  ;;  %3846 = vmatmul.mubr.msk.bf16.gmra.mrb[28].mxu1 %vm1809_vm2, %v1769_v49  ;;  %v1240_v55 = vadd.f32 %v1239_v0, %v714_v46  ;;  %v3804_v62 = vpop.f32.mrb[54].mxu0 }
 0x182   : > { %v4202_v52 = vpop.eup %4201  ;;  %4221 = vrcp.f32 %v1602_v57  ;;  %v5178_v4 = vadd.f32 %v5142_v38, %v1248_v10  ;;  %v1261_v61 = vadd.f32 %v3803_v45, %v719_v2  ;;  %v1253_v58 = vadd.f32 %v1252_v48, %v717_v47  ;;  %v1255_v56 = vpop.f32.mrb[55].mxu0 }
 0x183   : > { %v4204_v7 = vpop.eup %4203  ;;  %v1725_v29 = vmul.f32 %v4202_v52, %v5038_v36  ;;  %4223 = vrcp.f32 %v1605_v28  ;;  %v5182_v8 = vadd.f32 %v5142_v38, %v1240_v55  ;;  %v1264_v24 = vadd.f32 %v3804_v62, %v720_v54  ;;  %v721_v54 = vld [vmem:[%s4733_s16 + $0x1c0] sm:$0xff]  ;;  %v724_v28 = vld [vmem:[%s4733_s16 + $0x1d8] sm:$0xff] }
 0x184   : > { %v4206_v5 = vpop.eup %4205  ;;  %v1723_v49 = vmul.f32 %v4204_v7, %v5043_v21  ;;  %4225 = vpow2.f32 %v1528_v22  ;;  %v1421_v12 = vsub.f32 0.0, %v5178_v4  ;;  %v5187_v60 = vadd.f32 %v5142_v38, %v1261_v61 }
 0x185   : > { %v4208_v11 = vpop.eup %4207  ;;  %v1771_v0 = vpack.c.bf16 %v1725_v29, %v5157_v30  ;;  %v5191_v3 = vmul.f32 %v4206_v5, %v5046_v50  ;;  %4227 = vpow2.f32 %v1524_v31  ;;  %v1419_v36 = vsub.f32 0.0, %v5182_v8 }
 0x186   : > { %v4210_v14 = vpop.eup %4209  ;;  %v1770_v9 = vpack.c.bf16 %v1723_v49, %v1722_v34  ;;  %v1726_v21 = vmul.f32 %v4208_v11, %v5057_v59  ;;  %4229 = vpow2.f32 %v1534_v35  ;;  %v1536_v16 = vmul.f32 1.442695, %v1421_v12 }
 0x187   : > { %v4212_v20 = vpop.eup %4211  ;;  %v5196_v22 = vmul.f32 %v4210_v14, %v5072_v19  ;;  %4231 = vpow2.f32 %v1530_v53  ;;  %v1532_v25 = vmul.f32 1.442695, %v1419_v36  ;;  %v1424_v50 = vsub.f32 0.0, %v5187_v60  ;;  %v3807_v30 = vpop.f32.mrb[56].mxu0  ;;  %v723_v19 = vld [vmem:[%s4733_s16 + $0x1d0] sm:$0xff] }
 0x188   : > { %v4214_v32 = vpop.eup %4213  ;;  %v1727_v17 = vmul.f32 %v4212_v20, %v5076_v18  ;;  %4233 = vpow2.f32 %v1536_v16  ;;  %3849 = vmatprep.mubr.msk.bf16.mxu1 %vm1809_vm2, %v1770_v9  ;;  %v5202_v59 = vadd.f32 %v5142_v38, %v1253_v58  ;;  %v5205_v26 = vadd.f32 %v5142_v38, %v1264_v24  ;;  %v1268_v34 = vpop.f32.mrb[57].mxu0  ;;  %v722_v9 = vld [vmem:[%s4733_s16 + $0x1c8] sm:$0xff] }
 0x189   : > { %v4216_v39 = vpop.eup %4215  ;;  %v1773_v46 = vpack.c.bf16 %v5196_v22, %v5191_v3  ;;  %v1603_v2 = vadd.f32 1.0, %v4214_v32  ;;  %4235 = vpow2.f32 %v1532_v25  ;;  %v1542_v18 = vmul.f32 1.442695, %v1424_v50  ;;  %3850 = vmatmul.mubr.msk.bf16.gmra.mrb[32].mxu1 %vm1809_vm2, %v1771_v0  ;;  %v3808_v33 = vpop.f32.mrb[58].mxu0 }
 0x18a   : > { %v4218_v41 = vpop.eup %4217  ;;  %v1772_v31 = vpack.c.bf16 %v1727_v17, %v1726_v21  ;;  %v1608_v51 = vadd.f32 1.0, %v4216_v39  ;;  %v1422_v45 = vsub.f32 0.0, %v5202_v59  ;;  %v1425_v47 = vsub.f32 0.0, %v5205_v26  ;;  %v1271_v37 = vpop.f32.mrb[59].mxu0  ;;  %v727_v21 = vld [vmem:[%s4733_s16 + $0x1f0] sm:$0xff] }
 0x18b   : > { %v4220_v57 = vpop.eup %4219  ;;  %4237 = vrcp.f32 %v1603_v2  ;;  %v1606_v35 = vadd.f32 1.0, %v4218_v41  ;;  %v1256_v10 = vadd.f32 %v1255_v56, %v718_v1  ;;  %v1277_v48 = vadd.f32 %v3807_v30, %v723_v19 }
 0x18c   : > { %v4222_v53 = vpop.eup %4221  ;;  %v5217_v55 = vmul.f32 %v4220_v57, %v5080_v43  ;;  %4239 = vrcp.f32 %v1608_v51  ;;  %v1538_v62 = vmul.f32 1.442695, %v1422_v45  ;;  %v1544_v52 = vmul.f32 1.442695, %v1425_v47  ;;  %3853 = vmatprep.mubr.msk.bf16.mxu1 %vm1809_vm2, %v1772_v31  ;;  %v728_v31 = vld [vmem:[%s4733_s16 + $0x1f8] sm:$0xff] }
 0x18d   : > { %v4224_v61 = vpop.eup %4223  ;;  %v5221_v58 = vmul.f32 %v4222_v53, %v5083_v44  ;;  %4241 = vrcp.f32 %v1606_v35  ;;  %v5224_v7 = vadd.f32 %v5142_v38, %v1256_v10  ;;  %v5227_v56 = vadd.f32 %v5142_v38, %v1277_v48 }
 0x18e   : > { %v4226_v29 = vpop.eup %4225  ;;  %v5230_v43 = vmul.f32 %v4224_v61, %v5099_v42  ;;  %4243 = vpow2.f32 %v1542_v18  ;;  %v1269_v24 = vadd.f32 %v1268_v34, %v721_v54  ;;  %v1280_v5 = vadd.f32 %v3808_v33, %v724_v28  ;;  %v725_v34 = vld [vmem:[%s4733_s16 + $0x1e0] sm:$0xff] }
 0x18f   : > { %v4228_v49 = vpop.eup %4227  ;;  %v1609_v12 = vadd.f32 1.0, %v4226_v29  ;;  %4245 = vpow2.f32 %v1538_v62  ;;  %v1423_v44 = vsub.f32 0.0, %v5224_v7  ;;  %v1428_v11 = vsub.f32 0.0, %v5227_v56  ;;  %v3811_v0 = vpop.f32.mrb[60].mxu0 }
 0x190   : > { %v4230_v3 = vpop.eup %4229  ;;  %v1775_v36 = vpack.c.bf16 %v5230_v43, %v5217_v55  ;;  %v1607_v14 = vadd.f32 1.0, %v4228_v49  ;;  %4247 = vpow2.f32 %v1544_v52  ;;  %v5237_v42 = vadd.f32 %v5142_v38, %v1269_v24  ;;  %v1284_v16 = vpop.f32.mrb[61].mxu0 }
 0x191   : > { %v4232_v20 = vpop.eup %4231  ;;  %4249 = vrcp.f32 %v1609_v12  ;;  %v1612_v22 = vadd.f32 1.0, %v4230_v3  ;;  %v1540_v25 = vmul.f32 1.442695, %v1423_v44  ;;  %v1550_v50 = vmul.f32 1.442695, %v1428_v11  ;;  %3854 = vmatmul.mubr.msk.bf16.gmra.mrb[36].mxu1 %vm1809_vm2, %v1773_v46  ;;  %v3812_v30 = vpop.f32.mrb[62].mxu0 }
 0x192   : > { %v4234_v32 = vpop.eup %4233  ;;  %4251 = vrcp.f32 %v1607_v14  ;;  %v1610_v17 = vadd.f32 1.0, %v4232_v20  ;;  %v1426_v1 = vsub.f32 0.0, %v5237_v42  ;;  %v5244_v19 = vadd.f32 %v5142_v38, %v1280_v5  ;;  %v1287_v39 = vpop.f32.mrb[63].mxu0  ;;  %v726_v5 = vld [vmem:[%s4733_s16 + $0x1e8] sm:$0xff] }
 0x193   : > { %v4236_v2 = vpop.eup %4235  ;;  %4253 = vrcp.f32 %v1612_v22  ;;  %v1613_v18 = vadd.f32 1.0, %v4234_v32  ;;  %v1272_v33 = vadd.f32 %v1271_v37, %v722_v9  ;;  %v1293_v41 = vadd.f32 %v3811_v0, %v727_v21 }
 0x194   : > { %4255 = vrcp.f32 %v1610_v17  ;;  %v1611_v51 = vadd.f32 1.0, %v4236_v2  ;;  %v1546_v46 = vmul.f32 1.442695, %v1426_v1  ;;  %v1429_v45 = vsub.f32 0.0, %v5244_v19 }
 0x195   : > { %v4238_v47 = vpop.eup %4237  ;;  %4257 = vrcp.f32 %v1613_v18  ;;  %v5250_v57 = vadd.f32 %v5142_v38, %v1272_v33  ;;  %v5253_v35 = vadd.f32 %v5142_v38, %v1293_v41  ;;  %v1285_v10 = vadd.f32 %v1284_v16, %v725_v34 }
 0x196   : > { %v4240_v48 = vpop.eup %4239  ;;  %v1731_v37 = vmul.f32 %v4238_v47, %v5115_v6  ;;  %4259 = vrcp.f32 %v1611_v51  ;;  %v1552_v54 = vmul.f32 1.442695, %v1429_v45  ;;  %v1296_v28 = vadd.f32 %v3812_v30, %v728_v31 }
 0x197   : > { %v4242_v53 = vpop.eup %4241  ;;  %4261 = vpow2.f32 %v1540_v25  ;;  %v1427_v62 = vsub.f32 0.0, %v5250_v57  ;;  %v1432_v52 = vsub.f32 0.0, %v5253_v35  ;;  %v5260_v24 = vadd.f32 %v5142_v38, %v1285_v10 }
 0x198   : > { %v4244_v61 = vpop.eup %4243  ;;  %v1774_v29 = vpack.c.bf16 %v1731_v37, %v5221_v58  ;;  %4263 = vpow2.f32 %v1550_v50  ;;  %v5266_v0 = vadd.f32 %v5142_v38, %v1296_v28  ;;  %v1288_v9 = vadd.f32 %v1287_v39, %v726_v5 }
 0x199   : > { %v4246_v49 = vpop.eup %4245  ;;  %v1616_v12 = vadd.f32 1.0, %v4244_v61  ;;  %4265 = vpow2.f32 %v1546_v46  ;;  %v1548_v44 = vmul.f32 1.442695, %v1427_v62  ;;  %v1430_v11 = vsub.f32 0.0, %v5260_v24 }
 0x19a   : > { %v4248_v6 = vpop.eup %4247  ;;  %4267 = vpow2.f32 %v1552_v54  ;;  %3857 = vmatprep.mubr.msk.bf16.mxu1 %vm1809_vm2, %v1774_v29  ;;  %v1558_v14 = vmul.f32 1.442695, %v1432_v52  ;;  %v1736_v16 = vmul.f32 %v4240_v48, %v5122_v13  ;;  %v1433_v25 = vsub.f32 0.0, %v5266_v0 }
 0x19b   : > { %v4250_v3 = vpop.eup %4249  ;;  %4269 = vrcp.f32 %v1616_v12  ;;  %v1617_v58 = vadd.f32 1.0, %v4248_v6  ;;  %3858 = vmatmul.mubr.msk.bf16.gmra.mrb[40].mxu1 %vm1809_vm2, %v1775_v36  ;;  %v1554_v22 = vmul.f32 1.442695, %v1430_v11  ;;  %v1734_v30 = vmul.f32 %v4242_v53, %v5129_v40 }
 0x19c   : > { %v4252_v21 = vpop.eup %4251  ;;  %v1737_v20 = vmul.f32 %v4250_v3, %v5145_v27  ;;  %v5278_v17 = vadd.f32 %v5142_v38, %v1288_v9  ;;  %v1614_v36 = vadd.f32 1.0, %v4246_v49  ;;  %v1560_v1 = vmul.f32 1.442695, %v1433_v25 }
 0x19d   : > { %v4254_v50 = vpop.eup %4253  ;;  %v1735_v32 = vmul.f32 %v4252_v21, %v5150_v15  ;;  %4271 = vrcp.f32 %v1617_v58 }
 0x19e   : > { %v4256_v55 = vpop.eup %4255  ;;  %v1777_v43 = vpack.c.bf16 %v1737_v20, %v1736_v16  ;;  %4273 = vpow2.f32 %v1548_v44  ;;  %v1431_v27 = vsub.f32 0.0, %v5278_v17  ;;  %v1740_v2 = vmul.f32 %v4254_v50, %v5154_v23 }
 0x19f   : > { %v4258_v13 = vpop.eup %4257  ;;  %v1776_v34 = vpack.c.bf16 %v1735_v32, %v1734_v30  ;;  %4275 = vpow2.f32 %v1558_v14  ;;  %v1738_v38 = vmul.f32 %v4256_v55, %v5161_v63 }
 0x1a0   : > { %v4260_v39 = vpop.eup %4259  ;;  %v1741_v40 = vmul.f32 %v4258_v13, %v5178_v4  ;;  %4277 = vpow2.f32 %v1554_v22  ;;  %v1556_v33 = vmul.f32 1.442695, %v1431_v27 }
 0x1a1   : > { %v4262_v15 = vpop.eup %4261  ;;  %v1739_v18 = vmul.f32 %v4260_v39, %v5182_v8  ;;  %4279 = vpow2.f32 %v1560_v1  ;;  %3861 = vmatprep.mubr.msk.bf16.mxu1 %vm1809_vm2, %v1776_v34 }
 0x1a2   : > { %v4264_v41 = vpop.eup %4263  ;;  %v1779_v31 = vpack.c.bf16 %v1741_v40, %v1740_v2  ;;  %4281 = vrcp.f32 %v1614_v36  ;;  %v1615_v51 = vadd.f32 1.0, %v4262_v15 }
 0x1a3   : > { %v4266_v46 = vpop.eup %4265  ;;  %v1778_v45 = vpack.c.bf16 %v1739_v18, %v1738_v38  ;;  %v1620_v47 = vadd.f32 1.0, %v4264_v41  ;;  %4283 = vpow2.f32 %v1556_v33  ;;  %3862 = vmatmul.mubr.msk.bf16.gmra.mrb[44].mxu1 %vm1809_vm2, %v1777_v43 }
 0x1a4   : > { %v4268_v23 = vpop.eup %4267  ;;  %4285 = vrcp.f32 %v1615_v51  ;;  %v1618_v63 = vadd.f32 1.0, %v4266_v46 }
 0x1a5   : > { %v4270_v4 = vpop.eup %4269  ;;  %4287 = vrcp.f32 %v1620_v47  ;;  %v1621_v8 = vadd.f32 1.0, %v4268_v23  ;;  %3865 = vmatprep.mubr.msk.bf16.mxu1 %vm1809_vm2, %v1778_v45 }
 0x1a6   : > { %v1744_v37 = vmul.f32 %v4270_v4, %v5187_v60 }
 0x1a7   : > { %v4272_v10 = vpop.eup %4271  ;;  %4289 = vrcp.f32 %v1621_v8 }
 0x1a8   : > { %v4274_v48 = vpop.eup %4273  ;;  %v1745_v54 = vmul.f32 %v4272_v10, %v5205_v26  ;;  %4291 = vrcp.f32 %v1618_v63 }
 0x1a9   : > { %v4276_v28 = vpop.eup %4275  ;;  %v1619_v53 = vadd.f32 1.0, %v4274_v48 }
 0x1aa   : > { %v4278_v62 = vpop.eup %4277  ;;  %v1781_v52 = vpack.c.bf16 %v1745_v54, %v1744_v37  ;;  %v1624_v61 = vadd.f32 1.0, %v4276_v28 }
 0x1ab   : > { %v4280_v29 = vpop.eup %4279  ;;  %4293 = vrcp.f32 %v1619_v53  ;;  %v1622_v5 = vadd.f32 1.0, %v4278_v62  ;;  %3866 = vmatmul.mubr.msk.bf16.gmra.mrb[48].mxu1 %vm1809_vm2, %v1779_v31 }
 0x1ac   : > { %v4282_v49 = vpop.eup %4281  ;;  %4295 = vrcp.f32 %v1624_v61  ;;  %v1625_v12 = vadd.f32 1.0, %v4280_v29 }
 0x1ad   : > { %v4284_v6 = vpop.eup %4283  ;;  %4297 = vrcp.f32 %v1622_v5  ;;  %v1742_v11 = vmul.f32 %v4282_v49, %v5202_v59 }
 0x1ae   : > { %v4286_v44 = vpop.eup %4285  ;;  %4299 = vrcp.f32 %v1625_v12  ;;  %v1623_v60 = vadd.f32 1.0, %v4284_v6 }
 0x1af   : > { %v4288_v26 = vpop.eup %4287  ;;  %v1743_v3 = vmul.f32 %v4286_v44, %v5224_v7 }
 0x1b0   : > { %4301 = vrcp.f32 %v1623_v60  ;;  %v1748_v9 = vmul.f32 %v4288_v26, %v5227_v56 }
 0x1b1   : > { %v4290_v58 = vpop.eup %4289  ;;  %v1780_v14 = vpack.c.bf16 %v1743_v3, %v1742_v11 }
 0x1b2   : > { %v1749_v21 = vmul.f32 %v4290_v58, %v5244_v19  ;;  %v4292_v16 = vpop.eup %4291 }
 0x1b3   : > { %3869 = vmatprep.mubr.msk.bf16.mxu1 %vm1809_vm2, %v1780_v14  ;;  %v1746_v50 = vmul.f32 %v4292_v16, %v5237_v42 }
 0x1b4   : > { %v1783_v20 = vpack.c.bf16 %v1749_v21, %v1748_v9  ;;  %3870 = vmatmul.mubr.msk.bf16.gmra.mrb[52].mxu1 %vm1809_vm2, %v1781_v52 }
 0x1b5   : > { %v4294_v22 = vpop.eup %4293 }
 0x1b6   : > { %v4296_v25 = vpop.eup %4295  ;;  %v1747_v59 = vmul.f32 %v4294_v22, %v5250_v57  ;;  %v5310_v57 = vld [vmem:[%s6120_s7] ss:$0 sm:$0xff] }
 0x1b7   : > { %v4298_v7 = vpop.eup %4297  ;;  %v1752_v55 = vmul.f32 %v4296_v25, %v5253_v35 }
 0x1b8   : > { %v4300_v30 = vpop.eup %4299  ;;  %v1782_v32 = vpack.c.bf16 %v1747_v59, %v1746_v50  ;;  %v1750_v43 = vmul.f32 %v4298_v7, %v5260_v24 }
 0x1b9   : > { %v1753_v56 = vmul.f32 %v4300_v30, %v5266_v0 }
 0x1ba   : > { %v4302_v19 = vpop.eup %4301  ;;  %3873 = vmatprep.mubr.msk.bf16.mxu1 %vm1809_vm2, %v1782_v32 }
 0x1bb   : > { %v1785_v36 = vpack.c.bf16 %v1753_v56, %v1752_v55  ;;  %v1751_v1 = vmul.f32 %v4302_v19, %v5278_v17 }
 0x1bc   : > { %3874 = vmatmul.mubr.msk.bf16.gmra.mrb[56].mxu1 %vm1809_vm2, %v1783_v20 }
 0x1bd   : > { %v1784_v42 = vpack.c.bf16 %v1751_v1, %v1750_v43 }
 0x1bf   : > { %3877 = vmatprep.mubr.msk.bf16.mxu1 %vm1809_vm2, %v1784_v42 }
 0x1c4   : > { %3878 = vmatmul.mubr.msk.bf16.gmra.mrb[60].mxu1 %vm1809_vm2, %v1785_v36 }
 0x214   : > { %v3819_v35 = vpop.f32.mrb[0].mxu1 }
 0x215   : > { %v5313_v0 = vadd.f32 %v3819_v35, %v5310_v57  ;;  %v1940_v24 = vpop.f32.mrb[1].mxu1 }
 0x216   : > { %v5316_v13 = vadd.f32 %v5310_v57, %v1940_v24  ;;  %v3820_v17 = vpop.f32.mrb[2].mxu1 }
 0x217   : > { %v2197_v34 = vsub.f32 0.0, %v5313_v0  ;;  %v5320_v27 = vadd.f32 %v3820_v17, %v5310_v57  ;;  %v1943_v39 = vpop.f32.mrb[3].mxu1 }
 0x218   : > { %v2195_v2 = vsub.f32 0.0, %v5316_v13  ;;  %v5324_v40 = vadd.f32 %v5310_v57, %v1943_v39 }
 0x219   : > { %v2263_v15 = vmul.f32 1.442695, %v2197_v34  ;;  %v2198_v38 = vsub.f32 0.0, %v5320_v27 }
 0x21a   : > { %v2259_v18 = vmul.f32 1.442695, %v2195_v2  ;;  %v2196_v33 = vsub.f32 0.0, %v5324_v40 }
 0x21b   : > { %4303 = vpow2.f32 %v2263_v15  ;;  %v2265_v41 = vmul.f32 1.442695, %v2198_v38 }
 0x21c   : > { %4305 = vpow2.f32 %v2259_v18  ;;  %v2261_v31 = vmul.f32 1.442695, %v2196_v33  ;;  %v3823_v51 = vpop.f32.mrb[4].mxu1 }
 0x21d   : > { %4307 = vpow2.f32 %v2265_v41  ;;  %v5329_v46 = vadd.f32 %v3823_v51, %v5310_v57  ;;  %v1956_v45 = vpop.f32.mrb[5].mxu1 }
 0x21e   : > { %4309 = vpow2.f32 %v2261_v31  ;;  %v5332_v47 = vadd.f32 %v5310_v57, %v1956_v45  ;;  %v3824_v23 = vpop.f32.mrb[6].mxu1 }
 0x21f   : > { %v2201_v4 = vsub.f32 0.0, %v5329_v46  ;;  %v5336_v63 = vadd.f32 %v3824_v23, %v5310_v57  ;;  %v1959_v8 = vpop.f32.mrb[7].mxu1 }
 0x220   : > { %v2199_v10 = vsub.f32 0.0, %v5332_v47  ;;  %v5340_v48 = vadd.f32 %v5310_v57, %v1959_v8 }
 0x221   : > { %v2271_v37 = vmul.f32 1.442695, %v2201_v4  ;;  %v2202_v54 = vsub.f32 0.0, %v5336_v63 }
 0x222   : > { %v2267_v28 = vmul.f32 1.442695, %v2199_v10  ;;  %v2200_v53 = vsub.f32 0.0, %v5340_v48 }
 0x223   : > { %4311 = vpow2.f32 %v2271_v37  ;;  %v2273_v62 = vmul.f32 1.442695, %v2202_v54 }
 0x224   : > { %4313 = vpow2.f32 %v2267_v28  ;;  %v2269_v52 = vmul.f32 1.442695, %v2200_v53  ;;  %v3827_v61 = vpop.f32.mrb[8].mxu1 }
 0x225   : > { %v4304_v29 = vpop.eup %4303  ;;  %4315 = vpow2.f32 %v2273_v62  ;;  %v5345_v5 = vadd.f32 %v3827_v61, %v5310_v57  ;;  %v1972_v49 = vpop.f32.mrb[9].mxu1 }
 0x226   : > { %v4306_v12 = vpop.eup %4305  ;;  %v2389_v6 = vadd.f32 1.0, %v4304_v29  ;;  %4317 = vpow2.f32 %v2269_v52  ;;  %v5348_v44 = vadd.f32 %v5310_v57, %v1972_v49  ;;  %v3828_v60 = vpop.f32.mrb[10].mxu1 }
 0x227   : > { %v4308_v26 = vpop.eup %4307  ;;  %v2387_v11 = vadd.f32 1.0, %v4306_v12  ;;  %v2205_v3 = vsub.f32 0.0, %v5345_v5  ;;  %v5352_v58 = vadd.f32 %v3828_v60, %v5310_v57  ;;  %v1975_v14 = vpop.f32.mrb[11].mxu1 }
 0x228   : > { %v4310_v9 = vpop.eup %4309  ;;  %4319 = vrcp.f32 %v2389_v6  ;;  %v2390_v21 = vadd.f32 1.0, %v4308_v26  ;;  %v2203_v16 = vsub.f32 0.0, %v5348_v44  ;;  %v5356_v20 = vadd.f32 %v5310_v57, %v1975_v14 }
 0x229   : > { %4321 = vrcp.f32 %v2387_v11  ;;  %v2388_v22 = vadd.f32 1.0, %v4310_v9  ;;  %v2279_v25 = vmul.f32 1.442695, %v2205_v3  ;;  %v2206_v50 = vsub.f32 0.0, %v5352_v58 }
 0x22a   : > { %4323 = vrcp.f32 %v2390_v21  ;;  %v2275_v59 = vmul.f32 1.442695, %v2203_v16  ;;  %v2204_v7 = vsub.f32 0.0, %v5356_v20 }
 0x22b   : > { %4325 = vrcp.f32 %v2388_v22  ;;  %v2281_v30 = vmul.f32 1.442695, %v2206_v50 }
 0x22c   : > { %4327 = vpow2.f32 %v2279_v25  ;;  %v2277_v32 = vmul.f32 1.442695, %v2204_v7  ;;  %v3831_v55 = vpop.f32.mrb[12].mxu1 }
 0x22d   : > { %v4312_v56 = vpop.eup %4311  ;;  %4329 = vpow2.f32 %v2275_v59  ;;  %v5361_v19 = vadd.f32 %v3831_v55, %v5310_v57  ;;  %v1988_v43 = vpop.f32.mrb[13].mxu1 }
 0x22e   : > { %v4314_v36 = vpop.eup %4313  ;;  %v2393_v1 = vadd.f32 1.0, %v4312_v56  ;;  %4331 = vpow2.f32 %v2281_v30  ;;  %v5364_v42 = vadd.f32 %v5310_v57, %v1988_v43  ;;  %v3832_v35 = vpop.f32.mrb[14].mxu1 }
 0x22f   : > { %v4316_v24 = vpop.eup %4315  ;;  %v2391_v17 = vadd.f32 1.0, %v4314_v36  ;;  %4333 = vpow2.f32 %v2277_v32  ;;  %v2209_v34 = vsub.f32 0.0, %v5361_v19  ;;  %v5368_v39 = vadd.f32 %v3832_v35, %v5310_v57  ;;  %v1991_v2 = vpop.f32.mrb[15].mxu1 }
 0x230   : > { %v4318_v15 = vpop.eup %4317  ;;  %4335 = vrcp.f32 %v2393_v1  ;;  %v2394_v38 = vadd.f32 1.0, %v4316_v24  ;;  %v2207_v18 = vsub.f32 0.0, %v5364_v42  ;;  %v5372_v33 = vadd.f32 %v5310_v57, %v1991_v2 }
 0x231   : > { %4337 = vrcp.f32 %v2391_v17  ;;  %v2392_v41 = vadd.f32 1.0, %v4318_v15  ;;  %v2287_v31 = vmul.f32 1.442695, %v2209_v34  ;;  %v2210_v51 = vsub.f32 0.0, %v5368_v39 }
 0x232   : > { %v4320_v45 = vpop.eup %4319  ;;  %4339 = vrcp.f32 %v2394_v38  ;;  %v2283_v23 = vmul.f32 1.442695, %v2207_v18  ;;  %v2208_v4 = vsub.f32 0.0, %v5372_v33 }
 0x233   : > { %v4322_v8 = vpop.eup %4321  ;;  %v5377_v10 = vmul.f32 %v4320_v45, %v5313_v0  ;;  %4341 = vrcp.f32 %v2392_v41  ;;  %v2289_v37 = vmul.f32 1.442695, %v2210_v51 }
 0x234   : > { %v4324_v54 = vpop.eup %4323  ;;  %v5380_v28 = vmul.f32 %v4322_v8, %v5316_v13  ;;  %4343 = vpow2.f32 %v2287_v31  ;;  %v2285_v53 = vmul.f32 1.442695, %v2208_v4 }
 0x235   : > { %v4326_v62 = vpop.eup %4325  ;;  %2581 = vst.msk [vmem:[%s4743_s18 + $0x10] sm:$0xff] %vm1809_vm2, %v5377_v10  ;;  %v5386_v52 = vmul.f32 %v4324_v54, %v5320_v27  ;;  %4345 = vpow2.f32 %v2283_v23  ;;  %v3835_v0 = vpop.f32.mrb[16].mxu1 }
 0x236   : > { %v4328_v61 = vpop.eup %4327  ;;  %2579 = vst.msk [vmem:[%s4743_s18] sm:$0xff] %vm1809_vm2, %v5380_v28  ;;  %v5392_v29 = vmul.f32 %v4326_v62, %v5324_v40  ;;  %4347 = vpow2.f32 %v2289_v37  ;;  %v5395_v13 = vadd.f32 %v3835_v0, %v5310_v57  ;;  %v2004_v49 = vpop.f32.mrb[17].mxu1 }
 0x237   : > { %v4330_v12 = vpop.eup %4329  ;;  %2582 = vst.msk [vmem:[%s4743_s18 + $0x18] sm:$0xff] %vm1809_vm2, %v5386_v52  ;;  %v2662_v27 = vpack.c.bf16 %v5386_v52, %v5377_v10  ;;  %v2397_v6 = vadd.f32 1.0, %v4328_v61  ;;  %4349 = vpow2.f32 %v2285_v53  ;;  %v5403_v60 = vadd.f32 %v5310_v57, %v2004_v49  ;;  %v3836_v26 = vpop.f32.mrb[18].mxu1 }
 0x238   : > { %v4332_v40 = vpop.eup %4331  ;;  %2580 = vst.msk [vmem:[%s4743_s18 + $0x8] sm:$0xff] %vm1809_vm2, %v5392_v29  ;;  %v2661_v11 = vpack.c.bf16 %v5392_v29, %v5380_v28  ;;  %v2395_v3 = vadd.f32 1.0, %v4330_v12  ;;  %v2213_v14 = vsub.f32 0.0, %v5395_v13  ;;  %v5412_v9 = vadd.f32 %v3836_v26, %v5310_v57  ;;  %v2007_v21 = vpop.f32.mrb[19].mxu1 }
 0x239   : > { %v4334_v16 = vpop.eup %4333  ;;  %4351 = vrcp.f32 %v2397_v6  ;;  %v2398_v22 = vadd.f32 1.0, %v4332_v40  ;;  %v2211_v25 = vsub.f32 0.0, %v5403_v60  ;;  %v5416_v50 = vadd.f32 %v5310_v57, %v2007_v21 }
 0x23a   : > { %v4336_v59 = vpop.eup %4335  ;;  %4353 = vrcp.f32 %v2395_v3  ;;  %v2396_v7 = vadd.f32 1.0, %v4334_v16  ;;  %v2295_v30 = vmul.f32 1.442695, %v2213_v14  ;;  %v2214_v32 = vsub.f32 0.0, %v5412_v9 }
 0x23b   : > { %v4338_v55 = vpop.eup %4337  ;;  %v5420_v56 = vmul.f32 %v4336_v59, %v5329_v46  ;;  %4355 = vrcp.f32 %v2398_v22  ;;  %v2291_v43 = vmul.f32 1.442695, %v2211_v25  ;;  %v2212_v36 = vsub.f32 0.0, %v5416_v50  ;;  %v4031_v59 = vld [vmem:[%s4745_s23 + $0x4] ss:$16 sps:$4 sm:$0xff]  }
 0x23c   : > { %v4340_v1 = vpop.eup %4339  ;;  %v5424_v35 = vmul.f32 %v4338_v55, %v5332_v47  ;;  %4357 = vrcp.f32 %v2396_v7  ;;  %v2297_v24 = vmul.f32 1.442695, %v2214_v32  ;;  %2785 = vmatprep.mubr.bf16.mxu1 %v4031_v59 }
 0x23d   : > { %v4342_v17 = vpop.eup %4341  ;;  %2585 = vst.msk [vmem:[%s4743_s18 + $0x30] sm:$0xff] %vm1809_vm2, %v5420_v56  ;;  %v5430_v34 = vmul.f32 %v4340_v1, %v5336_v63  ;;  %4359 = vpow2.f32 %v2295_v30  ;;  %v2293_v46 = vmul.f32 1.442695, %v2212_v36 }
 0x23e   : > { %v4344_v2 = vpop.eup %4343  ;;  %2583 = vst.msk [vmem:[%s4743_s18 + $0x20] sm:$0xff] %vm1809_vm2, %v5424_v35  ;;  %v5436_v15 = vmul.f32 %v4342_v17, %v5340_v48  ;;  %4361 = vpow2.f32 %v2291_v43 }
 0x23f   : > { %v4346_v47 = vpop.eup %4345  ;;  %2586 = vst.msk [vmem:[%s4743_s18 + $0x38] sm:$0xff] %vm1809_vm2, %v5430_v34  ;;  %v2664_v38 = vpack.c.bf16 %v5430_v34, %v5420_v56  ;;  %v2401_v18 = vadd.f32 1.0, %v4344_v2  ;;  %4363 = vpow2.f32 %v2297_v24 }
 0x240   : > { %v4348_v63 = vpop.eup %4347  ;;  %2584 = vst.msk [vmem:[%s4743_s18 + $0x28] sm:$0xff] %vm1809_vm2, %v5436_v15  ;;  %v2663_v41 = vpack.c.bf16 %v5436_v15, %v5424_v35  ;;  %v2399_v31 = vadd.f32 1.0, %v4346_v47  ;;  %4365 = vpow2.f32 %v2293_v46 }
 0x241   : > { %v4350_v48 = vpop.eup %4349  ;;  %4367 = vrcp.f32 %v2401_v18  ;;  %v2402_v51 = vadd.f32 1.0, %v4348_v63 }
 0x242   : > { %4369 = vrcp.f32 %v2399_v31  ;;  %v2400_v45 = vadd.f32 1.0, %v4350_v48  ;;  %v4034_v48 = vld [vmem:[%s4745_s23 + $0xc] ss:$16 sps:$4 sm:$0xff]  }
 0x243   : > { %v4352_v23 = vpop.eup %4351  ;;  %4371 = vrcp.f32 %v2402_v51  ;;  %v3839_v4 = vpop.f32.mrb[20].mxu1  ;;  %2842 = vmatprep.mubr.bf16.mxu0 %v4034_v48 }
 0x244   : > { %v4354_v8 = vpop.eup %4353  ;;  %v5449_v37 = vmul.f32 %v4352_v23, %v5345_v5  ;;  %4373 = vrcp.f32 %v2400_v45  ;;  %v5452_v54 = vadd.f32 %v3839_v4, %v5310_v57  ;;  %v2020_v53 = vpop.f32.mrb[21].mxu1 }
 0x245   : > { %v4356_v62 = vpop.eup %4355  ;;  %v5455_v0 = vmul.f32 %v4354_v8, %v5348_v44  ;;  %v5458_v61 = vadd.f32 %v5310_v57, %v2020_v53  ;;  %v3840_v49 = vpop.f32.mrb[22].mxu1 }
 0x246   : > { %v4358_v12 = vpop.eup %4357  ;;  %2589 = vst.msk [vmem:[%s4743_s18 + $0x50] sm:$0xff] %vm1809_vm2, %v5449_v37  ;;  %v5464_v5 = vmul.f32 %v4356_v62, %v5352_v58  ;;  %v2217_v6 = vsub.f32 0.0, %v5452_v54  ;;  %v5468_v26 = vadd.f32 %v3840_v49, %v5310_v57  ;;  %v2023_v44 = vpop.f32.mrb[23].mxu1 }
 0x247   : > { %v4360_v40 = vpop.eup %4359  ;;  %2587 = vst.msk [vmem:[%s4743_s18 + $0x40] sm:$0xff] %vm1809_vm2, %v5455_v0  ;;  %v5474_v3 = vmul.f32 %v4358_v12, %v5356_v20  ;;  %v2215_v14 = vsub.f32 0.0, %v5458_v61  ;;  %v5478_v21 = vadd.f32 %v5310_v57, %v2023_v44 }
 0x248   : > { %v4362_v58 = vpop.eup %4361  ;;  %2590 = vst.msk [vmem:[%s4743_s18 + $0x58] sm:$0xff] %vm1809_vm2, %v5464_v5  ;;  %v2666_v16 = vpack.c.bf16 %v5464_v5, %v5449_v37  ;;  %v2405_v22 = vadd.f32 1.0, %v4360_v40  ;;  %v2218_v25 = vsub.f32 0.0, %v5468_v26  ;;  %v2303_v36 = vmul.f32 1.442695, %v2217_v6 }
 0x249   : > { %v4364_v7 = vpop.eup %4363  ;;  %2588 = vst.msk [vmem:[%s4743_s18 + $0x48] sm:$0xff] %vm1809_vm2, %v5474_v3  ;;  %v2665_v20 = vpack.c.bf16 %v5474_v3, %v5455_v0  ;;  %v2403_v30 = vadd.f32 1.0, %v4362_v58  ;;  %v2216_v32 = vsub.f32 0.0, %v5478_v21  ;;  %v2299_v17 = vmul.f32 1.442695, %v2215_v14 }
 0x24a   : > { %v4366_v55 = vpop.eup %4365  ;;  %4375 = vrcp.f32 %v2405_v22  ;;  %v2406_v43 = vadd.f32 1.0, %v4364_v7  ;;  %v2305_v18 = vmul.f32 1.442695, %v2218_v25 }
 0x24b   : > { %v4368_v1 = vpop.eup %4367  ;;  %4377 = vrcp.f32 %v2403_v30  ;;  %v2404_v24 = vadd.f32 1.0, %v4366_v55  ;;  %v3843_v46 = vpop.f32.mrb[24].mxu1  ;;  %v2301_v23 = vmul.f32 1.442695, %v2216_v32 }
 0x24c   : > { %v4370_v2 = vpop.eup %4369  ;;  %v5494_v47 = vmul.f32 %v4368_v1, %v5361_v19  ;;  %4379 = vrcp.f32 %v2406_v43  ;;  %v5497_v63 = vadd.f32 %v3843_v46, %v5310_v57  ;;  %v2036_v31 = vpop.f32.mrb[25].mxu1 }
 0x24d   : > { %v4372_v51 = vpop.eup %4371  ;;  %v5501_v45 = vmul.f32 %v4370_v2, %v5364_v42  ;;  %4381 = vrcp.f32 %v2404_v24  ;;  %v5504_v4 = vadd.f32 %v5310_v57, %v2036_v31  ;;  %v3844_v19 = vpop.f32.mrb[26].mxu1 }
 0x24e   : > { %v4374_v8 = vpop.eup %4373  ;;  %2593 = vst.msk [vmem:[%s4743_s18 + $0x70] sm:$0xff] %vm1809_vm2, %v5494_v47  ;;  %v5510_v53 = vmul.f32 %v4372_v51, %v5368_v39  ;;  %4383 = vpow2.f32 %v2303_v36  ;;  %v2221_v62 = vsub.f32 0.0, %v5497_v63  ;;  %v5514_v42 = vadd.f32 %v3844_v19, %v5310_v57  ;;  %v2039_v49 = vpop.f32.mrb[27].mxu1 }
 0x24f   : > { %2591 = vst.msk [vmem:[%s4743_s18 + $0x60] sm:$0xff] %vm1809_vm2, %v5501_v45  ;;  %v5520_v12 = vmul.f32 %v4374_v8, %v5372_v33  ;;  %4385 = vpow2.f32 %v2299_v17  ;;  %v2219_v6 = vsub.f32 0.0, %v5504_v4  ;;  %v5524_v39 = vadd.f32 %v5310_v57, %v2039_v49 }
 0x250   : > { %2594 = vst.msk [vmem:[%s4743_s18 + $0x78] sm:$0xff] %vm1809_vm2, %v5510_v53  ;;  %v2668_v44 = vpack.c.bf16 %v5510_v53, %v5494_v47  ;;  %4387 = vpow2.f32 %v2305_v18  ;;  %v2311_v40 = vmul.f32 1.442695, %v2221_v62  ;;  %v2222_v14 = vsub.f32 0.0, %v5514_v42 }
 0x251   : > { %2592 = vst.msk [vmem:[%s4743_s18 + $0x68] sm:$0xff] %vm1809_vm2, %v5520_v12  ;;  %v2667_v33 = vpack.c.bf16 %v5520_v12, %v5501_v45  ;;  %4389 = vpow2.f32 %v2301_v23  ;;  %v2307_v58 = vmul.f32 1.442695, %v2219_v6  ;;  %v2220_v22 = vsub.f32 0.0, %v5524_v39 }
 0x252   : > { %4391 = vpow2.f32 %v2311_v40  ;;  %v2313_v25 = vmul.f32 1.442695, %v2222_v14 }
 0x253   : > { %4393 = vpow2.f32 %v2307_v58  ;;  %v2309_v59 = vmul.f32 1.442695, %v2220_v22 }
 0x254   : > { %v4376_v7 = vpop.eup %4375  ;;  %4395 = vpow2.f32 %v2313_v25  ;;  %v3847_v30 = vpop.f32.mrb[28].mxu1 }
 0x255   : > { %v4378_v32 = vpop.eup %4377  ;;  %v2533_v55 = vmul.f32 %v4376_v7, %v5395_v13  ;;  %4397 = vpow2.f32 %v2309_v59  ;;  %v5540_v43 = vadd.f32 %v3847_v30, %v5310_v57  ;;  %v2052_v36 = vpop.f32.mrb[29].mxu1 }
 0x256   : > { %v4380_v1 = vpop.eup %4379  ;;  %v2531_v24 = vmul.f32 %v4378_v32, %v5403_v60  ;;  %v5544_v17 = vadd.f32 %v5310_v57, %v2052_v36  ;;  %v3848_v46 = vpop.f32.mrb[30].mxu1 }
 0x257   : > { %v4382_v2 = vpop.eup %4381  ;;  %2597 = vst.msk [vmem:[%s4743_s18 + $0x90] sm:$0xff] %vm1809_vm2, %v2533_v55  ;;  %v2534_v18 = vmul.f32 %v4380_v1, %v5412_v9  ;;  %v2055_v13 = vpop.f32.mrb[31].mxu1  ;;  %v2225_v51 = vsub.f32 0.0, %v5540_v43  ;;  %v5554_v60 = vadd.f32 %v3848_v46, %v5310_v57 }
 0x258   : > { %v4384_v31 = vpop.eup %4383  ;;  %2595 = vst.msk [vmem:[%s4743_s18 + $0x80] sm:$0xff] %vm1809_vm2, %v2531_v24  ;;  %v2532_v48 = vmul.f32 %v4382_v2, %v5416_v50  ;;  %v2223_v8 = vsub.f32 0.0, %v5544_v17  ;;  %v5562_v6 = vadd.f32 %v5310_v57, %v2055_v13 }
 0x259   : > { %v4386_v23 = vpop.eup %4385  ;;  %2598 = vst.msk [vmem:[%s4743_s18 + $0x98] sm:$0xff] %vm1809_vm2, %v2534_v18  ;;  %v2409_v19 = vadd.f32 1.0, %v4384_v31  ;;  %v2670_v62 = vpack.c.bf16 %v2534_v18, %v2533_v55  ;;  %v2319_v25 = vmul.f32 1.442695, %v2225_v51  ;;  %v2226_v59 = vsub.f32 0.0, %v5554_v60 }
 0x25a   : > { %v4388_v49 = vpop.eup %4387  ;;  %2596 = vst.msk [vmem:[%s4743_s18 + $0x88] sm:$0xff] %vm1809_vm2, %v2532_v48  ;;  %v2407_v9 = vadd.f32 1.0, %v4386_v23  ;;  %v2669_v50 = vpack.c.bf16 %v2532_v48, %v2531_v24  ;;  %v2315_v55 = vmul.f32 1.442695, %v2223_v8  ;;  %v2224_v2 = vsub.f32 0.0, %v5562_v6 }
 0x25b   : > { %v4390_v40 = vpop.eup %4389  ;;  %4399 = vrcp.f32 %v2409_v19  ;;  %v2410_v14 = vadd.f32 1.0, %v4388_v49  ;;  %v2321_v8 = vmul.f32 1.442695, %v2226_v59 }
 0x25c   : > { %v4392_v58 = vpop.eup %4391  ;;  %4401 = vrcp.f32 %v2407_v9  ;;  %v2408_v22 = vadd.f32 1.0, %v4390_v40  ;;  %v3851_v7 = vpop.f32.mrb[32].mxu1  ;;  %3641 = vmatprep.subr.bf16.mxu1 %v2669_v50  ;;  %v2317_v49 = vmul.f32 1.442695, %v2224_v2 }
 0x25d   : > { %v4394_v30 = vpop.eup %4393  ;;  %4403 = vrcp.f32 %v2410_v14  ;;  %v2413_v32 = vadd.f32 1.0, %v4392_v58  ;;  %v5566_v36 = vadd.f32 %v3851_v7, %v5310_v57  ;;  %v2068_v1 = vpop.f32.mrb[33].mxu1  ;;  %3642 = vmatpush3.bf16.msra.mxu1 %v2661_v11 }
 0x25e   : > { %v4396_v24 = vpop.eup %4395  ;;  %4405 = vrcp.f32 %v2408_v22  ;;  %v2411_v46 = vadd.f32 1.0, %v4394_v30  ;;  %v5573_v18 = vadd.f32 %v5310_v57, %v2068_v1  ;;  %v3852_v13 = vpop.f32.mrb[34].mxu1  ;;  %3643 = vmatprep.subr.bf16.mxu1 %v2670_v62 }
 0x25f   : > { %v4398_v31 = vpop.eup %4397  ;;  %4407 = vrcp.f32 %v2413_v32  ;;  %v2414_v48 = vadd.f32 1.0, %v4396_v24  ;;  %v2229_v51 = vsub.f32 0.0, %v5566_v36  ;;  %v5577_v23 = vadd.f32 %v3852_v13, %v5310_v57  ;;  %v2071_v28 = vpop.f32.mrb[35].mxu1 }
 0x260   : > { %4409 = vrcp.f32 %v2411_v46  ;;  %v2412_v29 = vadd.f32 1.0, %v4398_v31  ;;  %v2227_v11 = vsub.f32 0.0, %v5573_v18  ;;  %v5581_v19 = vadd.f32 %v5310_v57, %v2071_v28 }
 0x261   : > { %4411 = vrcp.f32 %v2414_v48  ;;  %v2230_v62 = vsub.f32 0.0, %v5577_v23  ;;  %3644 = vmatpush3.bf16.msra.mxu1 %v2662_v27  ;;  %v2327_v50 = vmul.f32 1.442695, %v2229_v51 }
 0x262   : > { %4413 = vrcp.f32 %v2412_v29  ;;  %v2228_v9 = vsub.f32 0.0, %v5581_v19  ;;  %v2323_v40 = vmul.f32 1.442695, %v2227_v11 }
 0x263   : > { %4415 = vpow2.f32 %v2319_v25  ;;  %v2329_v22 = vmul.f32 1.442695, %v2230_v62 }
 0x264   : > { %4417 = vpow2.f32 %v2315_v55  ;;  %v3855_v14 = vpop.f32.mrb[36].mxu1  ;;  %v2325_v52 = vmul.f32 1.442695, %v2228_v9 }
 0x265   : > { %v4400_v58 = vpop.eup %4399  ;;  %4419 = vpow2.f32 %v2321_v8  ;;  %v5589_v59 = vadd.f32 %v3855_v14, %v5310_v57  ;;  %v2084_v7 = vpop.f32.mrb[37].mxu1 }
 0x266   : > { %v4402_v30 = vpop.eup %4401  ;;  %v2537_v10 = vmul.f32 %v4400_v58, %v5452_v54  ;;  %4421 = vpow2.f32 %v2317_v49  ;;  %v5593_v27 = vadd.f32 %v5310_v57, %v2084_v7  ;;  %v3856_v25 = vpop.f32.mrb[38].mxu1 }
 0x267   : > { %v4404_v32 = vpop.eup %4403  ;;  %v2535_v55 = vmul.f32 %v4402_v30, %v5458_v61  ;;  %4423 = vpow2.f32 %v2327_v50  ;;  %v2233_v1 = vsub.f32 0.0, %v5589_v59  ;;  %v5598_v24 = vadd.f32 %v3856_v25, %v5310_v57  ;;  %v2087_v46 = vpop.f32.mrb[39].mxu1 }
 0x268   : > { %v4406_v2 = vpop.eup %4405  ;;  %2601 = vst.msk [vmem:[%s4743_s18 + $0xb0] sm:$0xff] %vm1809_vm2, %v2537_v10  ;;  %v2538_v54 = vmul.f32 %v4404_v32, %v5468_v26  ;;  %4425 = vpow2.f32 %v2323_v40  ;;  %v2231_v13 = vsub.f32 0.0, %v5593_v27  ;;  %v5605_v31 = vadd.f32 %v5310_v57, %v2087_v46 }
 0x269   : > { %v4408_v61 = vpop.eup %4407  ;;  %2599 = vst.msk [vmem:[%s4743_s18 + $0xa0] sm:$0xff] %vm1809_vm2, %v2535_v55  ;;  %v2536_v48 = vmul.f32 %v4406_v2, %v5478_v21  ;;  %4427 = vpow2.f32 %v2329_v22  ;;  %v2335_v51 = vmul.f32 1.442695, %v2233_v1  ;;  %v2234_v28 = vsub.f32 0.0, %v5598_v24 }
 0x26a   : > { %v4410_v29 = vpop.eup %4409  ;;  %2602 = vst.msk [vmem:[%s4743_s18 + $0xb8] sm:$0xff] %vm1809_vm2, %v2538_v54  ;;  %v5614_v26 = vmul.f32 %v4408_v61, %v5497_v63  ;;  %4429 = vpow2.f32 %v2325_v52  ;;  %v2331_v11 = vmul.f32 1.442695, %v2231_v13  ;;  %v2232_v8 = vsub.f32 0.0, %v5605_v31 }
 0x26b   : > { %v4412_v62 = vpop.eup %4411  ;;  %2600 = vst.msk [vmem:[%s4743_s18 + $0xa8] sm:$0xff] %vm1809_vm2, %v2536_v48  ;;  %v2539_v21 = vmul.f32 %v4410_v29, %v5504_v4  ;;  %4431 = vpow2.f32 %v2335_v51  ;;  %v2337_v49 = vmul.f32 1.442695, %v2234_v28  ;;  %v2671_v9 = vpack.c.bf16 %v2536_v48, %v2535_v55 }
 0x26c   : > { %v4414_v50 = vpop.eup %4413  ;;  %2605 = vst.msk [vmem:[%s4743_s18 + $0xd0] sm:$0xff] %vm1809_vm2, %v5614_v26  ;;  %v2542_v63 = vmul.f32 %v4412_v62, %v5514_v42  ;;  %4433 = vpow2.f32 %v2331_v11  ;;  %v2333_v40 = vmul.f32 1.442695, %v2232_v8  ;;  %v2672_v14 = vpack.c.bf16 %v2538_v54, %v2537_v10 }
 0x26d   : > { %v4416_v58 = vpop.eup %4415  ;;  %2603 = vst.msk [vmem:[%s4743_s18 + $0xc0] sm:$0xff] %vm1809_vm2, %v2539_v21  ;;  %v2540_v22 = vmul.f32 %v4414_v50, %v5524_v39  ;;  %4435 = vpow2.f32 %v2337_v49  ;;  %3645 = vmatprep.subr.bf16.mxu1 %v2671_v9 }
 0x26e   : > { %v4418_v4 = vpop.eup %4417  ;;  %2606 = vst.msk [vmem:[%s4743_s18 + $0xd8] sm:$0xff] %vm1809_vm2, %v2542_v63  ;;  %v2417_v7 = vadd.f32 1.0, %v4416_v58  ;;  %4437 = vpow2.f32 %v2333_v40  ;;  %3646 = vmatpush3.bf16.msra.mxu1 %v2663_v41  ;;  %v3859_v42 = vpop.f32.mrb[40].mxu1  ;;  %v2674_v30 = vpack.c.bf16 %v2542_v63, %v5614_v26 }
 0x26f   : > { %v4420_v10 = vpop.eup %4419  ;;  %2604 = vst.msk [vmem:[%s4743_s18 + $0xc8] sm:$0xff] %vm1809_vm2, %v2540_v22  ;;  %v2415_v52 = vadd.f32 1.0, %v4418_v4  ;;  %v5636_v39 = vadd.f32 %v3859_v42, %v5310_v57  ;;  %3647 = vmatprep.subr.bf16.mxu1 %v2672_v14  ;;  %v2100_v25 = vpop.f32.mrb[41].mxu1  ;;  %v2673_v32 = vpack.c.bf16 %v2540_v22, %v2539_v21 }
 0x270   : > { %v4422_v55 = vpop.eup %4421  ;;  %4439 = vrcp.f32 %v2417_v7  ;;  %v2418_v1 = vadd.f32 1.0, %v4420_v10  ;;  %v5639_v46 = vadd.f32 %v5310_v57, %v2100_v25  ;;  %v3860_v35 = vpop.f32.mrb[42].mxu1 }
 0x271   : > { %v4424_v15 = vpop.eup %4423  ;;  %4441 = vrcp.f32 %v2415_v52  ;;  %v2416_v41 = vadd.f32 1.0, %v4422_v55  ;;  %v2103_v2 = vpop.f32.mrb[43].mxu1  ;;  %v2237_v61 = vsub.f32 0.0, %v5636_v39  ;;  %v5643_v48 = vadd.f32 %v3860_v35, %v5310_v57 }
 0x272   : > { %v4426_v54 = vpop.eup %4425  ;;  %4443 = vrcp.f32 %v2418_v1  ;;  %v2421_v13 = vadd.f32 1.0, %v4424_v15  ;;  %3648 = vmatpush3.bf16.msra.mxu1 %v2664_v38  ;;  %v5649_v29 = vadd.f32 %v5310_v57, %v2103_v2  ;;  %v2235_v8 = vsub.f32 0.0, %v5639_v46 }
 0x273   : > { %v4428_v51 = vpop.eup %4427  ;;  %4445 = vrcp.f32 %v2416_v41  ;;  %v2419_v28 = vadd.f32 1.0, %v4426_v54  ;;  %3649 = vmatprep.subr.bf16.mxu1 %v2673_v32  ;;  %v2343_v56 = vmul.f32 1.442695, %v2237_v61  ;;  %v2238_v34 = vsub.f32 0.0, %v5643_v48 }
 0x274   : > { %v4430_v26 = vpop.eup %4429  ;;  %4447 = vrcp.f32 %v2421_v13  ;;  %v2422_v11 = vadd.f32 1.0, %v4428_v51  ;;  %v2236_v40 = vsub.f32 0.0, %v5649_v29  ;;  %v2339_v7 = vmul.f32 1.442695, %v2235_v8 }
 0x275   : > { %v4432_v62 = vpop.eup %4431  ;;  %4449 = vrcp.f32 %v2419_v28  ;;  %v2420_v21 = vadd.f32 1.0, %v4430_v26 }
 0x276   : > { %v4434_v49 = vpop.eup %4433  ;;  %4451 = vrcp.f32 %v2422_v11  ;;  %v2425_v9 = vadd.f32 1.0, %v4432_v62  ;;  %3650 = vmatpush3.bf16.msra.mxu1 %v2665_v20  ;;  %v3863_v38 = vpop.f32.mrb[44].mxu1  ;;  %v2341_v15 = vmul.f32 1.442695, %v2236_v40 }
 0x277   : > { %v4436_v50 = vpop.eup %4435  ;;  %4453 = vrcp.f32 %v2420_v21  ;;  %v2423_v63 = vadd.f32 1.0, %v4434_v49  ;;  %v5658_v14 = vadd.f32 %v3863_v38, %v5310_v57  ;;  %3651 = vmatprep.subr.bf16.mxu1 %v2674_v30  ;;  %v2116_v58 = vpop.f32.mrb[45].mxu1  ;;  %v2345_v30 = vmul.f32 1.442695, %v2238_v34 }
 0x278   : > { %v4438_v22 = vpop.eup %4437  ;;  %4455 = vrcp.f32 %v2425_v9  ;;  %v2426_v4 = vadd.f32 1.0, %v4436_v50  ;;  %v5661_v42 = vadd.f32 %v5310_v57, %v2116_v58  ;;  %v3864_v0 = vpop.f32.mrb[46].mxu1 }
 0x279   : > { %4457 = vrcp.f32 %v2423_v63  ;;  %v2424_v3 = vadd.f32 1.0, %v4438_v22  ;;  %v2241_v20 = vsub.f32 0.0, %v5658_v14  ;;  %v5665_v10 = vadd.f32 %v3864_v0, %v5310_v57  ;;  %v2119_v52 = vpop.f32.mrb[47].mxu1 }
 0x27a   : > { %v4440_v25 = vpop.eup %4439  ;;  %4459 = vrcp.f32 %v2426_v4  ;;  %v2239_v32 = vsub.f32 0.0, %v5661_v42  ;;  %v5669_v55 = vadd.f32 %v5310_v57, %v2119_v52  ;;  %3652 = vmatpush3.bf16.msra.mxu1 %v2666_v16 }
 0x27b   : > { %v4442_v1 = vpop.eup %4441  ;;  %v2545_v35 = vmul.f32 %v4440_v25, %v5540_v43  ;;  %4461 = vrcp.f32 %v2424_v3  ;;  %v2242_v41 = vsub.f32 0.0, %v5665_v10  ;;  %v2351_v13 = vmul.f32 1.442695, %v2241_v20 }
 0x27c   : > { %v4444_v2 = vpop.eup %4443  ;;  %v2543_v54 = vmul.f32 %v4442_v1, %v5544_v17  ;;  %4463 = vpow2.f32 %v2343_v56  ;;  %v2240_v61 = vsub.f32 0.0, %v5669_v55  ;;  %v2347_v5 = vmul.f32 1.442695, %v2239_v32 }
 0x27d   : > { %v4446_v51 = vpop.eup %4445  ;;  %2609 = vst.msk [vmem:[%s4743_s18 + $0xf0] sm:$0xff] %vm1809_vm2, %v2545_v35  ;;  %v2546_v37 = vmul.f32 %v4444_v2, %v5554_v60  ;;  %4465 = vpow2.f32 %v2339_v7  ;;  %v2353_v17 = vmul.f32 1.442695, %v2242_v41  ;;  %v4035_v41 = vld [vmem:[%s4745_s23 + $0x24] ss:$16 sps:$4 sm:$0xff]  }
 0x27e   : > { %v4448_v16 = vpop.eup %4447  ;;  %2607 = vst.msk [vmem:[%s4743_s18 + $0xe0] sm:$0xff] %vm1809_vm2, %v2543_v54  ;;  %v2544_v43 = vmul.f32 %v4446_v51, %v5562_v6  ;;  %4467 = vpow2.f32 %v2345_v30  ;;  %v2349_v28 = vmul.f32 1.442695, %v2240_v61  ;;  %v3867_v26 = vpop.f32.mrb[48].mxu1  ;;  %v4029_v30 = vld [vmem:[%s4745_s23] ss:$16 sps:$4 sm:$0xff]  }
 0x27f   : > { %v4450_v11 = vpop.eup %4449  ;;  %2610 = vst.msk [vmem:[%s4743_s18 + $0xf8] sm:$0xff] %vm1809_vm2, %v2546_v37  ;;  %v5687_v8 = vmul.f32 %v4448_v16, %v5566_v36  ;;  %4469 = vpow2.f32 %v2341_v15  ;;  %v5690_v60 = vadd.f32 %v3867_v26, %v5310_v57  ;;  %v2676_v62 = vpack.c.bf16 %v2546_v37, %v2545_v35  ;;  %v2132_v21 = vpop.f32.mrb[49].mxu1 }
 0x280   : > { %v4452_v49 = vpop.eup %4451  ;;  %2608 = vst.msk [vmem:[%s4743_s18 + $0xe8] sm:$0xff] %vm1809_vm2, %v2544_v43  ;;  %v5695_v6 = vmul.f32 %v4450_v11, %v5573_v18  ;;  %4471 = vpow2.f32 %v2351_v13  ;;  %v2675_v9 = vpack.c.bf16 %v2544_v43, %v2543_v54  ;;  %v5698_v56 = vadd.f32 %v5310_v57, %v2132_v21  ;;  %v3868_v36 = vpop.f32.mrb[50].mxu1 }
 0x281   : > { %v4454_v34 = vpop.eup %4453  ;;  %2613 = vst.msk [vmem:[%s4743_s18 + $0x110] sm:$0xff] %vm1809_vm2, %v5687_v8  ;;  %v5704_v38 = vmul.f32 %v4452_v49, %v5577_v23  ;;  %4473 = vpow2.f32 %v2347_v5  ;;  %v2245_v50 = vsub.f32 0.0, %v5690_v60  ;;  %v5708_v18 = vadd.f32 %v3868_v36, %v5310_v57  ;;  %v2135_v63 = vpop.f32.mrb[51].mxu1 }
 0x282   : > { %v4456_v40 = vpop.eup %4455  ;;  %2611 = vst.msk [vmem:[%s4743_s18 + $0x100] sm:$0xff] %vm1809_vm2, %v5695_v6  ;;  %v5714_v58 = vmul.f32 %v4454_v34, %v5581_v19  ;;  %4475 = vpow2.f32 %v2353_v17  ;;  %3653 = vmatprep.subr.bf16.mxu1 %v2675_v9  ;;  %v2243_v23 = vsub.f32 0.0, %v5698_v56 }
 0x283   : > { %v4458_v22 = vpop.eup %4457  ;;  %2614 = vst.msk [vmem:[%s4743_s18 + $0x118] sm:$0xff] %vm1809_vm2, %v5704_v38  ;;  %v2678_v57 = vpack.c.bf16 %v5704_v38, %v5687_v8  ;;  %v5723_v4 = vmul.f32 %v4456_v40, %v5589_v59  ;;  %4477 = vpow2.f32 %v2349_v28  ;;  %3654 = vmatpush3.bf16.msra.mxu1 %v2667_v33  ;;  %v2359_v19 = vmul.f32 1.442695, %v2245_v50  ;;  %v5746_v33 = vld [vmem:[%s6120_s7] ss:$0 sm:$0xff] }
 0x284   : > { %v4460_v7 = vpop.eup %4459  ;;  %2612 = vst.msk [vmem:[%s4743_s18 + $0x108] sm:$0xff] %vm1809_vm2, %v5714_v58  ;;  %v2677_v0 = vpack.c.bf16 %v5714_v58, %v5695_v6  ;;  %v5734_v3 = vmul.f32 %v4458_v22, %v5593_v27  ;;  %3655 = vmatprep.subr.bf16.mxu1 %v2676_v62  ;;  %v2355_v59 = vmul.f32 1.442695, %v2243_v23  ;;  %v2246_v20 = vsub.f32 0.0, %v5708_v18  ;;  %v4039_v23 = vld [vmem:[%s4745_s23 + $0x20] ss:$16 sps:$4 sm:$0xff]  }
 0x285   : > { %v4462_v45 = vpop.eup %4461  ;;  %2617 = vst.msk [vmem:[%s4743_s18 + $0x130] sm:$0xff] %vm1809_vm2, %v5723_v4  ;;  %v5741_v12 = vmul.f32 %v4460_v7, %v5598_v24  ;;  %4479 = vpow2.f32 %v2359_v19  ;;  %v5749_v27 = vadd.f32 %v5746_v33, %v2135_v63 }
 0x286   : > { %v4464_v52 = vpop.eup %4463  ;;  %2615 = vst.msk [vmem:[%s4743_s18 + $0x120] sm:$0xff] %vm1809_vm2, %v5734_v3  ;;  %v5755_v25 = vmul.f32 %v4462_v45, %v5605_v31  ;;  %4481 = vpow2.f32 %v2355_v59  ;;  %v2361_v24 = vmul.f32 1.442695, %v2246_v20  ;;  %v4041_v59 = vld [vmem:[%s4745_s23 + $0x44] ss:$16 sps:$4 sm:$0xff]  }
 0x287   : > { %v4466_v32 = vpop.eup %4465  ;;  %2618 = vst.msk [vmem:[%s4743_s18 + $0x138] sm:$0xff] %vm1809_vm2, %v5741_v12  ;;  %v2680_v1 = vpack.c.bf16 %v5741_v12, %v5723_v4  ;;  %v2429_v35 = vadd.f32 1.0, %v4464_v52  ;;  %3656 = vmatpush3.bf16.msra.mxu1 %v2668_v44  ;;  %v3871_v15 = vpop.f32.mrb[52].mxu1  ;;  %v2244_v47 = vsub.f32 0.0, %v5749_v27  ;;  %v4032_v12 = vld [vmem:[%s4745_s23 + $0x8] ss:$16 sps:$4 sm:$0xff]  }
 0x288   : > { %v4468_v2 = vpop.eup %4467  ;;  %2616 = vst.msk [vmem:[%s4743_s18 + $0x128] sm:$0xff] %vm1809_vm2, %v5755_v25  ;;  %v2679_v31 = vpack.c.bf16 %v5755_v25, %v5734_v3  ;;  %v2427_v54 = vadd.f32 1.0, %v4466_v32  ;;  %4483 = vpow2.f32 %v2361_v24  ;;  %v5773_v13 = vadd.f32 %v5746_v33, %v3871_v15  ;;  %v2148_v61 = vpop.f32.mrb[53].mxu1 }
 0x289   : > { %v4470_v51 = vpop.eup %4469  ;;  %4485 = vrcp.f32 %v2429_v35  ;;  %v2430_v37 = vadd.f32 1.0, %v4468_v2  ;;  %v5777_v53 = vadd.f32 %v5746_v33, %v2148_v61  ;;  %v3872_v44 = vpop.f32.mrb[54].mxu1  ;;  %v2357_v34 = vmul.f32 1.442695, %v2244_v47 }
 0x28a   : > { %v4472_v5 = vpop.eup %4471  ;;  %4487 = vrcp.f32 %v2427_v54  ;;  %v2428_v16 = vadd.f32 1.0, %v4470_v51  ;;  %v5780_v43 = vadd.f32 %v5746_v33, %v3872_v44  ;;  %v2151_v17 = vpop.f32.mrb[55].mxu1  ;;  %2786 = vmatmul.mubr.bf16.vlgmr.msra.gmra.mrb[64].mxu1 %v4029_v30  ;;  %v2249_v11 = vsub.f32 0.0, %v5773_v13 }
 0x28b   : > { %v4474_v28 = vpop.eup %4473  ;;  %4489 = vrcp.f32 %v2430_v37  ;;  %v2433_v26 = vadd.f32 1.0, %v4472_v5  ;;  %2793 = vmatprep.mubr.bf16.mxu1 %v4035_v41  ;;  %v5784_v49 = vadd.f32 %v5746_v33, %v2151_v17  ;;  %v2247_v50 = vsub.f32 0.0, %v5777_v53 }
 0x28c   : > { %v4476_v62 = vpop.eup %4475  ;;  %4491 = vrcp.f32 %v2428_v16  ;;  %v2431_v21 = vadd.f32 1.0, %v4474_v28  ;;  %v2250_v40 = vsub.f32 0.0, %v5780_v43  ;;  %v2367_v19 = vmul.f32 1.442695, %v2249_v11 }
 0x28d   : > { %v4478_v9 = vpop.eup %4477  ;;  %4493 = vrcp.f32 %v2433_v26  ;;  %v2434_v36 = vadd.f32 1.0, %v4476_v62  ;;  %v2248_v52 = vsub.f32 0.0, %v5784_v49  ;;  %v2363_v35 = vmul.f32 1.442695, %v2247_v50 }
 0x28e   : > { %4495 = vrcp.f32 %v2431_v21  ;;  %v2432_v63 = vadd.f32 1.0, %v4478_v9  ;;  %v2369_v54 = vmul.f32 1.442695, %v2250_v40 }
 0x28f   : > { %v4480_v22 = vpop.eup %4479  ;;  %4497 = vrcp.f32 %v2434_v36  ;;  %v3875_v7 = vpop.f32.mrb[56].mxu1  ;;  %v2365_v26 = vmul.f32 1.442695, %v2248_v52 }
 0x290   : > { %v4482_v20 = vpop.eup %4481  ;;  %4499 = vrcp.f32 %v2432_v63  ;;  %v2437_v45 = vadd.f32 1.0, %v4480_v22  ;;  %v5792_v24 = vadd.f32 %v5746_v33, %v3875_v7  ;;  %v2164_v30 = vpop.f32.mrb[57].mxu1  ;;  %v4045_v63 = vld [vmem:[%s4745_s23 + $0x40] ss:$16 sps:$4 sm:$0xff]  }
 0x291   : > { %v2435_v32 = vadd.f32 1.0, %v4482_v20  ;;  %4501 = vpow2.f32 %v2357_v34  ;;  %v5795_v15 = vadd.f32 %v5746_v33, %v2164_v30  ;;  %v3876_v41 = vpop.f32.mrb[58].mxu1 }
 0x292   : > { %v4484_v2 = vpop.eup %4483  ;;  %4503 = vrcp.f32 %v2437_v45  ;;  %v2253_v61 = vsub.f32 0.0, %v5792_v24  ;;  %v5799_v51 = vadd.f32 %v5746_v33, %v3876_v41  ;;  %v2167_v37 = vpop.f32.mrb[59].mxu1  ;;  %2794 = vmatmul.mubr.bf16.gmra.mrb[68].mxu1 %v4039_v23 }
 0x293   : > { %v4486_v47 = vpop.eup %4485  ;;  %4505 = vrcp.f32 %v2435_v32  ;;  %v2438_v44 = vadd.f32 1.0, %v4484_v2  ;;  %v2251_v5 = vsub.f32 0.0, %v5795_v15  ;;  %v5803_v16 = vadd.f32 %v5746_v33, %v2167_v37  ;;  %2801 = vmatprep.mubr.bf16.mxu1 %v4041_v59 }
 0x294   : > { %v4488_v17 = vpop.eup %4487  ;;  %v5806_v28 = vmul.f32 %v4486_v47, %v5636_v39  ;;  %4507 = vpow2.f32 %v2367_v19  ;;  %v2254_v11 = vsub.f32 0.0, %v5799_v51  ;;  %v2375_v9 = vmul.f32 1.442695, %v2253_v61 }
 0x295   : > { %v4490_v62 = vpop.eup %4489  ;;  %v5810_v21 = vmul.f32 %v4488_v17, %v5639_v46  ;;  %4509 = vrcp.f32 %v2438_v44  ;;  %v2252_v36 = vsub.f32 0.0, %v5803_v16  ;;  %v2371_v50 = vmul.f32 1.442695, %v2251_v5 }
 0x296   : > { %v4492_v34 = vpop.eup %4491  ;;  %2621 = vst.msk [vmem:[%s4743_s18 + $0x150] sm:$0xff] %vm1809_vm2, %v5806_v28  ;;  %v5817_v39 = vmul.f32 %v4490_v62, %v5643_v48  ;;  %4511 = vpow2.f32 %v2363_v35  ;;  %v2377_v23 = vmul.f32 1.442695, %v2254_v11 }
 0x297   : > { %v4494_v40 = vpop.eup %4493  ;;  %2619 = vst.msk [vmem:[%s4743_s18 + $0x140] sm:$0xff] %vm1809_vm2, %v5810_v21  ;;  %v5824_v46 = vmul.f32 %v4492_v34, %v5649_v29  ;;  %4513 = vpow2.f32 %v2369_v54  ;;  %v2373_v22 = vmul.f32 1.442695, %v2252_v36  ;;  %v3879_v19 = vpop.f32.mrb[60].mxu1 }
 0x298   : > { %v4496_v7 = vpop.eup %4495  ;;  %2622 = vst.msk [vmem:[%s4743_s18 + $0x158] sm:$0xff] %vm1809_vm2, %v5817_v39  ;;  %v2682_v48 = vpack.c.bf16 %v5817_v39, %v5806_v28  ;;  %v5832_v59 = vmul.f32 %v4494_v40, %v5658_v14  ;;  %4515 = vpow2.f32 %v2365_v26  ;;  %v5835_v20 = vadd.f32 %v5746_v33, %v3879_v19  ;;  %v2180_v29 = vpop.f32.mrb[61].mxu1  ;;  %v4040_v28 = vld [vmem:[%s4745_s23 + $0x28] ss:$16 sps:$4 sm:$0xff]  }
 0x299   : > { %v4498_v45 = vpop.eup %4497  ;;  %2620 = vst.msk [vmem:[%s4743_s18 + $0x148] sm:$0xff] %vm1809_vm2, %v5824_v46  ;;  %v2681_v52 = vpack.c.bf16 %v5824_v46, %v5810_v21  ;;  %v5843_v30 = vmul.f32 %v4496_v7, %v5661_v42  ;;  %4517 = vpow2.f32 %v2375_v9  ;;  %v5846_v14 = vadd.f32 %v5746_v33, %v2180_v29  ;;  %v3880_v32 = vpop.f32.mrb[62].mxu1  ;;  %v4043_v21 = vld [vmem:[%s4745_s23 + $0x4c] ss:$16 sps:$4 sm:$0xff]   ;;  %v4046_v39 = vld [vmem:[%s4745_s23 + $0x48] ss:$16 sps:$4 sm:$0xff]  }
 0x29a   : > { %v4500_v35 = vpop.eup %4499  ;;  %2625 = vst.msk [vmem:[%s4743_s18 + $0x170] sm:$0xff] %vm1809_vm2, %v5832_v59  ;;  %v5852_v41 = vmul.f32 %v4498_v45, %v5665_v10  ;;  %4519 = vpow2.f32 %v2371_v50  ;;  %v2257_v2 = vsub.f32 0.0, %v5835_v20  ;;  %v5856_v42 = vadd.f32 %v5746_v33, %v3880_v32  ;;  %v2183_v54 = vpop.f32.mrb[63].mxu1  ;;  %2802 = vmatmul.mubr.bf16.gmra.mrb[72].mxu1 %v4045_v63 }
 0x29b   : > { %v4502_v61 = vpop.eup %4501  ;;  %2623 = vst.msk [vmem:[%s4743_s18 + $0x160] sm:$0xff] %vm1809_vm2, %v5843_v30  ;;  %v5862_v37 = vmul.f32 %v4500_v35, %v5669_v55  ;;  %4521 = vpow2.f32 %v2377_v23  ;;  %v2255_v10 = vsub.f32 0.0, %v5846_v14  ;;  %v5881_v50 = vadd.f32 %v5746_v33, %v2183_v54 }
 0x29c   : > { %v4504_v47 = vpop.eup %4503  ;;  %2626 = vst.msk [vmem:[%s4743_s18 + $0x178] sm:$0xff] %vm1809_vm2, %v5852_v41  ;;  %v2684_v44 = vpack.c.bf16 %v5852_v41, %v5832_v59  ;;  %v2436_v5 = vadd.f32 1.0, %v4502_v61  ;;  %4523 = vpow2.f32 %v2373_v22  ;;  %v2383_v17 = vmul.f32 1.442695, %v2257_v2 }
 0x29d   : > { %v4506_v26 = vpop.eup %4505  ;;  %2624 = vst.msk [vmem:[%s4743_s18 + $0x168] sm:$0xff] %vm1809_vm2, %v5862_v37  ;;  %v2683_v55 = vpack.c.bf16 %v5862_v37, %v5843_v30  ;;  %v5876_v11 = vmul.f32 %v4504_v47, %v5690_v60  ;;  %v2379_v62 = vmul.f32 1.442695, %v2255_v10  ;;  %v2258_v9 = vsub.f32 0.0, %v5856_v42 }
 0x29e   : > { %v4508_v36 = vpop.eup %4507  ;;  %v2563_v34 = vmul.f32 %v4506_v26, %v5698_v56  ;;  %4525 = vrcp.f32 %v2436_v5  ;;  %v2256_v29 = vsub.f32 0.0, %v5881_v50 }
 0x29f   : > { %v4510_v63 = vpop.eup %4509  ;;  %2629 = vst.msk [vmem:[%s4743_s18 + $0x190] sm:$0xff] %vm1809_vm2, %v5876_v11  ;;  %v2441_v40 = vadd.f32 1.0, %v4508_v36  ;;  %4527 = vpow2.f32 %v2383_v17  ;;  %v2385_v23 = vmul.f32 1.442695, %v2258_v9 }
 0x2a0   : > { %v4512_v60 = vpop.eup %4511  ;;  %2627 = vst.msk [vmem:[%s4743_s18 + $0x180] sm:$0xff] %vm1809_vm2, %v2563_v34  ;;  %v2566_v22 = vmul.f32 %v4510_v63, %v5708_v18  ;;  %4529 = vpow2.f32 %v2379_v62  ;;  %v2381_v5 = vmul.f32 1.442695, %v2256_v29 }
 0x2a1   : > { %v4514_v19 = vpop.eup %4513  ;;  %4531 = vrcp.f32 %v2441_v40  ;;  %v2439_v56 = vadd.f32 1.0, %v4512_v60 }
 0x2a2   : > { %v4516_v7 = vpop.eup %4515  ;;  %2630 = vst.msk [vmem:[%s4743_s18 + $0x198] sm:$0xff] %vm1809_vm2, %v2566_v22  ;;  %v2442_v33 = vadd.f32 1.0, %v4514_v19  ;;  %4533 = vpow2.f32 %v2385_v23  ;;  %v2686_v45 = vpack.c.bf16 %v2566_v22, %v5876_v11 }
 0x2a3   : > { %v4518_v32 = vpop.eup %4517  ;;  %4535 = vrcp.f32 %v2439_v56  ;;  %v2440_v35 = vadd.f32 1.0, %v4516_v7 }
 0x2a4   : > { %v4520_v2 = vpop.eup %4519  ;;  %4537 = vrcp.f32 %v2442_v33  ;;  %v2445_v54 = vadd.f32 1.0, %v4518_v32 }
 0x2a5   : > { %v4522_v18 = vpop.eup %4521  ;;  %4539 = vrcp.f32 %v2440_v35  ;;  %v2443_v61 = vadd.f32 1.0, %v4520_v2 }
 0x2a6   : > { %v4524_v10 = vpop.eup %4523  ;;  %4541 = vrcp.f32 %v2445_v54  ;;  %v2446_v47 = vadd.f32 1.0, %v4522_v18 }
 0x2a7   : > { %4543 = vrcp.f32 %v2443_v61  ;;  %v2444_v17 = vadd.f32 1.0, %v4524_v10 }
 0x2a8   : > { %v4526_v26 = vpop.eup %4525  ;;  %4545 = vrcp.f32 %v2446_v47 }
 0x2a9   : > { %v4528_v62 = vpop.eup %4527  ;;  %v2564_v11 = vmul.f32 %v4526_v26, %v5749_v27  ;;  %4547 = vrcp.f32 %v2444_v17 }
 0x2aa   : > { %v4530_v9 = vpop.eup %4529  ;;  %v2449_v36 = vadd.f32 1.0, %v4528_v62  ;;  %4549 = vpow2.f32 %v2381_v5 }
 0x2ab   : > { %v4532_v63 = vpop.eup %4531  ;;  %2628 = vst.msk [vmem:[%s4743_s18 + $0x188] sm:$0xff] %vm1809_vm2, %v2564_v11  ;;  %v2447_v40 = vadd.f32 1.0, %v4530_v9  ;;  %v2685_v23 = vpack.c.bf16 %v2564_v11, %v2563_v34 }
 0x2ac   : > { %v4534_v60 = vpop.eup %4533  ;;  %v2569_v22 = vmul.f32 %v4532_v63, %v5773_v13  ;;  %4551 = vrcp.f32 %v2449_v36  ;;  %v2643_v36 = vld [vmem:[#allocation2] sm:$0xff] }
 0x2ad   : > { %v4536_v19 = vpop.eup %4535  ;;  %4553 = vrcp.f32 %v2447_v40  ;;  %v2450_v56 = vadd.f32 1.0, %v4534_v60  ;;  %3675 = vmatprep.subr.bf16.mxu0 %v2685_v23  ;;  %v2644_v60 = vld [vmem:[#allocation2 + $0x8] sm:$0xff] }
 0x2ae   : > { %v4538_v27 = vpop.eup %4537  ;;  %2633 = vst.msk [vmem:[%s4743_s18 + $0x1b0] sm:$0xff] %vm1809_vm2, %v2569_v22  ;;  %v2567_v7 = vmul.f32 %v4536_v19, %v5777_v53  ;;  %3676 = vmatpush3.bf16.msra.mxu0 %v2677_v0 }
 0x2af   : > { %v4540_v34 = vpop.eup %4539  ;;  %v2570_v33 = vmul.f32 %v4538_v27, %v5780_v43  ;;  %4555 = vrcp.f32 %v2450_v56  ;;  %3677 = vmatprep.subr.bf16.mxu0 %v2686_v45 }
 0x2b0   : > { %v4542_v13 = vpop.eup %4541  ;;  %2631 = vst.msk [vmem:[%s4743_s18 + $0x1a0] sm:$0xff] %vm1809_vm2, %v2567_v7  ;;  %v2568_v29 = vmul.f32 %v4540_v34, %v5784_v49 }
 0x2b1   : > { %v4544_v32 = vpop.eup %4543  ;;  %2634 = vst.msk [vmem:[%s4743_s18 + $0x1b8] sm:$0xff] %vm1809_vm2, %v2570_v33  ;;  %v2573_v53 = vmul.f32 %v4542_v13, %v5792_v24  ;;  %v2688_v6 = vpack.c.bf16 %v2570_v33, %v2569_v22  ;;  %v2645_v13 = vld [vmem:[#allocation2 + $0x10] sm:$0xff] }
 0x2b2   : > { %v4546_v58 = vpop.eup %4545  ;;  %2632 = vst.msk [vmem:[%s4743_s18 + $0x1a8] sm:$0xff] %vm1809_vm2, %v2568_v29  ;;  %v2571_v0 = vmul.f32 %v4544_v32, %v5795_v15  ;;  %3678 = vmatpush3.bf16.msra.mxu0 %v2678_v57  ;;  %v2687_v43 = vpack.c.bf16 %v2568_v29, %v2567_v7 }
 0x2b3   : > { %v4548_v45 = vpop.eup %4547  ;;  %2637 = vst.msk [vmem:[%s4743_s18 + $0x1d0] sm:$0xff] %vm1809_vm2, %v2573_v53  ;;  %v2574_v49 = vmul.f32 %v4546_v58, %v5799_v51 }
 0x2b4   : > { %v4550_v35 = vpop.eup %4549  ;;  %2635 = vst.msk [vmem:[%s4743_s18 + $0x1c0] sm:$0xff] %vm1809_vm2, %v2571_v0  ;;  %v2572_v24 = vmul.f32 %v4548_v45, %v5803_v16  ;;  %3679 = vmatprep.subr.bf16.mxu0 %v2687_v43 }
 0x2b5   : > { %2638 = vst.msk [vmem:[%s4743_s18 + $0x1d8] sm:$0xff] %vm1809_vm2, %v2574_v49  ;;  %v2448_v15 = vadd.f32 1.0, %v4550_v35  ;;  %v2690_v2 = vpack.c.bf16 %v2574_v49, %v2573_v53 }
 0x2b6   : > { %v4552_v8 = vpop.eup %4551  ;;  %2636 = vst.msk [vmem:[%s4743_s18 + $0x1c8] sm:$0xff] %vm1809_vm2, %v2572_v24  ;;  %3680 = vmatpush3.bf16.msra.mxu0 %v2679_v31  ;;  %v2689_v38 = vpack.c.bf16 %v2572_v24, %v2571_v0 }
 0x2b7   : > { %v4554_v57 = vpop.eup %4553  ;;  %v2577_v51 = vmul.f32 %v4552_v8, %v5835_v20  ;;  %4557 = vrcp.f32 %v2448_v15  ;;  %3681 = vmatprep.subr.bf16.mxu0 %v2688_v6  ;;  %v2646_v6 = vld [vmem:[#allocation2 + $0x18] sm:$0xff]  ;;  %v2647_v15 = vld [vmem:[#allocation2 + $0x20] sm:$0xff] }
 0x2b8   : > { %v2575_v16 = vmul.f32 %v4554_v57, %v5846_v14  ;;  %v2648_v57 = vld [vmem:[#allocation2 + $0x28] sm:$0xff] }
 0x2b9   : > { %v4556_v54 = vpop.eup %4555  ;;  %2641 = vst.msk [vmem:[%s4743_s18 + $0x1f0] sm:$0xff] %vm1809_vm2, %v2577_v51 }
 0x2ba   : > { %2639 = vst.msk [vmem:[%s4743_s18 + $0x1e0] sm:$0xff] %vm1809_vm2, %v2575_v16  ;;  %v2578_v18 = vmul.f32 %v4556_v54, %v5856_v42  ;;  %3682 = vmatpush3.bf16.msra.mxu0 %v2680_v1  ;;  %v4037_v1 = vld [vmem:[%s4745_s23 + $0x2c] ss:$16 sps:$4 sm:$0xff]  }
 0x2bb   : > { %3683 = vmatprep.subr.bf16.mxu0 %v2689_v38 }
 0x2bc   : > { %2642 = vst.msk [vmem:[%s4743_s18 + $0x1f8] sm:$0xff] %vm1809_vm2, %v2578_v18  ;;  %v2692_v3 = vpack.c.bf16 %v2578_v18, %v2577_v51  ;;  %v2889_v18 = vld [vmem:[%s6121_s8] sm:$0xff] (!%p3546_p10) }
 0x2be   : > { %3684 = vmatpush3.bf16.msra.mxu0 %v2681_v52 }
 0x2bf   : > { %3685 = vmatprep.subr.bf16.mxu0 %v2690_v2 }
 0x2c1   : > { %v4558_v25 = vpop.eup %4557 }
 0x2c2   : > { %v2576_v31 = vmul.f32 %v4558_v25, %v5881_v50  ;;  %3686 = vmatpush3.bf16.msra.mxu0 %v2682_v48  ;;  %v2883_v25 = vld [vmem:[%s6116_s3] sm:$0xff] (!%p3546_p10) }
 0x2c3   : > { %3885 = vmatprep.mubr.msk.f32.mxu1 (!%p3546_p10), %vm2898_vm3, %v2883_v25 }
 0x2c4   : > { %2640 = vst.msk [vmem:[%s4743_s18 + $0x1e8] sm:$0xff] %vm1809_vm2, %v2576_v31  ;;  %v2691_v4 = vpack.c.bf16 %v2576_v31, %v2575_v16 }
 0x2c6   : > { %3687 = vmatprep.subr.bf16.mxu0 %v2691_v4  ;;  %v3024_v4 = vld [vmem:[%s6123_s10] sm:$0xff] (!%p3546_p10) }
 0x2c7   : > { %3688 = vmatpush3.bf16.msra.mxu0 %v2683_v55 }
 0x2c8   : > { %3689 = vmatprep.subr.bf16.mxu0 %v2692_v3  ;;  %v2890_v3 = vld [vmem:[%s6121_s8 + $0x8] sm:$0xff] (!%p3546_p10) }
 0x2c9   : > { %v3936_v31 = vpack.c.bf16 (!%p3546_p10), %v2890_v3, %v2889_v18 }
 0x2cb   : > { %3690 = vmatpush3.bf16.msra.mxu0 %v2684_v44  ;;  %3937 = vmatprep.subr.bf16.mxu1 (!%p3546_p10), %v3936_v31 }
 0x2cc   : > { %3939 = vmatpush3.bf16.msra.mxu1 (!%p3546_p10), %v3936_v31 }
 0x2ce   : > { %2843 = vmatmul.mubr.bf16.vlgmr.msra.gmra.mrb[64].mxu0 %v4032_v12  ;;  %v3025_v12 = vld [vmem:[%s6123_s10 + $0x8] sm:$0xff] (!%p3546_p10) }
 0x2cf   : > { %2850 = vmatprep.mubr.bf16.mxu0 %v4037_v1  ;;  %v2884_v1 = vld [vmem:[%s6116_s3 + $0x8] sm:$0xff] (!%p3546_p10) }
 0x2d0   : > { %3886 = vmatmul.mubr.msk.f32.vlgmr.msra.gmra.mrb[0].mxu1 (!%p3546_p10), %vm2898_vm3, %v2884_v1 }
 0x2d6   : > { %2851 = vmatmul.mubr.bf16.gmra.mrb[68].mxu0 %v4040_v28  ;;  %v3940_v28 = vpack.c.bf16 (!%p3546_p10), %v3025_v12, %v3024_v4 }
 0x2d7   : > { %2858 = vmatprep.mubr.bf16.mxu0 %v4043_v21  ;;  %v2885_v21 = vld [vmem:[%s6116_s3 + $0x10] sm:$0xff] (!%p3546_p10) }
 0x2d8   : > { %3941 = vmatprep.subr.bf16.mxu1 (!%p3546_p10), %v3940_v28  ;;  %3888 = vmatprep.mubr.msk.f32.mxu1 (!%p3546_p10), %vm2898_vm3, %v2885_v21 }
 0x2d9   : > { %3943 = vmatpush3.bf16.msra.mxu1 (!%p3546_p10), %v3940_v28 }
 0x2de   : > { %2859 = vmatmul.mubr.bf16.gmra.mrb[72].mxu0 %v4046_v39  ;;  %v2886_v39 = vld [vmem:[%s6116_s3 + $0x18] sm:$0xff] (!%p3546_p10) }
 0x2df   : > { %3889 = vmatmul.mubr.msk.f32.gmra.mrb[2].mxu1 (!%p3546_p10), %vm2898_vm3, %v2886_v39 }
 0x35d   : > { %v3657_v46 = vpop.f32.mrb[64].mxu1 }
 0x35e   : > { %v3658_v48 = vpop.f32.mrb[65].mxu1 }
 0x35f   : > { %v3659_v20 = vadd.f32 %v3658_v48, %v3657_v46  ;;  %v3660_v52 = vpop.f32.mrb[66].mxu1  ;;  %v2887_v46 = vld [vmem:[%s6116_s3 + $0x20] sm:$0xff] (!%p3546_p10)  ;;  %v2888_v48 = vld [vmem:[%s6116_s3 + $0x28] sm:$0xff] (!%p3546_p10) }
 0x360   : > { %v3661_v30 = vpop.f32.mrb[67].mxu1  ;;  %3891 = vmatprep.mubr.msk.f32.mxu1 (!%p3546_p10), %vm2898_vm3, %v2887_v46 }
 0x361   : > { %v3662_v14 = vadd.f32 %v3661_v30, %v3660_v52  ;;  %3892 = vmatmul.mubr.msk.f32.gmra.mrb[4].mxu1 (!%p3546_p10), %vm2898_vm3, %v2888_v48  ;;  %v3027_v52 = vld [vmem:[%s6123_s10 + $0x18] sm:$0xff] (!%p3546_p10) }
 0x365   : > { %v3663_v42 = vpop.f32.mrb[68].mxu1 }
 0x366   : > { %v3664_v37 = vpop.f32.mrb[69].mxu1 }
 0x367   : > { %v3665_v55 = vadd.f32 %v3664_v37, %v3663_v42  ;;  %v3666_v59 = vpop.f32.mrb[70].mxu1 }
 0x368   : > { %v3667_v41 = vpop.f32.mrb[71].mxu1 }
 0x369   : > { %v3668_v44 = vadd.f32 %v3667_v41, %v3666_v59 }
 0x36d   : > { %v3669_v50 = vpop.f32.mrb[72].mxu1 }
 0x36e   : > { %v3670_v61 = vpop.f32.mrb[73].mxu1 }
 0x36f   : > { %v3671_v10 = vadd.f32 %v3670_v61, %v3669_v50  ;;  %v3672_v47 = vpop.f32.mrb[74].mxu1 }
 0x370   : > { %v3673_v5 = vpop.f32.mrb[75].mxu1 }
 0x371   : > { %v3674_v17 = vadd.f32 %v3673_v5, %v3672_v47 }
 0x3a1   : > { %v3691_v26 = vpop.f32.mrb[64].mxu0 }
 0x3a2   : > { %v3692_v62 = vpop.f32.mrb[65].mxu0 }
 0x3a3   : > { %v3693_v11 = vadd.f32 %v3692_v62, %v3691_v26  ;;  %v3694_v9 = vpop.f32.mrb[66].mxu0  ;;  %v3887_v42 = vpop.f32.mrb[0].mxu1 (!%p3546_p10) }
 0x3a4   : > { %v3695_v63 = vpop.f32.mrb[67].mxu0 }
 0x3a5   : > { %v2845_v40 = vadd.f32 %v3693_v11, %v3659_v20  ;;  %v3696_v23 = vadd.f32 %v3695_v63, %v3694_v9  ;;  %v3026_v20 = vld [vmem:[%s6123_s10 + $0x10] sm:$0xff] (!%p3546_p10) }
 0x3a6   : > { %v3944_v30 = vpack.c.bf16 (!%p3546_p10), %v3027_v52, %v3026_v20 }
 0x3a7   : > { %v2867_v22 = vadd.f32 %v2845_v40, %v2643_v36  ;;  %v2848_v19 = vadd.f32 %v3696_v23, %v3662_v14  ;;  %v3547_v14 = vld [vmem:[%s6122_s9] ss:$0 sm:$0xff] (!%p3546_p10) }
 0x3a8   : > { %3945 = vmatprep.subr.bf16.mxu1 (!%p3546_p10), %v3944_v30  ;;  %v2989_v37 = vadd.f32 (!%p3546_p10), %v3887_v42, %v3547_v14 }
 0x3a9   : > { %2873 = vst.msk [vmem:[#allocation2] sm:$0xff] %vm1809_vm2, %v2867_v22  ;;  %v2868_v56 = vadd.f32 %v2848_v19, %v2644_v60  ;;  %v3697_v27 = vpop.f32.mrb[68].mxu0  ;;  %3947 = vmatpush3.bf16.msra.mxu1 (!%p3546_p10), %v3944_v30 }
 0x3aa   : > { %v3698_v7 = vpop.f32.mrb[69].mxu0 }
 0x3ab   : > { %2874 = vst.msk [vmem:[#allocation2 + $0x8] sm:$0xff] %vm1809_vm2, %v2868_v56  ;;  %v3699_v34 = vadd.f32 %v3698_v7, %v3697_v27  ;;  %v3700_v33 = vpop.f32.mrb[70].mxu0  ;;  %v3184_v27 = vld [vmem:[%s6125_s12] sm:$0xff] (!%p3546_p10)  ;;  %v3185_v7 = vld [vmem:[%s6125_s12 + $0x8] sm:$0xff] (!%p3546_p10) }
 0x3ac   : > { %v3701_v29 = vpop.f32.mrb[71].mxu0 }
 0x3ad   : > { %v2853_v32 = vadd.f32 %v3699_v34, %v3665_v55  ;;  %v3702_v53 = vadd.f32 %v3701_v29, %v3700_v33  ;;  %v2983_v55 = vpop.f32.mrb[1].mxu1 (!%p3546_p10)  ;;  %v3948_v34 = vpack.c.bf16 (!%p3546_p10), %v3185_v7, %v3184_v27  ;;  %v3186_v33 = vld [vmem:[%s6125_s12 + $0x10] sm:$0xff] (!%p3546_p10) }
 0x3af   : > { %v2869_v58 = vadd.f32 %v2853_v32, %v2645_v13  ;;  %v2856_v0 = vadd.f32 %v3702_v53, %v3668_v44  ;;  %v2984_v44 = vadd.f32 (!%p3546_p10), %v3547_v14, %v2983_v55  ;;  %3949 = vmatprep.subr.bf16.mxu0 (!%p3546_p10), %v3948_v34  ;;  %v3187_v13 = vld [vmem:[%s6125_s12 + $0x18] sm:$0xff] (!%p3546_p10)  ;;  %v3188_v32 = vld [vmem:[%s6125_s12 + $0x20] sm:$0xff] (!%p3546_p10)  ;;  %v3189_v53 = vld [vmem:[%s6125_s12 + $0x28] sm:$0xff] (!%p3546_p10) }
 0x3b0   : > { %v3012_v59 = vld [vmem:[#allocation2] sm:$0xff] (!%p3546_p10)  ;;  %3951 = vmatpush3.bf16.msra.mxu0 (!%p3546_p10), %v3948_v34  ;;  %v3952_v29 = vpack.c.bf16 (!%p3546_p10), %v3187_v13, %v3186_v33 }
 0x3b1   : > { %2875 = vst.msk [vmem:[#allocation2 + $0x10] sm:$0xff] %vm1809_vm2, %v2869_v58  ;;  %v2870_v43 = vadd.f32 %v2856_v0, %v2646_v6  ;;  %v3703_v45 = vpop.f32.mrb[72].mxu0  ;;  %v6013_v50 = vadd.f32 (!%p3546_p10), %v3012_v59, %v2984_v44  ;;  %v3956_v6 = vpack.c.bf16 (!%p3546_p10), %v3189_v53, %v3188_v32  ;;  %v3190_v58 = vld [vmem:[%s6125_s12 + $0x30] sm:$0xff] (!%p3546_p10)  ;;  %v3191_v0 = vld [vmem:[%s6125_s12 + $0x38] sm:$0xff] (!%p3546_p10)  ;;  %v3561_v33 = vld [vmem:[%s6126_s13] ss:$0 sm:$0xff] (!%p3546_p10) }
 0x3b2   : > { %v3704_v49 = vpop.f32.mrb[73].mxu0  ;;  %v3013_v41 = vld [vmem:[#allocation2 + $0x8] sm:$0xff] (!%p3546_p10)  ;;  %v3890_v61 = vpop.f32.mrb[2].mxu1 (!%p3546_p10)  ;;  %3953 = vmatprep.subr.bf16.mxu0 (!%p3546_p10), %v3952_v29 }
 0x3b3   : > { %2876 = vst.msk [vmem:[#allocation2 + $0x18] sm:$0xff] %vm1809_vm2, %v2870_v43  ;;  %v3705_v35 = vadd.f32 %v3704_v49, %v3703_v45  ;;  %v3706_v24 = vpop.f32.mrb[74].mxu0  ;;  %v2999_v47 = vadd.f32 (!%p3546_p10), %v3890_v61, %v3547_v14  ;;  %v2993_v5 = vpop.f32.mrb[3].mxu1 (!%p3546_p10)  ;;  %3902 = vmatprep.mubr.msk.f32.mxu1 (!%p3546_p10), %vm1809_vm2, %v6013_v50  ;;  %v3960_v43 = vpack.c.bf16 (!%p3546_p10), %v3191_v0, %v3190_v58  ;;  %v3554_v45 = vld [vmem:[%s6124_s11] ss:$0 sm:$0xff] (!%p3546_p10) }
 0x3b4   : > { %v3707_v2 = vpop.f32.mrb[75].mxu0  ;;  %v2994_v62 = vadd.f32 (!%p3546_p10), %v3547_v14, %v2993_v5  ;;  %3955 = vmatpush3.bf16.msra.mxu0 (!%p3546_p10), %v3952_v29 }
 0x3b5   : > { %v2861_v8 = vadd.f32 %v3705_v35, %v3671_v10  ;;  %v3708_v38 = vadd.f32 %v3707_v2, %v3706_v24  ;;  %2882 = sbr.rel (%p3546_p10) target bundleno = 1547 (0x60b), region = 107  ;;  %v6015_v10 = vadd.f32 (!%p3546_p10), %v3013_v41, %v2989_v37  ;;  %3957 = vmatprep.subr.bf16.mxu0 (!%p3546_p10), %v3956_v6 }
 0x3b7   : > { %v2871_v51 = vadd.f32 %v2861_v8, %v2647_v15  ;;  %v2864_v16 = vadd.f32 %v3708_v38, %v3674_v17  ;;  %3903 = vmatmul.mubr.msk.f32.vlgmr.msra.gmra.mrb[6].mxu1 (!%p3546_p10), %vm1809_vm2, %v6015_v10 }
 0x3b8   : > { %v3014_v17 = vld [vmem:[#allocation2 + $0x10] sm:$0xff] (!%p3546_p10)  ;;  %3959 = vmatpush3.bf16.msra.mxu0 (!%p3546_p10), %v3956_v6 }
 0x3b9   : > { %2877 = vst.msk [vmem:[#allocation2 + $0x20] sm:$0xff] %vm1809_vm2, %v2871_v51  ;;  %v2872_v54 = vadd.f32 %v2864_v16, %v2648_v57  ;;  %v6021_v11 = vadd.f32 (!%p3546_p10), %v3014_v17, %v2994_v62  ;;  %3961 = vmatprep.subr.bf16.mxu0 (!%p3546_p10), %v3960_v43 }
 0x3ba   : > { %v3015_v26 = vld [vmem:[#allocation2 + $0x18] sm:$0xff] (!%p3546_p10) }
 0x3bb   : > { %2878 = vst.msk [vmem:[#allocation2 + $0x28] sm:$0xff] %vm1809_vm2, %v2872_v54  ;;  %v6023_v36 = vadd.f32 (!%p3546_p10), %v3015_v26, %v2999_v47  ;;  %3905 = vmatprep.mubr.msk.f32.mxu1 (!%p3546_p10), %vm1809_vm2, %v6021_v11 }
 0x3bc   : > { %3963 = vmatpush3.bf16.msra.mxu0 %v3960_v43 }
 0x3bd   : > { %3906 = vmatmul.mubr.msk.f32.gmra.mrb[8].mxu1 %vm1809_vm2, %v6023_v36 }
 0x3c0   : > { %v3016_v23 = vld [vmem:[#allocation2 + $0x20] sm:$0xff] }
 0x3c2   : > { %v3017_v60 = vld [vmem:[#allocation2 + $0x28] sm:$0xff] }
 0x434   : > { %v3893_v9 = vpop.f32.mrb[4].mxu1 }
 0x435   : > { %v3009_v63 = vadd.f32 %v3893_v9, %v3547_v14  ;;  %v3003_v40 = vpop.f32.mrb[5].mxu1 }
 0x436   : > { %v3004_v22 = vadd.f32 %v3547_v14, %v3003_v40 }
 0x437   : > { %v6031_v56 = vadd.f32 %v3017_v60, %v3009_v63 }
 0x438   : > { %v6029_v19 = vadd.f32 %v3016_v23, %v3004_v22 }
 0x43a   : > { %3908 = vmatprep.mubr.msk.f32.mxu1 %vm1809_vm2, %v6029_v19 }
 0x43b   : > { %3909 = vmatmul.mubr.msk.f32.gmra.mrb[10].mxu1 %vm1809_vm2, %v6031_v56 }
 0x48a   : > { %v3904_v49 = vpop.f32.mrb[6].mxu1 }
 0x48b   : > { %v3125_v35 = vadd.f32 %v3904_v49, %v3554_v45  ;;  %v3119_v24 = vpop.f32.mrb[7].mxu1 }
 0x48c   : > { %v3120_v15 = vadd.f32 %v3554_v45, %v3119_v24 }
 0x48d   : > { %v3149_v2 = vsub.f32 0.0, %v3125_v35 }
 0x48e   : > { %v3148_v8 = vsub.f32 0.0, %v3120_v15 }
 0x48f   : > { %v3156_v57 = vmul.f32 1.442695, %v3149_v2 }
 0x490   : > { %v3907_v38 = vpop.f32.mrb[8].mxu1  ;;  %v3154_v54 = vmul.f32 1.442695, %v3148_v8 }
 0x491   : > { %v3135_v51 = vadd.f32 %v3907_v38, %v3554_v45  ;;  %v3129_v16 = vpop.f32.mrb[9].mxu1  ;;  %4561 = vpow2.f32 %v3156_v57 }
 0x492   : > { %v3130_v18 = vadd.f32 %v3554_v45, %v3129_v16  ;;  %4563 = vpow2.f32 %v3154_v54 }
 0x493   : > { %v3151_v3 = vsub.f32 0.0, %v3135_v51 }
 0x494   : > { %v3150_v25 = vsub.f32 0.0, %v3130_v18 }
 0x495   : > { %v3160_v4 = vmul.f32 1.442695, %v3151_v3 }
 0x496   : > { %v3158_v28 = vmul.f32 1.442695, %v3150_v25 }
 0x497   : > { %4565 = vpow2.f32 %v3160_v4 }
 0x498   : > { %4567 = vpow2.f32 %v3158_v28 }
 0x49b   : > { %v4562_v52 = vpop.eup %4561 }
 0x49c   : > { %v4564_v30 = vpop.eup %4563  ;;  %v3167_v14 = vadd.f32 1.0, %v4562_v52 }
 0x49d   : > { %v3166_v42 = vadd.f32 1.0, %v4564_v30 }
 0x4a1   : > { %v4566_v37 = vpop.eup %4565 }
 0x4a2   : > { %v4568_v55 = vpop.eup %4567  ;;  %v3169_v59 = vadd.f32 1.0, %v4566_v37 }
 0x4a3   : > { %v3168_v41 = vadd.f32 1.0, %v4568_v55 }
 0x50e   : > { %v3910_v31 = vpop.f32.mrb[10].mxu1 }
 0x50f   : > { %v3145_v12 = vadd.f32 %v3910_v31, %v3554_v45  ;;  %v3139_v1 = vpop.f32.mrb[11].mxu1 }
 0x510   : > { %v3140_v21 = vadd.f32 %v3554_v45, %v3139_v1 }
 0x511   : > { %v3153_v39 = vsub.f32 0.0, %v3145_v12 }
 0x512   : > { %v3152_v46 = vsub.f32 0.0, %v3140_v21 }
 0x513   : > { %v3164_v48 = vmul.f32 1.442695, %v3153_v39 }
 0x514   : > { %v3162_v20 = vmul.f32 1.442695, %v3152_v46 }
 0x515   : > { %4569 = vpow2.f32 %v3164_v48 }
 0x516   : > { %4571 = vpow2.f32 %v3162_v20 }
 0x517   : > { %4573 = vrcp.f32 %v3167_v14 }
 0x518   : > { %4575 = vrcp.f32 %v3166_v42 }
 0x519   : > { %4577 = vrcp.f32 %v3169_v59 }
 0x51a   : > { %4579 = vrcp.f32 %v3168_v41 }
 0x51f   : > { %v4570_v44 = vpop.eup %4569 }
 0x520   : > { %v4572_v61 = vpop.eup %4571  ;;  %v3171_v47 = vadd.f32 1.0, %v4570_v44 }
 0x521   : > { %v3170_v5 = vadd.f32 1.0, %v4572_v61  ;;  %v4574_v17 = vpop.eup %4573 }
 0x522   : > { %4581 = vrcp.f32 %v3171_v47  ;;  %v4576_v26 = vpop.eup %4575  ;;  %v3179_v9 = vmul.f32 %v4574_v17, %v3125_v35 }
 0x523   : > { %4583 = vrcp.f32 %v3170_v5  ;;  %v3178_v62 = vmul.f32 %v4576_v26, %v3120_v15  ;;  %v4578_v63 = vpop.eup %4577 }
 0x524   : > { %v4580_v40 = vpop.eup %4579  ;;  %v3181_v60 = vmul.f32 %v4578_v63, %v3135_v51 }
 0x525   : > { %3927 = vmatprep.mubr.msk.f32.mxu0 %vm913_vm1, %v3178_v62  ;;  %v3180_v23 = vmul.f32 %v4580_v40, %v3130_v18 }
 0x526   : > { %3928 = vmatmul.mubr.msk.f32.vlgmr.msra.gmra.mrb[0].mxu0 %vm913_vm1, %v3179_v9 }
 0x527   : > { %3930 = vmatprep.mubr.msk.f32.mxu0 %vm913_vm1, %v3180_v23 }
 0x52a   : > { %3931 = vmatmul.mubr.msk.f32.gmra.mrb[2].mxu0 %vm913_vm1, %v3181_v60 }
 0x52c   : > { %v4582_v22 = vpop.eup %4581 }
 0x52d   : > { %v4584_v27 = vpop.eup %4583  ;;  %v3183_v34 = vmul.f32 %v4582_v22, %v3145_v12 }
 0x52e   : > { %v3182_v7 = vmul.f32 %v4584_v27, %v3140_v21 }
 0x530   : > { %3933 = vmatprep.mubr.msk.f32.mxu0 %vm913_vm1, %v3182_v7 }
 0x531   : > { %3934 = vmatmul.mubr.msk.f32.gmra.mrb[4].mxu0 %vm913_vm1, %v3183_v34 }
 0x5f9   : > { %v3929_v13 = vpop.f32.mrb[0].mxu0 }
 0x5fa   : > { %v3289_v29 = vadd.f32 %v3929_v13, %v3561_v33  ;;  %v3283_v32 = vpop.f32.mrb[1].mxu0 }
 0x5fb   : > { %v3284_v53 = vadd.f32 %v3561_v33, %v3283_v32 }
 0x5fc   : > { %v3313_v6 = vadd.f32 %v3289_v29, %v6015_v10 }
 0x5fd   : > { %v3312_v58 = vadd.f32 %v3284_v53, %v6013_v50  ;;  %v3932_v0 = vpop.f32.mrb[2].mxu0 }
 0x5fe   : > { %3319 = vst.msk [vmem:[%s6128_s15 + $0x8] sm:$0xff] %vm1809_vm2, %v3313_v6  ;;  %v3299_v43 = vadd.f32 %v3932_v0, %v3561_v33  ;;  %v3293_v45 = vpop.f32.mrb[3].mxu0 }
 0x5ff   : > { %3318 = vst.msk [vmem:[%s6128_s15] sm:$0xff] %vm1809_vm2, %v3312_v58  ;;  %v3294_v49 = vadd.f32 %v3561_v33, %v3293_v45 }
 0x600   : > { %v3315_v35 = vadd.f32 %v3299_v43, %v6023_v36 }
 0x601   : > { %v3314_v10 = vadd.f32 %v3294_v49, %v6021_v11 }
 0x602   : > { %3321 = vst.msk [vmem:[%s6128_s15 + $0x18] sm:$0xff] %vm1809_vm2, %v3315_v35 }
 0x603   : > { %3320 = vst.msk [vmem:[%s6128_s15 + $0x10] sm:$0xff] %vm1809_vm2, %v3314_v10 }
 0x604   : > { %v3935_v24 = vpop.f32.mrb[4].mxu0 }
 0x605   : > { %v3309_v50 = vadd.f32 %v3935_v24, %v3561_v33  ;;  %v3303_v15 = vpop.f32.mrb[5].mxu0 }
 0x606   : > { %v3304_v2 = vadd.f32 %v3561_v33, %v3303_v15 }
 0x607   : > { %v3317_v8 = vadd.f32 %v3309_v50, %v6031_v56 }
 0x608   : > { %v3316_v36 = vadd.f32 %v3304_v2, %v6029_v19 }
 0x609   : > { %3323 = vst.msk [vmem:[%s6128_s15 + $0x28] sm:$0xff] %vm1809_vm2, %v3317_v8 }
 0x60a   : > { %3322 = vst.msk [vmem:[%s6128_s15 + $0x20] sm:$0xff] %vm1809_vm2, %v3316_v36 }
 0x60b PF: > { %s6134_s18 = sld [smem:[#allocation4_spill]]  ;;  %s6135_s19 = sld [smem:[#allocation5_spill]] }
 0x60c   : > { %p23_p11 = scmp.ge.s32.totalorder %s4709_s22, 4   ;;  %s6136_s20 = smov %s4709_s22 }
 0x60e   :  { %25 = sbr.rel (!%p23_p11) target bundleno = 4 (0x4), region = 156 }

</bundles_post_ra>
